<compile_context>
chip_gen: v7x
topology: tpu7x:2x2x1
jax: 0.10.0
libtpu: 0.0.40
codegen_flags: <defaults>
</compile_context>

<pallas_src>
import jax
import jax.numpy as jnp
import numpy as np
from jax import lax
from jax.experimental import pallas as pl
from jax.experimental.pallas import tpu as pltpu


def _round_up(x, m):
    return ((x + m - 1) // m) * m


def _num_tensorcores():
    """Chip-aware TensorCore count: 2 only on v7x-class parts, 1 on v5e/v6e/unknown."""
    try:
        kind = jax.devices()[0].device_kind.lower()
    except Exception:
        return 1
    return 2 if ("v7" in kind or "7x" in kind) else 1


def _vmem_limit_bytes():
    """Explicit scoped-VMEM budget (default scoped limit is hit long before physical)."""
    try:
        cap = int(pltpu.get_tpu_info().vmem_capacity_bytes)
    except Exception:
        cap = 64 * 1024 * 1024
    return int(cap * 0.8)


def _make_blstm_kernel(num_layers, S, Bc, H, NLP):
    """Kernel refs (in order):
      emb (S,Bc,H) bf16, lens (Bc,1) i32,
      per layer: w_ih_t (in,8H) bf16 [fwd|bwd, gates (i,f,o,g)], w_hh_f_t (H,4H) bf16,
                 w_hh_b_t (H,4H) bf16, bias (1,8H) f32,
      wc_t (2H,NLP) bf16, bc (1,NLP) f32,
      logits_out (S,Bc,NLP) bf16,
      scratch: gx_fwd (S,Bc,4H) bf16, gx_bwd (S,Bc,4H) bf16,
               out_fwd (S,Bc,H) bf16, out_bwd (S,Bc,H) bf16
    """
    n_w = num_layers * 4
    SIG = 3 * H  # sigmoid gates (i, f, o) occupy one contiguous lane region per direction

    def kernel(*refs):
        emb_ref, lens_ref = refs[0], refs[1]
        w_refs = refs[2:2 + n_w]
        wc_ref = refs[2 + n_w]
        bc_ref = refs[3 + n_w]
        logits_ref = refs[4 + n_w]
        gxf_scr = refs[5 + n_w]
        gxb_scr = refs[6 + n_w]
        outf_scr = refs[7 + n_w]
        outb_scr = refs[8 + n_w]

        lens = lens_ref[...]  # (Bc, 1) int32, resident: per-step masks become compares

        def split_k_dot(xf, xb, w_t):
            # concat([xf, xb], -1) @ w_t without materializing the concatenation.
            return (jnp.dot(xf, w_t[0:H, :], preferred_element_type=jnp.float32)
                    + jnp.dot(xb, w_t[H:2 * H, :], preferred_element_type=jnp.float32))

        def gates(g, c):
            # packed gate order per direction: [i, f, o, g] -> 1 sigmoid + 1 tanh pass
            s = jax.nn.sigmoid(g[:, :SIG])
            gg = jnp.tanh(g[:, SIG:])
            i_g, f_g, o_g = s[:, 0:H], s[:, H:2 * H], s[:, 2 * H:3 * H]
            c_new = f_g * c + i_g * gg
            h_new = o_g * jnp.tanh(c_new)
            return h_new, c_new

        for l in range(num_layers):
            base = 4 * l
            w_ih_t = w_refs[base][...]       # (in, 8H) bf16
            whh_f = w_refs[base + 1][...]    # (H, 4H)  bf16
            whh_b = w_refs[base + 2][...]    # (H, 4H)  bf16
            b_all = w_refs[base + 3][...]    # (1, 8H)  f32

            # One fused input-projection matmul per layer (both directions at once),
            # f32 accumulate + bias add, then cast to bf16 per-direction scratches.
            if l == 0:
                x2 = emb_ref[...].reshape(S * Bc, H)            # already bf16
                gx = jnp.dot(x2, w_ih_t, preferred_element_type=jnp.float32)
            else:
                xf = outf_scr[...].reshape(S * Bc, H)           # bf16
                xb = outb_scr[...].reshape(S * Bc, H)           # bf16
                gx = split_k_dot(xf, xb, w_ih_t)
            gx = gx + b_all
            gxf_scr[...] = gx[:, 0:4 * H].astype(jnp.bfloat16).reshape(S, Bc, 4 * H)
            gxb_scr[...] = gx[:, 4 * H:8 * H].astype(jnp.bfloat16).reshape(S, Bc, 4 * H)

            # Interleaved fwd/bwd recurrence (independent -> back-to-back MXU pushes).
            def step(i, carry, whh_f=whh_f, whh_b=whh_b):
                hf, cf, hb, cb = carry          # hf/hb bf16, cf/cb f32
                tf = i
                tb = S - 1 - i
                rec_f = jnp.dot(hf, whh_f, preferred_element_type=jnp.float32)
                rec_b = jnp.dot(hb, whh_b, preferred_element_type=jnp.float32)
                g_f = gxf_scr[pl.ds(tf, 1)][0].astype(jnp.float32) + rec_f
                g_b = gxb_scr[pl.ds(tb, 1)][0].astype(jnp.float32) + rec_b
                hf_c, cf_c = gates(g_f, cf)
                hb_c, cb_c = gates(g_b, cb)
                vf = lens > tf                   # (Bc,1) bool: step valid for this row?
                vb = lens > tb
                hf16 = hf_c.astype(jnp.bfloat16)
                hb16 = hb_c.astype(jnp.bfloat16)
                zero = jnp.zeros_like(hf16)
                # packed-sequence semantics: padded steps emit 0 and freeze the state.
                outf_scr[pl.ds(tf, 1)] = jnp.where(vf, hf16, zero)[None]
                outb_scr[pl.ds(tb, 1)] = jnp.where(vb, hb16, zero)[None]
                return (jnp.where(vf, hf16, hf),
                        jnp.where(vf, cf_c, cf),
                        jnp.where(vb, hb16, hb),
                        jnp.where(vb, cb_c, cb))

            z16 = jnp.zeros((Bc, H), jnp.bfloat16)
            z32 = jnp.zeros((Bc, H), jnp.float32)
            carry = (z16, z32, z16, z32)
            unroll = True if S <= 32 else 8
            carry = lax.fori_loop(0, S, step, carry, unroll=unroll)

        # Token classifier head (Linear(2H -> NLP)), K split across direction scratches.
        xf = outf_scr[...].reshape(S * Bc, H)
        xb = outb_scr[...].reshape(S * Bc, H)
        logits = split_k_dot(xf, xb, wc_ref[...]) + bc_ref[...]
        logits_ref[...] = logits.reshape(S, Bc, NLP).astype(logits_ref.dtype)

    return kernel


def blstm_token_classifier_forward(params, input_ids, attention_mask=None,
                                   batch_chunks=None):
    B, S = input_ids.shape
    if attention_mask is None:
        attention_mask = jnp.ones_like(input_ids)
    H = params["hidden_size"]
    NL = params["num_labels"]
    L = params["num_layers"]

    BP = _round_up(B, 8)          # pad batch to the sublane granule
    NLP = _round_up(NL, 128)      # lane-dense classifier output
    if batch_chunks is None:
        n_tc = _num_tensorcores()
        # Only split the batch when there are 2 TensorCores (v7x) AND both halves stay
        # 8-aligned. On 1-TC chips a 2-step grid would just re-run the latency-bound
        # recurrence serially.
        batch_chunks = n_tc if (n_tc > 1 and BP % (8 * n_tc) == 0) else 1
    Bc = BP // batch_chunks

    # Embedding gathered directly into time-major layout, already bf16 (MXU operand dtype).
    emb_t = params["embedding"][input_ids.T].astype(jnp.bfloat16)        # (S, B, H)
    lens = jnp.sum(attention_mask, axis=1).astype(jnp.int32)[:, None]    # (B, 1)
    if BP != B:
        emb_t = jnp.pad(emb_t, ((0, 0), (0, BP - B), (0, 0)))
        lens = jnp.pad(lens, ((0, BP - B), (0, 0)))   # padded rows: length 0 -> outputs 0

    def reorder(w):  # PyTorch gate order (i,f,g,o) -> (i,f,o,g) along the leading 4H axis
        return jnp.concatenate([w[0:2 * H], w[3 * H:4 * H], w[2 * H:3 * H]], axis=0)

    flat_w = []
    for l in range(L):
        w_ih_f, w_hh_f, b_ih_f, b_hh_f = params["lstm"][(l, "fwd")]
        w_ih_b, w_hh_b, b_ih_b, b_hh_b = params["lstm"][(l, "bwd")]
        w_ih_t = jnp.concatenate([reorder(w_ih_f).T, reorder(w_ih_b).T],
                                 axis=1).astype(jnp.bfloat16)             # (in, 8H)
        whh_f_t = reorder(w_hh_f).T.astype(jnp.bfloat16)                  # (H, 4H)
        whh_b_t = reorder(w_hh_b).T.astype(jnp.bfloat16)
        b_all = jnp.concatenate([reorder(b_ih_f + b_hh_f),
                                 reorder(b_ih_b + b_hh_b)])[None, :].astype(jnp.float32)
        flat_w += [w_ih_t, whh_f_t, whh_b_t, b_all]

    wc_t = jnp.zeros((2 * H, NLP), jnp.bfloat16)
    wc_t = wc_t.at[:, :NL].set(params["classifier_w"].T.astype(jnp.bfloat16))
    bc = jnp.zeros((1, NLP), jnp.float32).at[:, :NL].set(params["classifier_b"][None, :])

    inputs = [emb_t, lens] + flat_w + [wc_t, bc]

    in_specs = [pl.BlockSpec((S, Bc, H), lambda b: (0, b, 0)),
                pl.BlockSpec((Bc, 1), lambda b: (b, 0))]
    # TODO(synk): for large H / deep stacks, stream layer weights (extra "arbitrary" layer
    # grid axis or manual make_async_copy prefetch) instead of keeping all layers resident;
    # matters for v7x's 64 MiB/TC budget. All-resident is fine at these sizes.
    for w in flat_w + [wc_t, bc]:
        in_specs.append(pl.BlockSpec(w.shape, lambda b: (0, 0)))

    out = pl.pallas_call(
        _make_blstm_kernel(L, S, Bc, H, NLP),
        grid=(batch_chunks,),
        out_shape=jax.ShapeDtypeStruct((S, BP, NLP), jnp.bfloat16),
        in_specs=in_specs,
        out_specs=pl.BlockSpec((S, Bc, NLP), lambda b: (0, b, 0)),
        scratch_shapes=[
            pltpu.VMEM((S, Bc, 4 * H), jnp.bfloat16),   # fwd input pre-activations
            pltpu.VMEM((S, Bc, 4 * H), jnp.bfloat16),   # bwd input pre-activations
            pltpu.VMEM((S, Bc, H), jnp.bfloat16),       # forward-direction outputs
            pltpu.VMEM((S, Bc, H), jnp.bfloat16),       # backward-direction outputs
        ],
        compiler_params=pltpu.CompilerParams(
            dimension_semantics=("parallel",),
            vmem_limit_bytes=_vmem_limit_bytes()),
    )(*inputs)

    # Slice off the padded batch/label lanes first (small slab), then restore batch_first.
    # TODO(synk): the remaining (S,B)->(B,S) transpose could be folded into the consumer;
    # kept here to preserve the module's batch_first output contract.
    return jnp.transpose(out[:, :B, :NL].astype(jnp.float32), (1, 0, 2))   # (B, S, NL)


def reference_forward(params, input_ids, attention_mask):
    """Pure-JAX f32 reference implementing the same PyTorch semantics (for verification)."""
    B, S = input_ids.shape
    H = params["hidden_size"]
    L = params["num_layers"]
    x = params["embedding"][input_ids].astype(jnp.float32)               # (B, S, H)
    mask = attention_mask.astype(jnp.float32)                            # (B, S)

    for l in range(L):
        outs = []
        for d, rev in (("fwd", False), ("bwd", True)):
            w_ih, w_hh, b_ih, b_hh = params["lstm"][(l, d)]
            b = b_ih + b_hh

            def cell(carry, inp, w_ih=w_ih, w_hh=w_hh, b=b):
                h, c = carry
                xt, mt = inp
                g = xt @ w_ih.T + h @ w_hh.T + b
                i_g = jax.nn.sigmoid(g[:, 0:H])
                f_g = jax.nn.sigmoid(g[:, H:2 * H])
                g_g = jnp.tanh(g[:, 2 * H:3 * H])
                o_g = jax.nn.sigmoid(g[:, 3 * H:4 * H])
                c_cand = f_g * c + i_g * g_g
                h_cand = o_g * jnp.tanh(c_cand)
                m = mt[:, None]
                return (m * h_cand + (1 - m) * h,
                        m * c_cand + (1 - m) * c), m * h_cand

            xs = (jnp.transpose(x, (1, 0, 2)), mask.T)
            init = (jnp.zeros((B, H), jnp.float32), jnp.zeros((B, H), jnp.float32))
            _, ys = lax.scan(cell, init, xs, reverse=rev)
            outs.append(jnp.transpose(ys, (1, 0, 2)))
        x = jnp.concatenate(outs, axis=-1)

    return x @ params["classifier_w"].T + params["classifier_b"]


def init_params(key, vocab_size, H, L, NL):
    keys = iter(jax.random.split(key, 8 + 4 * L * 2))
    s = float(1.0 / (H ** 0.5))
    emb = jax.random.normal(next(keys), (vocab_size, H), jnp.float32) * 0.1
    emb = emb.at[0].set(0.0)  # padding_idx=0
    lstm = {}
    for l in range(L):
        in_dim = H if l == 0 else 2 * H
        for d in ("fwd", "bwd"):
            w_ih = jax.random.uniform(next(keys), (4 * H, in_dim), jnp.float32, -s, s)
            w_hh = jax.random.uniform(next(keys), (4 * H, H), jnp.float32, -s, s)
            b_ih = jax.random.uniform(next(keys), (4 * H,), jnp.float32, -s, s)
            b_hh = jax.random.uniform(next(keys), (4 * H,), jnp.float32, -s, s)
            lstm[(l, d)] = (w_ih, w_hh, b_ih, b_hh)
    wc = jax.random.uniform(next(keys), (NL, 2 * H), jnp.float32, -0.1, 0.1)
    bc = jax.random.uniform(next(keys), (NL,), jnp.float32, -0.1, 0.1)
    return {
        "embedding": emb, "lstm": lstm,
        "classifier_w": wc, "classifier_b": bc,
        "hidden_size": H, "num_labels": NL, "num_layers": L,
    }


if __name__ == "__main__":
    # Small config consistent with the module: vocab=100, hidden=32, layers=2, labels=7.
    B, S = 2, 8
    vocab_size, H, L, NL = 100, 32, 2, 7

    key = jax.random.PRNGKey(0)
    pkey, ikey = jax.random.split(key)
    params = init_params(pkey, vocab_size, H, L, NL)

    lengths = jnp.array([8, 5], dtype=jnp.int32)            # second sequence is padded
    pos = jnp.arange(S)[None, :]
    attention_mask = (pos < lengths[:, None]).astype(jnp.int32)
    ids = jax.random.randint(ikey, (B, S), 1, vocab_size, dtype=jnp.int32)
    input_ids = jnp.where(attention_mask == 1, ids, 0)

    logits = jax.block_until_ready(
        blstm_token_classifier_forward(params, input_ids, attention_mask))
    assert logits.shape == (B, S, NL)
    ref = reference_forward(params, input_ids, attention_mask)
    # bf16 MXU operands, bf16 gx / output writeback (f32 accumulation & cell state)
    # -> loosened tolerance vs the f32 reference.
    np.testing.assert_allclose(np.asarray(logits), np.asarray(ref), rtol=3e-2, atol=3e-2)

    # Second config: batch padded to 16 -> exercises the 2-chunk "parallel" batch grid on
    # v7x (two TensorCores); stays a single chunk on 1-TC chips (v5e/v6e).
    B2 = 10
    k1, k2 = jax.random.split(jax.random.PRNGKey(1))
    lengths2 = jax.random.randint(k1, (B2,), 1, S + 1, dtype=jnp.int32)
    mask2 = (jnp.arange(S)[None, :] < lengths2[:, None]).astype(jnp.int32)
    ids2 = jax.random.randint(k2, (B2, S), 1, vocab_size, dtype=jnp.int32)
    input_ids2 = jnp.where(mask2 == 1, ids2, 0)
    logits2 = jax.block_until_ready(
        blstm_token_classifier_forward(params, input_ids2, mask2))
    assert logits2.shape == (B2, S, NL)
    ref2 = reference_forward(params, input_ids2, mask2)
    np.testing.assert_allclose(np.asarray(logits2), np.asarray(ref2), rtol=3e-2, atol=3e-2)

    # TODO(synk): optional labels/CrossEntropyLoss branch of the PyTorch module not
    # implemented (forward without labels returns only logits, matching outputs = (logits,)).
    print("KERNEL_OK")
</pallas_src>

<mosaic_0001>
module attributes {stable_mosaic.version = 11 : i64} {
  func.func @kernel(%arg0: i32, %arg1: memref<8x8x32xbf16, #tpu.memory_space<vmem>>, %arg2: memref<8x1xi32, #tpu.memory_space<vmem>>, %arg3: memref<32x256xbf16, #tpu.memory_space<vmem>>, %arg4: memref<32x128xbf16, #tpu.memory_space<vmem>>, %arg5: memref<32x128xbf16, #tpu.memory_space<vmem>>, %arg6: memref<1x256xf32, #tpu.memory_space<vmem>>, %arg7: memref<64x256xbf16, #tpu.memory_space<vmem>>, %arg8: memref<32x128xbf16, #tpu.memory_space<vmem>>, %arg9: memref<32x128xbf16, #tpu.memory_space<vmem>>, %arg10: memref<1x256xf32, #tpu.memory_space<vmem>>, %arg11: memref<64x128xbf16, #tpu.memory_space<vmem>>, %arg12: memref<1x128xf32, #tpu.memory_space<vmem>>, %arg13: memref<8x8x128xbf16, #tpu.memory_space<vmem>>, %arg14: memref<8x8x128xbf16, #tpu.memory_space<vmem>>, %arg15: memref<8x8x128xbf16, #tpu.memory_space<vmem>>, %arg16: memref<8x8x32xbf16, #tpu.memory_space<vmem>>, %arg17: memref<8x8x32xbf16, #tpu.memory_space<vmem>>) attributes {dimension_semantics = [#tpu.dimension_semantics<parallel>], iteration_bounds = array<i64: 1>, scalar_prefetch = 0 : i64, scratch_operands = 4 : i64, tpu.core_type = #tpu.core_type<tc>, window_params = [{transform_indices = @transform_0, window_bounds = array<i64: 8, 8, 32>}, {transform_indices = @transform_1, window_bounds = array<i64: 8, 1>}, {pipeline_mode = #tpu.pipeline_mode<synchronous>, transform_indices = @transform_2, window_bounds = array<i64: 32, 256>}, {pipeline_mode = #tpu.pipeline_mode<synchronous>, transform_indices = @transform_3, window_bounds = array<i64: 32, 128>}, {pipeline_mode = #tpu.pipeline_mode<synchronous>, transform_indices = @transform_4, window_bounds = array<i64: 32, 128>}, {pipeline_mode = #tpu.pipeline_mode<synchronous>, transform_indices = @transform_5, window_bounds = array<i64: 1, 256>}, {pipeline_mode = #tpu.pipeline_mode<synchronous>, transform_indices = @transform_6, window_bounds = array<i64: 64, 256>}, {pipeline_mode = #tpu.pipeline_mode<synchronous>, transform_indices = @transform_7, window_bounds = array<i64: 32, 128>}, {pipeline_mode = #tpu.pipeline_mode<synchronous>, transform_indices = @transform_8, window_bounds = array<i64: 32, 128>}, {pipeline_mode = #tpu.pipeline_mode<synchronous>, transform_indices = @transform_9, window_bounds = array<i64: 1, 256>}, {pipeline_mode = #tpu.pipeline_mode<synchronous>, transform_indices = @transform_10, window_bounds = array<i64: 64, 128>}, {pipeline_mode = #tpu.pipeline_mode<synchronous>, transform_indices = @transform_11, window_bounds = array<i64: 1, 128>}, {transform_indices = @transform_12, window_bounds = array<i64: 8, 8, 128>}]} {
    %c0 = arith.constant 0 : index
    %c0_0 = arith.constant 0 : index
    %0 = vector.load %arg2[%c0, %c0_0] : memref<8x1xi32, #tpu.memory_space<vmem>>, vector<8x1xi32>
    %c0_1 = arith.constant 0 : index
    %c0_2 = arith.constant 0 : index
    %1 = vector.load %arg3[%c0_1, %c0_2] : memref<32x256xbf16, #tpu.memory_space<vmem>>, vector<32x256xbf16>
    %c0_3 = arith.constant 0 : index
    %c0_4 = arith.constant 0 : index
    %2 = vector.load %arg4[%c0_3, %c0_4] : memref<32x128xbf16, #tpu.memory_space<vmem>>, vector<32x128xbf16>
    %c0_5 = arith.constant 0 : index
    %c0_6 = arith.constant 0 : index
    %3 = vector.load %arg5[%c0_5, %c0_6] : memref<32x128xbf16, #tpu.memory_space<vmem>>, vector<32x128xbf16>
    %c0_7 = arith.constant 0 : index
    %c0_8 = arith.constant 0 : index
    %4 = vector.load %arg6[%c0_7, %c0_8] : memref<1x256xf32, #tpu.memory_space<vmem>>, vector<1x256xf32>
    %c0_9 = arith.constant 0 : index
    %c0_10 = arith.constant 0 : index
    %c0_11 = arith.constant 0 : index
    %5 = vector.load %arg1[%c0_9, %c0_10, %c0_11] : memref<8x8x32xbf16, #tpu.memory_space<vmem>>, vector<8x8x32xbf16>
    %6 = vector.shape_cast %5 : vector<8x8x32xbf16> to vector<64x32xbf16>
    %cst = arith.constant dense<0.000000e+00> : vector<64x256xf32>
    %7 = tpu.matmul %6, %1, %cst {dimension_numbers = #tpu.dot_dimension_numbers<[1], [0], [0], [1], [0, 0, 1, 1], [], []>} : vector<64x32xbf16>, vector<32x256xbf16>, vector<64x256xf32> -> vector<64x256xf32>
    %8 = vector.broadcast %4 : vector<1x256xf32> to vector<64x256xf32>
    %9 = arith.addf %7, %8 : vector<64x256xf32>
    %10 = vector.extract_strided_slice %9 {offsets = [0, 0], sizes = [64, 128], strides = [1, 1]} : vector<64x256xf32> to vector<64x128xf32>
    %11 = arith.truncf %10 : vector<64x128xf32> to vector<64x128xbf16>
    %12 = vector.shape_cast %11 : vector<64x128xbf16> to vector<8x8x128xbf16>
    %c0_12 = arith.constant 0 : index
    %c0_13 = arith.constant 0 : index
    %c0_14 = arith.constant 0 : index
    %13 = vector.load %arg14[%c0_12, %c0_13, %c0_14] : memref<8x8x128xbf16, #tpu.memory_space<vmem>>, vector<8x8x128xbf16>
    tpu.vector_store %arg14[%c0_12, %c0_13, %c0_14], %12 {strides = array<i32>} : memref<8x8x128xbf16, #tpu.memory_space<vmem>>, vector<8x8x128xbf16>,
    %14 = vector.extract_strided_slice %9 {offsets = [0, 128], sizes = [64, 128], strides = [1, 1]} : vector<64x256xf32> to vector<64x128xf32>
    %15 = arith.truncf %14 : vector<64x128xf32> to vector<64x128xbf16>
    %16 = vector.shape_cast %15 : vector<64x128xbf16> to vector<8x8x128xbf16>
    %c0_15 = arith.constant 0 : index
    %c0_16 = arith.constant 0 : index
    %c0_17 = arith.constant 0 : index
    %17 = vector.load %arg15[%c0_15, %c0_16, %c0_17] : memref<8x8x128xbf16, #tpu.memory_space<vmem>>, vector<8x8x128xbf16>
    tpu.vector_store %arg15[%c0_15, %c0_16, %c0_17], %16 {strides = array<i32>} : memref<8x8x128xbf16, #tpu.memory_space<vmem>>, vector<8x8x128xbf16>,
    %cst_18 = arith.constant 0.000000e+00 : bf16
    %18 = vector.broadcast %cst_18 : bf16 to vector<8x32xbf16>
    %cst_19 = arith.constant 0.000000e+00 : f32
    %19 = vector.broadcast %cst_19 : f32 to vector<8x32xf32>
    %c0_i32 = arith.constant 0 : i32
    %c7_i32 = arith.constant 7 : i32
    %20 = arith.subi %c7_i32, %c0_i32 : i32
    %cst_20 = arith.constant dense<0.000000e+00> : vector<8x128xf32>
    %21 = tpu.matmul %18, %2, %cst_20 {dimension_numbers = #tpu.dot_dimension_numbers<[1], [0], [0], [1], [0, 0, 1, 1], [], []>} : vector<8x32xbf16>, vector<32x128xbf16>, vector<8x128xf32> -> vector<8x128xf32>
    %cst_21 = arith.constant dense<0.000000e+00> : vector<8x128xf32>
    %22 = tpu.matmul %18, %3, %cst_21 {dimension_numbers = #tpu.dot_dimension_numbers<[1], [0], [0], [1], [0, 0, 1, 1], [], []>} : vector<8x32xbf16>, vector<32x128xbf16>, vector<8x128xf32> -> vector<8x128xf32>
    %23 = arith.index_cast %c0_i32 : i32 to index
    %c0_22 = arith.constant 0 : index
    %c0_23 = arith.constant 0 : index
    %24 = vector.load %arg14[%23, %c0_22, %c0_23] : memref<8x8x128xbf16, #tpu.memory_space<vmem>>, vector<1x8x128xbf16>
    %25 = vector.shape_cast %24 : vector<1x8x128xbf16> to vector<8x128xbf16>
    %26 = arith.extf %25 : vector<8x128xbf16> to vector<8x128xf32>
    %27 = arith.addf %26, %21 : vector<8x128xf32>
    %28 = arith.index_cast %20 : i32 to index
    %c0_24 = arith.constant 0 : index
    %c0_25 = arith.constant 0 : index
    %29 = vector.load %arg15[%28, %c0_24, %c0_25] : memref<8x8x128xbf16, #tpu.memory_space<vmem>>, vector<1x8x128xbf16>
    %30 = vector.shape_cast %29 : vector<1x8x128xbf16> to vector<8x128xbf16>
    %31 = arith.extf %30 : vector<8x128xbf16> to vector<8x128xf32>
    %32 = arith.addf %31, %22 : vector<8x128xf32>
    %33 = vector.extract_strided_slice %27 {offsets = [0, 0], sizes = [8, 96], strides = [1, 1]} : vector<8x128xf32> to vector<8x96xf32>
    %34 = arith.negf %33 : vector<8x96xf32>
    %35 = math.exp %34 : vector<8x96xf32>
    %cst_26 = arith.constant 1.000000e+00 : f32
    %36 = vector.broadcast %cst_26 : f32 to vector<8x96xf32>
    %37 = arith.addf %36, %35 : vector<8x96xf32>
    %38 = arith.divf %36, %37 : vector<8x96xf32>
    %39 = vector.extract_strided_slice %27 {offsets = [0, 96], sizes = [8, 32], strides = [1, 1]} : vector<8x128xf32> to vector<8x32xf32>
    %40 = math.tanh %39 : vector<8x32xf32>
    %41 = vector.extract_strided_slice %38 {offsets = [0, 0], sizes = [8, 32], strides = [1, 1]} : vector<8x96xf32> to vector<8x32xf32>
    %42 = vector.extract_strided_slice %38 {offsets = [0, 32], sizes = [8, 32], strides = [1, 1]} : vector<8x96xf32> to vector<8x32xf32>
    %43 = vector.extract_strided_slice %38 {offsets = [0, 64], sizes = [8, 32], strides = [1, 1]} : vector<8x96xf32> to vector<8x32xf32>
    %44 = arith.mulf %42, %19 : vector<8x32xf32>
    %45 = arith.mulf %41, %40 : vector<8x32xf32>
    %46 = arith.addf %44, %45 : vector<8x32xf32>
    %47 = math.tanh %46 : vector<8x32xf32>
    %48 = arith.mulf %43, %47 : vector<8x32xf32>
    %49 = vector.extract_strided_slice %32 {offsets = [0, 0], sizes = [8, 96], strides = [1, 1]} : vector<8x128xf32> to vector<8x96xf32>
    %50 = arith.negf %49 : vector<8x96xf32>
    %51 = math.exp %50 : vector<8x96xf32>
    %cst_27 = arith.constant 1.000000e+00 : f32
    %52 = vector.broadcast %cst_27 : f32 to vector<8x96xf32>
    %53 = arith.addf %52, %51 : vector<8x96xf32>
    %54 = arith.divf %52, %53 : vector<8x96xf32>
    %55 = vector.extract_strided_slice %32 {offsets = [0, 96], sizes = [8, 32], strides = [1, 1]} : vector<8x128xf32> to vector<8x32xf32>
    %56 = math.tanh %55 : vector<8x32xf32>
    %57 = vector.extract_strided_slice %54 {offsets = [0, 0], sizes = [8, 32], strides = [1, 1]} : vector<8x96xf32> to vector<8x32xf32>
    %58 = vector.extract_strided_slice %54 {offsets = [0, 32], sizes = [8, 32], strides = [1, 1]} : vector<8x96xf32> to vector<8x32xf32>
    %59 = vector.extract_strided_slice %54 {offsets = [0, 64], sizes = [8, 32], strides = [1, 1]} : vector<8x96xf32> to vector<8x32xf32>
    %60 = arith.mulf %58, %19 : vector<8x32xf32>
    %61 = arith.mulf %57, %56 : vector<8x32xf32>
    %62 = arith.addf %60, %61 : vector<8x32xf32>
    %63 = math.tanh %62 : vector<8x32xf32>
    %64 = arith.mulf %59, %63 : vector<8x32xf32>
    %65 = vector.broadcast %c0_i32 : i32 to vector<8x1xi32>
    %66 = arith.cmpi sgt, %0, %65 : vector<8x1xi32>
    %67 = vector.broadcast %20 : i32 to vector<8x1xi32>
    %68 = arith.cmpi sgt, %0, %67 : vector<8x1xi32>
    %69 = arith.truncf %48 : vector<8x32xf32> to vector<8x32xbf16>
    %70 = arith.truncf %64 : vector<8x32xf32> to vector<8x32xbf16>
    %cst_28 = arith.constant 0.000000e+00 : bf16
    %71 = vector.broadcast %cst_28 : bf16 to vector<8x32xbf16>
    %72 = vector.shape_cast %66 : vector<8x1xi1> to vector<8x1xi1>
    %73 = vector.broadcast %72 : vector<8x1xi1> to vector<8x32xi1>
    %74 = arith.select %73, %69, %71 : vector<8x32xi1>, vector<8x32xbf16>
    %75 = vector.shape_cast %74 : vector<8x32xbf16> to vector<1x8x32xbf16>
    %76 = arith.index_cast %c0_i32 : i32 to index
    %c0_29 = arith.constant 0 : index
    %c0_30 = arith.constant 0 : index
    %77 = vector.load %arg16[%76, %c0_29, %c0_30] : memref<8x8x32xbf16, #tpu.memory_space<vmem>>, vector<1x8x32xbf16>
    tpu.vector_store %arg16[%76, %c0_29, %c0_30], %75 {strides = array<i32>} : memref<8x8x32xbf16, #tpu.memory_space<vmem>>, vector<1x8x32xbf16>,
    %78 = vector.shape_cast %68 : vector<8x1xi1> to vector<8x1xi1>
    %79 = vector.broadcast %78 : vector<8x1xi1> to vector<8x32xi1>
    %80 = arith.select %79, %70, %71 : vector<8x32xi1>, vector<8x32xbf16>
    %81 = vector.shape_cast %80 : vector<8x32xbf16> to vector<1x8x32xbf16>
    %82 = arith.index_cast %20 : i32 to index
    %c0_31 = arith.constant 0 : index
    %c0_32 = arith.constant 0 : index
    %83 = vector.load %arg17[%82, %c0_31, %c0_32] : memref<8x8x32xbf16, #tpu.memory_space<vmem>>, vector<1x8x32xbf16>
    tpu.vector_store %arg17[%82, %c0_31, %c0_32], %81 {strides = array<i32>} : memref<8x8x32xbf16, #tpu.memory_space<vmem>>, vector<1x8x32xbf16>,
    %84 = vector.shape_cast %66 : vector<8x1xi1> to vector<8x1xi1>
    %85 = vector.broadcast %84 : vector<8x1xi1> to vector<8x32xi1>
    %86 = arith.select %85, %69, %18 : vector<8x32xi1>, vector<8x32xbf16>
    %87 = vector.shape_cast %66 : vector<8x1xi1> to vector<8x1xi1>
    %88 = vector.broadcast %87 : vector<8x1xi1> to vector<8x32xi1>
    %89 = arith.select %88, %46, %19 : vector<8x32xi1>, vector<8x32xf32>
    %90 = vector.shape_cast %68 : vector<8x1xi1> to vector<8x1xi1>
    %91 = vector.broadcast %90 : vector<8x1xi1> to vector<8x32xi1>
    %92 = arith.select %91, %70, %18 : vector<8x32xi1>, vector<8x32xbf16>
    %93 = vector.shape_cast %68 : vector<8x1xi1> to vector<8x1xi1>
    %94 = vector.broadcast %93 : vector<8x1xi1> to vector<8x32xi1>
    %95 = arith.select %94, %62, %19 : vector<8x32xi1>, vector<8x32xf32>
    %c1_i32 = arith.constant 1 : i32
    %c7_i32_33 = arith.constant 7 : i32
    %96 = arith.subi %c7_i32_33, %c1_i32 : i32
    %cst_34 = arith.constant dense<0.000000e+00> : vector<8x128xf32>
    %97 = tpu.matmul %86, %2, %cst_34 {dimension_numbers = #tpu.dot_dimension_numbers<[1], [0], [0], [1], [0, 0, 1, 1], [], []>} : vector<8x32xbf16>, vector<32x128xbf16>, vector<8x128xf32> -> vector<8x128xf32>
    %cst_35 = arith.constant dense<0.000000e+00> : vector<8x128xf32>
    %98 = tpu.matmul %92, %3, %cst_35 {dimension_numbers = #tpu.dot_dimension_numbers<[1], [0], [0], [1], [0, 0, 1, 1], [], []>} : vector<8x32xbf16>, vector<32x128xbf16>, vector<8x128xf32> -> vector<8x128xf32>
    %99 = arith.index_cast %c1_i32 : i32 to index
    %c0_36 = arith.constant 0 : index
    %c0_37 = arith.constant 0 : index
    %100 = vector.load %arg14[%99, %c0_36, %c0_37] : memref<8x8x128xbf16, #tpu.memory_space<vmem>>, vector<1x8x128xbf16>
    %101 = vector.shape_cast %100 : vector<1x8x128xbf16> to vector<8x128xbf16>
    %102 = arith.extf %101 : vector<8x128xbf16> to vector<8x128xf32>
    %103 = arith.addf %102, %97 : vector<8x128xf32>
    %104 = arith.index_cast %96 : i32 to index
    %c0_38 = arith.constant 0 : index
    %c0_39 = arith.constant 0 : index
    %105 = vector.load %arg15[%104, %c0_38, %c0_39] : memref<8x8x128xbf16, #tpu.memory_space<vmem>>, vector<1x8x128xbf16>
    %106 = vector.shape_cast %105 : vector<1x8x128xbf16> to vector<8x128xbf16>
    %107 = arith.extf %106 : vector<8x128xbf16> to vector<8x128xf32>
    %108 = arith.addf %107, %98 : vector<8x128xf32>
    %109 = vector.extract_strided_slice %103 {offsets = [0, 0], sizes = [8, 96], strides = [1, 1]} : vector<8x128xf32> to vector<8x96xf32>
    %110 = arith.negf %109 : vector<8x96xf32>
    %111 = math.exp %110 : vector<8x96xf32>
    %cst_40 = arith.constant 1.000000e+00 : f32
    %112 = vector.broadcast %cst_40 : f32 to vector<8x96xf32>
    %113 = arith.addf %112, %111 : vector<8x96xf32>
    %114 = arith.divf %112, %113 : vector<8x96xf32>
    %115 = vector.extract_strided_slice %103 {offsets = [0, 96], sizes = [8, 32], strides = [1, 1]} : vector<8x128xf32> to vector<8x32xf32>
    %116 = math.tanh %115 : vector<8x32xf32>
    %117 = vector.extract_strided_slice %114 {offsets = [0, 0], sizes = [8, 32], strides = [1, 1]} : vector<8x96xf32> to vector<8x32xf32>
    %118 = vector.extract_strided_slice %114 {offsets = [0, 32], sizes = [8, 32], strides = [1, 1]} : vector<8x96xf32> to vector<8x32xf32>
    %119 = vector.extract_strided_slice %114 {offsets = [0, 64], sizes = [8, 32], strides = [1, 1]} : vector<8x96xf32> to vector<8x32xf32>
    %120 = arith.mulf %118, %89 : vector<8x32xf32>
    %121 = arith.mulf %117, %116 : vector<8x32xf32>
    %122 = arith.addf %120, %121 : vector<8x32xf32>
    %123 = math.tanh %122 : vector<8x32xf32>
    %124 = arith.mulf %119, %123 : vector<8x32xf32>
    %125 = vector.extract_strided_slice %108 {offsets = [0, 0], sizes = [8, 96], strides = [1, 1]} : vector<8x128xf32> to vector<8x96xf32>
    %126 = arith.negf %125 : vector<8x96xf32>
    %127 = math.exp %126 : vector<8x96xf32>
    %cst_41 = arith.constant 1.000000e+00 : f32
    %128 = vector.broadcast %cst_41 : f32 to vector<8x96xf32>
    %129 = arith.addf %128, %127 : vector<8x96xf32>
    %130 = arith.divf %128, %129 : vector<8x96xf32>
    %131 = vector.extract_strided_slice %108 {offsets = [0, 96], sizes = [8, 32], strides = [1, 1]} : vector<8x128xf32> to vector<8x32xf32>
    %132 = math.tanh %131 : vector<8x32xf32>
    %133 = vector.extract_strided_slice %130 {offsets = [0, 0], sizes = [8, 32], strides = [1, 1]} : vector<8x96xf32> to vector<8x32xf32>
    %134 = vector.extract_strided_slice %130 {offsets = [0, 32], sizes = [8, 32], strides = [1, 1]} : vector<8x96xf32> to vector<8x32xf32>
    %135 = vector.extract_strided_slice %130 {offsets = [0, 64], sizes = [8, 32], strides = [1, 1]} : vector<8x96xf32> to vector<8x32xf32>
    %136 = arith.mulf %134, %95 : vector<8x32xf32>
    %137 = arith.mulf %133, %132 : vector<8x32xf32>
    %138 = arith.addf %136, %137 : vector<8x32xf32>
    %139 = math.tanh %138 : vector<8x32xf32>
    %140 = arith.mulf %135, %139 : vector<8x32xf32>
    %141 = vector.broadcast %c1_i32 : i32 to vector<8x1xi32>
    %142 = arith.cmpi sgt, %0, %141 : vector<8x1xi32>
    %143 = vector.broadcast %96 : i32 to vector<8x1xi32>
    %144 = arith.cmpi sgt, %0, %143 : vector<8x1xi32>
    %145 = arith.truncf %124 : vector<8x32xf32> to vector<8x32xbf16>
    %146 = arith.truncf %140 : vector<8x32xf32> to vector<8x32xbf16>
    %cst_42 = arith.constant 0.000000e+00 : bf16
    %147 = vector.broadcast %cst_42 : bf16 to vector<8x32xbf16>
    %148 = vector.shape_cast %142 : vector<8x1xi1> to vector<8x1xi1>
    %149 = vector.broadcast %148 : vector<8x1xi1> to vector<8x32xi1>
    %150 = arith.select %149, %145, %147 : vector<8x32xi1>, vector<8x32xbf16>
    %151 = vector.shape_cast %150 : vector<8x32xbf16> to vector<1x8x32xbf16>
    %152 = arith.index_cast %c1_i32 : i32 to index
    %c0_43 = arith.constant 0 : index
    %c0_44 = arith.constant 0 : index
    %153 = vector.load %arg16[%152, %c0_43, %c0_44] : memref<8x8x32xbf16, #tpu.memory_space<vmem>>, vector<1x8x32xbf16>
    tpu.vector_store %arg16[%152, %c0_43, %c0_44], %151 {strides = array<i32>} : memref<8x8x32xbf16, #tpu.memory_space<vmem>>, vector<1x8x32xbf16>,
    %154 = vector.shape_cast %144 : vector<8x1xi1> to vector<8x1xi1>
    %155 = vector.broadcast %154 : vector<8x1xi1> to vector<8x32xi1>
    %156 = arith.select %155, %146, %147 : vector<8x32xi1>, vector<8x32xbf16>
    %157 = vector.shape_cast %156 : vector<8x32xbf16> to vector<1x8x32xbf16>
    %158 = arith.index_cast %96 : i32 to index
    %c0_45 = arith.constant 0 : index
    %c0_46 = arith.constant 0 : index
    %159 = vector.load %arg17[%158, %c0_45, %c0_46] : memref<8x8x32xbf16, #tpu.memory_space<vmem>>, vector<1x8x32xbf16>
    tpu.vector_store %arg17[%158, %c0_45, %c0_46], %157 {strides = array<i32>} : memref<8x8x32xbf16, #tpu.memory_space<vmem>>, vector<1x8x32xbf16>,
    %160 = vector.shape_cast %142 : vector<8x1xi1> to vector<8x1xi1>
    %161 = vector.broadcast %160 : vector<8x1xi1> to vector<8x32xi1>
    %162 = arith.select %161, %145, %86 : vector<8x32xi1>, vector<8x32xbf16>
    %163 = vector.shape_cast %142 : vector<8x1xi1> to vector<8x1xi1>
    %164 = vector.broadcast %163 : vector<8x1xi1> to vector<8x32xi1>
    %165 = arith.select %164, %122, %89 : vector<8x32xi1>, vector<8x32xf32>
    %166 = vector.shape_cast %144 : vector<8x1xi1> to vector<8x1xi1>
    %167 = vector.broadcast %166 : vector<8x1xi1> to vector<8x32xi1>
    %168 = arith.select %167, %146, %92 : vector<8x32xi1>, vector<8x32xbf16>
    %169 = vector.shape_cast %144 : vector<8x1xi1> to vector<8x1xi1>
    %170 = vector.broadcast %169 : vector<8x1xi1> to vector<8x32xi1>
    %171 = arith.select %170, %138, %95 : vector<8x32xi1>, vector<8x32xf32>
    %c2_i32 = arith.constant 2 : i32
    %c7_i32_47 = arith.constant 7 : i32
    %172 = arith.subi %c7_i32_47, %c2_i32 : i32
    %cst_48 = arith.constant dense<0.000000e+00> : vector<8x128xf32>
    %173 = tpu.matmul %162, %2, %cst_48 {dimension_numbers = #tpu.dot_dimension_numbers<[1], [0], [0], [1], [0, 0, 1, 1], [], []>} : vector<8x32xbf16>, vector<32x128xbf16>, vector<8x128xf32> -> vector<8x128xf32>
    %cst_49 = arith.constant dense<0.000000e+00> : vector<8x128xf32>
    %174 = tpu.matmul %168, %3, %cst_49 {dimension_numbers = #tpu.dot_dimension_numbers<[1], [0], [0], [1], [0, 0, 1, 1], [], []>} : vector<8x32xbf16>, vector<32x128xbf16>, vector<8x128xf32> -> vector<8x128xf32>
    %175 = arith.index_cast %c2_i32 : i32 to index
    %c0_50 = arith.constant 0 : index
    %c0_51 = arith.constant 0 : index
    %176 = vector.load %arg14[%175, %c0_50, %c0_51] : memref<8x8x128xbf16, #tpu.memory_space<vmem>>, vector<1x8x128xbf16>
    %177 = vector.shape_cast %176 : vector<1x8x128xbf16> to vector<8x128xbf16>
    %178 = arith.extf %177 : vector<8x128xbf16> to vector<8x128xf32>
    %179 = arith.addf %178, %173 : vector<8x128xf32>
    %180 = arith.index_cast %172 : i32 to index
    %c0_52 = arith.constant 0 : index
    %c0_53 = arith.constant 0 : index
    %181 = vector.load %arg15[%180, %c0_52, %c0_53] : memref<8x8x128xbf16, #tpu.memory_space<vmem>>, vector<1x8x128xbf16>
    %182 = vector.shape_cast %181 : vector<1x8x128xbf16> to vector<8x128xbf16>
    %183 = arith.extf %182 : vector<8x128xbf16> to vector<8x128xf32>
    %184 = arith.addf %183, %174 : vector<8x128xf32>
    %185 = vector.extract_strided_slice %179 {offsets = [0, 0], sizes = [8, 96], strides = [1, 1]} : vector<8x128xf32> to vector<8x96xf32>
    %186 = arith.negf %185 : vector<8x96xf32>
    %187 = math.exp %186 : vector<8x96xf32>
    %cst_54 = arith.constant 1.000000e+00 : f32
    %188 = vector.broadcast %cst_54 : f32 to vector<8x96xf32>
    %189 = arith.addf %188, %187 : vector<8x96xf32>
    %190 = arith.divf %188, %189 : vector<8x96xf32>
    %191 = vector.extract_strided_slice %179 {offsets = [0, 96], sizes = [8, 32], strides = [1, 1]} : vector<8x128xf32> to vector<8x32xf32>
    %192 = math.tanh %191 : vector<8x32xf32>
    %193 = vector.extract_strided_slice %190 {offsets = [0, 0], sizes = [8, 32], strides = [1, 1]} : vector<8x96xf32> to vector<8x32xf32>
    %194 = vector.extract_strided_slice %190 {offsets = [0, 32], sizes = [8, 32], strides = [1, 1]} : vector<8x96xf32> to vector<8x32xf32>
    %195 = vector.extract_strided_slice %190 {offsets = [0, 64], sizes = [8, 32], strides = [1, 1]} : vector<8x96xf32> to vector<8x32xf32>
    %196 = arith.mulf %194, %165 : vector<8x32xf32>
    %197 = arith.mulf %193, %192 : vector<8x32xf32>
    %198 = arith.addf %196, %197 : vector<8x32xf32>
    %199 = math.tanh %198 : vector<8x32xf32>
    %200 = arith.mulf %195, %199 : vector<8x32xf32>
    %201 = vector.extract_strided_slice %184 {offsets = [0, 0], sizes = [8, 96], strides = [1, 1]} : vector<8x128xf32> to vector<8x96xf32>
    %202 = arith.negf %201 : vector<8x96xf32>
    %203 = math.exp %202 : vector<8x96xf32>
    %cst_55 = arith.constant 1.000000e+00 : f32
    %204 = vector.broadcast %cst_55 : f32 to vector<8x96xf32>
    %205 = arith.addf %204, %203 : vector<8x96xf32>
    %206 = arith.divf %204, %205 : vector<8x96xf32>
    %207 = vector.extract_strided_slice %184 {offsets = [0, 96], sizes = [8, 32], strides = [1, 1]} : vector<8x128xf32> to vector<8x32xf32>
    %208 = math.tanh %207 : vector<8x32xf32>
    %209 = vector.extract_strided_slice %206 {offsets = [0, 0], sizes = [8, 32], strides = [1, 1]} : vector<8x96xf32> to vector<8x32xf32>
    %210 = vector.extract_strided_slice %206 {offsets = [0, 32], sizes = [8, 32], strides = [1, 1]} : vector<8x96xf32> to vector<8x32xf32>
    %211 = vector.extract_strided_slice %206 {offsets = [0, 64], sizes = [8, 32], strides = [1, 1]} : vector<8x96xf32> to vector<8x32xf32>
    %212 = arith.mulf %210, %171 : vector<8x32xf32>
    %213 = arith.mulf %209, %208 : vector<8x32xf32>
    %214 = arith.addf %212, %213 : vector<8x32xf32>
    %215 = math.tanh %214 : vector<8x32xf32>
    %216 = arith.mulf %211, %215 : vector<8x32xf32>
    %217 = vector.broadcast %c2_i32 : i32 to vector<8x1xi32>
    %218 = arith.cmpi sgt, %0, %217 : vector<8x1xi32>
    %219 = vector.broadcast %172 : i32 to vector<8x1xi32>
    %220 = arith.cmpi sgt, %0, %219 : vector<8x1xi32>
    %221 = arith.truncf %200 : vector<8x32xf32> to vector<8x32xbf16>
    %222 = arith.truncf %216 : vector<8x32xf32> to vector<8x32xbf16>
    %cst_56 = arith.constant 0.000000e+00 : bf16
    %223 = vector.broadcast %cst_56 : bf16 to vector<8x32xbf16>
    %224 = vector.shape_cast %218 : vector<8x1xi1> to vector<8x1xi1>
    %225 = vector.broadcast %224 : vector<8x1xi1> to vector<8x32xi1>
    %226 = arith.select %225, %221, %223 : vector<8x32xi1>, vector<8x32xbf16>
    %227 = vector.shape_cast %226 : vector<8x32xbf16> to vector<1x8x32xbf16>
    %228 = arith.index_cast %c2_i32 : i32 to index
    %c0_57 = arith.constant 0 : index
    %c0_58 = arith.constant 0 : index
    %229 = vector.load %arg16[%228, %c0_57, %c0_58] : memref<8x8x32xbf16, #tpu.memory_space<vmem>>, vector<1x8x32xbf16>
    tpu.vector_store %arg16[%228, %c0_57, %c0_58], %227 {strides = array<i32>} : memref<8x8x32xbf16, #tpu.memory_space<vmem>>, vector<1x8x32xbf16>,
    %230 = vector.shape_cast %220 : vector<8x1xi1> to vector<8x1xi1>
    %231 = vector.broadcast %230 : vector<8x1xi1> to vector<8x32xi1>
    %232 = arith.select %231, %222, %223 : vector<8x32xi1>, vector<8x32xbf16>
    %233 = vector.shape_cast %232 : vector<8x32xbf16> to vector<1x8x32xbf16>
    %234 = arith.index_cast %172 : i32 to index
    %c0_59 = arith.constant 0 : index
    %c0_60 = arith.constant 0 : index
    %235 = vector.load %arg17[%234, %c0_59, %c0_60] : memref<8x8x32xbf16, #tpu.memory_space<vmem>>, vector<1x8x32xbf16>
    tpu.vector_store %arg17[%234, %c0_59, %c0_60], %233 {strides = array<i32>} : memref<8x8x32xbf16, #tpu.memory_space<vmem>>, vector<1x8x32xbf16>,
    %236 = vector.shape_cast %218 : vector<8x1xi1> to vector<8x1xi1>
    %237 = vector.broadcast %236 : vector<8x1xi1> to vector<8x32xi1>
    %238 = arith.select %237, %221, %162 : vector<8x32xi1>, vector<8x32xbf16>
    %239 = vector.shape_cast %218 : vector<8x1xi1> to vector<8x1xi1>
    %240 = vector.broadcast %239 : vector<8x1xi1> to vector<8x32xi1>
    %241 = arith.select %240, %198, %165 : vector<8x32xi1>, vector<8x32xf32>
    %242 = vector.shape_cast %220 : vector<8x1xi1> to vector<8x1xi1>
    %243 = vector.broadcast %242 : vector<8x1xi1> to vector<8x32xi1>
    %244 = arith.select %243, %222, %168 : vector<8x32xi1>, vector<8x32xbf16>
    %245 = vector.shape_cast %220 : vector<8x1xi1> to vector<8x1xi1>
    %246 = vector.broadcast %245 : vector<8x1xi1> to vector<8x32xi1>
    %247 = arith.select %246, %214, %171 : vector<8x32xi1>, vector<8x32xf32>
    %c3_i32 = arith.constant 3 : i32
    %c7_i32_61 = arith.constant 7 : i32
    %248 = arith.subi %c7_i32_61, %c3_i32 : i32
    %cst_62 = arith.constant dense<0.000000e+00> : vector<8x128xf32>
    %249 = tpu.matmul %238, %2, %cst_62 {dimension_numbers = #tpu.dot_dimension_numbers<[1], [0], [0], [1], [0, 0, 1, 1], [], []>} : vector<8x32xbf16>, vector<32x128xbf16>, vector<8x128xf32> -> vector<8x128xf32>
    %cst_63 = arith.constant dense<0.000000e+00> : vector<8x128xf32>
    %250 = tpu.matmul %244, %3, %cst_63 {dimension_numbers = #tpu.dot_dimension_numbers<[1], [0], [0], [1], [0, 0, 1, 1], [], []>} : vector<8x32xbf16>, vector<32x128xbf16>, vector<8x128xf32> -> vector<8x128xf32>
    %251 = arith.index_cast %c3_i32 : i32 to index
    %c0_64 = arith.constant 0 : index
    %c0_65 = arith.constant 0 : index
    %252 = vector.load %arg14[%251, %c0_64, %c0_65] : memref<8x8x128xbf16, #tpu.memory_space<vmem>>, vector<1x8x128xbf16>
    %253 = vector.shape_cast %252 : vector<1x8x128xbf16> to vector<8x128xbf16>
    %254 = arith.extf %253 : vector<8x128xbf16> to vector<8x128xf32>
    %255 = arith.addf %254, %249 : vector<8x128xf32>
    %256 = arith.index_cast %248 : i32 to index
    %c0_66 = arith.constant 0 : index
    %c0_67 = arith.constant 0 : index
    %257 = vector.load %arg15[%256, %c0_66, %c0_67] : memref<8x8x128xbf16, #tpu.memory_space<vmem>>, vector<1x8x128xbf16>
    %258 = vector.shape_cast %257 : vector<1x8x128xbf16> to vector<8x128xbf16>
    %259 = arith.extf %258 : vector<8x128xbf16> to vector<8x128xf32>
    %260 = arith.addf %259, %250 : vector<8x128xf32>
    %261 = vector.extract_strided_slice %255 {offsets = [0, 0], sizes = [8, 96], strides = [1, 1]} : vector<8x128xf32> to vector<8x96xf32>
    %262 = arith.negf %261 : vector<8x96xf32>
    %263 = math.exp %262 : vector<8x96xf32>
    %cst_68 = arith.constant 1.000000e+00 : f32
    %264 = vector.broadcast %cst_68 : f32 to vector<8x96xf32>
    %265 = arith.addf %264, %263 : vector<8x96xf32>
    %266 = arith.divf %264, %265 : vector<8x96xf32>
    %267 = vector.extract_strided_slice %255 {offsets = [0, 96], sizes = [8, 32], strides = [1, 1]} : vector<8x128xf32> to vector<8x32xf32>
    %268 = math.tanh %267 : vector<8x32xf32>
    %269 = vector.extract_strided_slice %266 {offsets = [0, 0], sizes = [8, 32], strides = [1, 1]} : vector<8x96xf32> to vector<8x32xf32>
    %270 = vector.extract_strided_slice %266 {offsets = [0, 32], sizes = [8, 32], strides = [1, 1]} : vector<8x96xf32> to vector<8x32xf32>
    %271 = vector.extract_strided_slice %266 {offsets = [0, 64], sizes = [8, 32], strides = [1, 1]} : vector<8x96xf32> to vector<8x32xf32>
    %272 = arith.mulf %270, %241 : vector<8x32xf32>
    %273 = arith.mulf %269, %268 : vector<8x32xf32>
    %274 = arith.addf %272, %273 : vector<8x32xf32>
    %275 = math.tanh %274 : vector<8x32xf32>
    %276 = arith.mulf %271, %275 : vector<8x32xf32>
    %277 = vector.extract_strided_slice %260 {offsets = [0, 0], sizes = [8, 96], strides = [1, 1]} : vector<8x128xf32> to vector<8x96xf32>
    %278 = arith.negf %277 : vector<8x96xf32>
    %279 = math.exp %278 : vector<8x96xf32>
    %cst_69 = arith.constant 1.000000e+00 : f32
    %280 = vector.broadcast %cst_69 : f32 to vector<8x96xf32>
    %281 = arith.addf %280, %279 : vector<8x96xf32>
    %282 = arith.divf %280, %281 : vector<8x96xf32>
    %283 = vector.extract_strided_slice %260 {offsets = [0, 96], sizes = [8, 32], strides = [1, 1]} : vector<8x128xf32> to vector<8x32xf32>
    %284 = math.tanh %283 : vector<8x32xf32>
    %285 = vector.extract_strided_slice %282 {offsets = [0, 0], sizes = [8, 32], strides = [1, 1]} : vector<8x96xf32> to vector<8x32xf32>
    %286 = vector.extract_strided_slice %282 {offsets = [0, 32], sizes = [8, 32], strides = [1, 1]} : vector<8x96xf32> to vector<8x32xf32>
    %287 = vector.extract_strided_slice %282 {offsets = [0, 64], sizes = [8, 32], strides = [1, 1]} : vector<8x96xf32> to vector<8x32xf32>
    %288 = arith.mulf %286, %247 : vector<8x32xf32>
    %289 = arith.mulf %285, %284 : vector<8x32xf32>
    %290 = arith.addf %288, %289 : vector<8x32xf32>
    %291 = math.tanh %290 : vector<8x32xf32>
    %292 = arith.mulf %287, %291 : vector<8x32xf32>
    %293 = vector.broadcast %c3_i32 : i32 to vector<8x1xi32>
    %294 = arith.cmpi sgt, %0, %293 : vector<8x1xi32>
    %295 = vector.broadcast %248 : i32 to vector<8x1xi32>
    %296 = arith.cmpi sgt, %0, %295 : vector<8x1xi32>
    %297 = arith.truncf %276 : vector<8x32xf32> to vector<8x32xbf16>
    %298 = arith.truncf %292 : vector<8x32xf32> to vector<8x32xbf16>
    %cst_70 = arith.constant 0.000000e+00 : bf16
    %299 = vector.broadcast %cst_70 : bf16 to vector<8x32xbf16>
    %300 = vector.shape_cast %294 : vector<8x1xi1> to vector<8x1xi1>
    %301 = vector.broadcast %300 : vector<8x1xi1> to vector<8x32xi1>
    %302 = arith.select %301, %297, %299 : vector<8x32xi1>, vector<8x32xbf16>
    %303 = vector.shape_cast %302 : vector<8x32xbf16> to vector<1x8x32xbf16>
    %304 = arith.index_cast %c3_i32 : i32 to index
    %c0_71 = arith.constant 0 : index
    %c0_72 = arith.constant 0 : index
    %305 = vector.load %arg16[%304, %c0_71, %c0_72] : memref<8x8x32xbf16, #tpu.memory_space<vmem>>, vector<1x8x32xbf16>
    tpu.vector_store %arg16[%304, %c0_71, %c0_72], %303 {strides = array<i32>} : memref<8x8x32xbf16, #tpu.memory_space<vmem>>, vector<1x8x32xbf16>,
    %306 = vector.shape_cast %296 : vector<8x1xi1> to vector<8x1xi1>
    %307 = vector.broadcast %306 : vector<8x1xi1> to vector<8x32xi1>
    %308 = arith.select %307, %298, %299 : vector<8x32xi1>, vector<8x32xbf16>
    %309 = vector.shape_cast %308 : vector<8x32xbf16> to vector<1x8x32xbf16>
    %310 = arith.index_cast %248 : i32 to index
    %c0_73 = arith.constant 0 : index
    %c0_74 = arith.constant 0 : index
    %311 = vector.load %arg17[%310, %c0_73, %c0_74] : memref<8x8x32xbf16, #tpu.memory_space<vmem>>, vector<1x8x32xbf16>
    tpu.vector_store %arg17[%310, %c0_73, %c0_74], %309 {strides = array<i32>} : memref<8x8x32xbf16, #tpu.memory_space<vmem>>, vector<1x8x32xbf16>,
    %312 = vector.shape_cast %294 : vector<8x1xi1> to vector<8x1xi1>
    %313 = vector.broadcast %312 : vector<8x1xi1> to vector<8x32xi1>
    %314 = arith.select %313, %297, %238 : vector<8x32xi1>, vector<8x32xbf16>
    %315 = vector.shape_cast %294 : vector<8x1xi1> to vector<8x1xi1>
    %316 = vector.broadcast %315 : vector<8x1xi1> to vector<8x32xi1>
    %317 = arith.select %316, %274, %241 : vector<8x32xi1>, vector<8x32xf32>
    %318 = vector.shape_cast %296 : vector<8x1xi1> to vector<8x1xi1>
    %319 = vector.broadcast %318 : vector<8x1xi1> to vector<8x32xi1>
    %320 = arith.select %319, %298, %244 : vector<8x32xi1>, vector<8x32xbf16>
    %321 = vector.shape_cast %296 : vector<8x1xi1> to vector<8x1xi1>
    %322 = vector.broadcast %321 : vector<8x1xi1> to vector<8x32xi1>
    %323 = arith.select %322, %290, %247 : vector<8x32xi1>, vector<8x32xf32>
    %c4_i32 = arith.constant 4 : i32
    %c7_i32_75 = arith.constant 7 : i32
    %324 = arith.subi %c7_i32_75, %c4_i32 : i32
    %cst_76 = arith.constant dense<0.000000e+00> : vector<8x128xf32>
    %325 = tpu.matmul %314, %2, %cst_76 {dimension_numbers = #tpu.dot_dimension_numbers<[1], [0], [0], [1], [0, 0, 1, 1], [], []>} : vector<8x32xbf16>, vector<32x128xbf16>, vector<8x128xf32> -> vector<8x128xf32>
    %cst_77 = arith.constant dense<0.000000e+00> : vector<8x128xf32>
    %326 = tpu.matmul %320, %3, %cst_77 {dimension_numbers = #tpu.dot_dimension_numbers<[1], [0], [0], [1], [0, 0, 1, 1], [], []>} : vector<8x32xbf16>, vector<32x128xbf16>, vector<8x128xf32> -> vector<8x128xf32>
    %327 = arith.index_cast %c4_i32 : i32 to index
    %c0_78 = arith.constant 0 : index
    %c0_79 = arith.constant 0 : index
    %328 = vector.load %arg14[%327, %c0_78, %c0_79] : memref<8x8x128xbf16, #tpu.memory_space<vmem>>, vector<1x8x128xbf16>
    %329 = vector.shape_cast %328 : vector<1x8x128xbf16> to vector<8x128xbf16>
    %330 = arith.extf %329 : vector<8x128xbf16> to vector<8x128xf32>
    %331 = arith.addf %330, %325 : vector<8x128xf32>
    %332 = arith.index_cast %324 : i32 to index
    %c0_80 = arith.constant 0 : index
    %c0_81 = arith.constant 0 : index
    %333 = vector.load %arg15[%332, %c0_80, %c0_81] : memref<8x8x128xbf16, #tpu.memory_space<vmem>>, vector<1x8x128xbf16>
    %334 = vector.shape_cast %333 : vector<1x8x128xbf16> to vector<8x128xbf16>
    %335 = arith.extf %334 : vector<8x128xbf16> to vector<8x128xf32>
    %336 = arith.addf %335, %326 : vector<8x128xf32>
    %337 = vector.extract_strided_slice %331 {offsets = [0, 0], sizes = [8, 96], strides = [1, 1]} : vector<8x128xf32> to vector<8x96xf32>
    %338 = arith.negf %337 : vector<8x96xf32>
    %339 = math.exp %338 : vector<8x96xf32>
    %cst_82 = arith.constant 1.000000e+00 : f32
    %340 = vector.broadcast %cst_82 : f32 to vector<8x96xf32>
    %341 = arith.addf %340, %339 : vector<8x96xf32>
    %342 = arith.divf %340, %341 : vector<8x96xf32>
    %343 = vector.extract_strided_slice %331 {offsets = [0, 96], sizes = [8, 32], strides = [1, 1]} : vector<8x128xf32> to vector<8x32xf32>
    %344 = math.tanh %343 : vector<8x32xf32>
    %345 = vector.extract_strided_slice %342 {offsets = [0, 0], sizes = [8, 32], strides = [1, 1]} : vector<8x96xf32> to vector<8x32xf32>
    %346 = vector.extract_strided_slice %342 {offsets = [0, 32], sizes = [8, 32], strides = [1, 1]} : vector<8x96xf32> to vector<8x32xf32>
    %347 = vector.extract_strided_slice %342 {offsets = [0, 64], sizes = [8, 32], strides = [1, 1]} : vector<8x96xf32> to vector<8x32xf32>
    %348 = arith.mulf %346, %317 : vector<8x32xf32>
    %349 = arith.mulf %345, %344 : vector<8x32xf32>
    %350 = arith.addf %348, %349 : vector<8x32xf32>
    %351 = math.tanh %350 : vector<8x32xf32>
    %352 = arith.mulf %347, %351 : vector<8x32xf32>
    %353 = vector.extract_strided_slice %336 {offsets = [0, 0], sizes = [8, 96], strides = [1, 1]} : vector<8x128xf32> to vector<8x96xf32>
    %354 = arith.negf %353 : vector<8x96xf32>
    %355 = math.exp %354 : vector<8x96xf32>
    %cst_83 = arith.constant 1.000000e+00 : f32
    %356 = vector.broadcast %cst_83 : f32 to vector<8x96xf32>
    %357 = arith.addf %356, %355 : vector<8x96xf32>
    %358 = arith.divf %356, %357 : vector<8x96xf32>
    %359 = vector.extract_strided_slice %336 {offsets = [0, 96], sizes = [8, 32], strides = [1, 1]} : vector<8x128xf32> to vector<8x32xf32>
    %360 = math.tanh %359 : vector<8x32xf32>
    %361 = vector.extract_strided_slice %358 {offsets = [0, 0], sizes = [8, 32], strides = [1, 1]} : vector<8x96xf32> to vector<8x32xf32>
    %362 = vector.extract_strided_slice %358 {offsets = [0, 32], sizes = [8, 32], strides = [1, 1]} : vector<8x96xf32> to vector<8x32xf32>
    %363 = vector.extract_strided_slice %358 {offsets = [0, 64], sizes = [8, 32], strides = [1, 1]} : vector<8x96xf32> to vector<8x32xf32>
    %364 = arith.mulf %362, %323 : vector<8x32xf32>
    %365 = arith.mulf %361, %360 : vector<8x32xf32>
    %366 = arith.addf %364, %365 : vector<8x32xf32>
    %367 = math.tanh %366 : vector<8x32xf32>
    %368 = arith.mulf %363, %367 : vector<8x32xf32>
    %369 = vector.broadcast %c4_i32 : i32 to vector<8x1xi32>
    %370 = arith.cmpi sgt, %0, %369 : vector<8x1xi32>
    %371 = vector.broadcast %324 : i32 to vector<8x1xi32>
    %372 = arith.cmpi sgt, %0, %371 : vector<8x1xi32>
    %373 = arith.truncf %352 : vector<8x32xf32> to vector<8x32xbf16>
    %374 = arith.truncf %368 : vector<8x32xf32> to vector<8x32xbf16>
    %cst_84 = arith.constant 0.000000e+00 : bf16
    %375 = vector.broadcast %cst_84 : bf16 to vector<8x32xbf16>
    %376 = vector.shape_cast %370 : vector<8x1xi1> to vector<8x1xi1>
    %377 = vector.broadcast %376 : vector<8x1xi1> to vector<8x32xi1>
    %378 = arith.select %377, %373, %375 : vector<8x32xi1>, vector<8x32xbf16>
    %379 = vector.shape_cast %378 : vector<8x32xbf16> to vector<1x8x32xbf16>
    %380 = arith.index_cast %c4_i32 : i32 to index
    %c0_85 = arith.constant 0 : index
    %c0_86 = arith.constant 0 : index
    %381 = vector.load %arg16[%380, %c0_85, %c0_86] : memref<8x8x32xbf16, #tpu.memory_space<vmem>>, vector<1x8x32xbf16>
    tpu.vector_store %arg16[%380, %c0_85, %c0_86], %379 {strides = array<i32>} : memref<8x8x32xbf16, #tpu.memory_space<vmem>>, vector<1x8x32xbf16>,
    %382 = vector.shape_cast %372 : vector<8x1xi1> to vector<8x1xi1>
    %383 = vector.broadcast %382 : vector<8x1xi1> to vector<8x32xi1>
    %384 = arith.select %383, %374, %375 : vector<8x32xi1>, vector<8x32xbf16>
    %385 = vector.shape_cast %384 : vector<8x32xbf16> to vector<1x8x32xbf16>
    %386 = arith.index_cast %324 : i32 to index
    %c0_87 = arith.constant 0 : index
    %c0_88 = arith.constant 0 : index
    %387 = vector.load %arg17[%386, %c0_87, %c0_88] : memref<8x8x32xbf16, #tpu.memory_space<vmem>>, vector<1x8x32xbf16>
    tpu.vector_store %arg17[%386, %c0_87, %c0_88], %385 {strides = array<i32>} : memref<8x8x32xbf16, #tpu.memory_space<vmem>>, vector<1x8x32xbf16>,
    %388 = vector.shape_cast %370 : vector<8x1xi1> to vector<8x1xi1>
    %389 = vector.broadcast %388 : vector<8x1xi1> to vector<8x32xi1>
    %390 = arith.select %389, %373, %314 : vector<8x32xi1>, vector<8x32xbf16>
    %391 = vector.shape_cast %370 : vector<8x1xi1> to vector<8x1xi1>
    %392 = vector.broadcast %391 : vector<8x1xi1> to vector<8x32xi1>
    %393 = arith.select %392, %350, %317 : vector<8x32xi1>, vector<8x32xf32>
    %394 = vector.shape_cast %372 : vector<8x1xi1> to vector<8x1xi1>
    %395 = vector.broadcast %394 : vector<8x1xi1> to vector<8x32xi1>
    %396 = arith.select %395, %374, %320 : vector<8x32xi1>, vector<8x32xbf16>
    %397 = vector.shape_cast %372 : vector<8x1xi1> to vector<8x1xi1>
    %398 = vector.broadcast %397 : vector<8x1xi1> to vector<8x32xi1>
    %399 = arith.select %398, %366, %323 : vector<8x32xi1>, vector<8x32xf32>
    %c5_i32 = arith.constant 5 : i32
    %c7_i32_89 = arith.constant 7 : i32
    %400 = arith.subi %c7_i32_89, %c5_i32 : i32
    %cst_90 = arith.constant dense<0.000000e+00> : vector<8x128xf32>
    %401 = tpu.matmul %390, %2, %cst_90 {dimension_numbers = #tpu.dot_dimension_numbers<[1], [0], [0], [1], [0, 0, 1, 1], [], []>} : vector<8x32xbf16>, vector<32x128xbf16>, vector<8x128xf32> -> vector<8x128xf32>
    %cst_91 = arith.constant dense<0.000000e+00> : vector<8x128xf32>
    %402 = tpu.matmul %396, %3, %cst_91 {dimension_numbers = #tpu.dot_dimension_numbers<[1], [0], [0], [1], [0, 0, 1, 1], [], []>} : vector<8x32xbf16>, vector<32x128xbf16>, vector<8x128xf32> -> vector<8x128xf32>
    %403 = arith.index_cast %c5_i32 : i32 to index
    %c0_92 = arith.constant 0 : index
    %c0_93 = arith.constant 0 : index
    %404 = vector.load %arg14[%403, %c0_92, %c0_93] : memref<8x8x128xbf16, #tpu.memory_space<vmem>>, vector<1x8x128xbf16>
    %405 = vector.shape_cast %404 : vector<1x8x128xbf16> to vector<8x128xbf16>
    %406 = arith.extf %405 : vector<8x128xbf16> to vector<8x128xf32>
    %407 = arith.addf %406, %401 : vector<8x128xf32>
    %408 = arith.index_cast %400 : i32 to index
    %c0_94 = arith.constant 0 : index
    %c0_95 = arith.constant 0 : index
    %409 = vector.load %arg15[%408, %c0_94, %c0_95] : memref<8x8x128xbf16, #tpu.memory_space<vmem>>, vector<1x8x128xbf16>
    %410 = vector.shape_cast %409 : vector<1x8x128xbf16> to vector<8x128xbf16>
    %411 = arith.extf %410 : vector<8x128xbf16> to vector<8x128xf32>
    %412 = arith.addf %411, %402 : vector<8x128xf32>
    %413 = vector.extract_strided_slice %407 {offsets = [0, 0], sizes = [8, 96], strides = [1, 1]} : vector<8x128xf32> to vector<8x96xf32>
    %414 = arith.negf %413 : vector<8x96xf32>
    %415 = math.exp %414 : vector<8x96xf32>
    %cst_96 = arith.constant 1.000000e+00 : f32
    %416 = vector.broadcast %cst_96 : f32 to vector<8x96xf32>
    %417 = arith.addf %416, %415 : vector<8x96xf32>
    %418 = arith.divf %416, %417 : vector<8x96xf32>
    %419 = vector.extract_strided_slice %407 {offsets = [0, 96], sizes = [8, 32], strides = [1, 1]} : vector<8x128xf32> to vector<8x32xf32>
    %420 = math.tanh %419 : vector<8x32xf32>
    %421 = vector.extract_strided_slice %418 {offsets = [0, 0], sizes = [8, 32], strides = [1, 1]} : vector<8x96xf32> to vector<8x32xf32>
    %422 = vector.extract_strided_slice %418 {offsets = [0, 32], sizes = [8, 32], strides = [1, 1]} : vector<8x96xf32> to vector<8x32xf32>
    %423 = vector.extract_strided_slice %418 {offsets = [0, 64], sizes = [8, 32], strides = [1, 1]} : vector<8x96xf32> to vector<8x32xf32>
    %424 = arith.mulf %422, %393 : vector<8x32xf32>
    %425 = arith.mulf %421, %420 : vector<8x32xf32>
    %426 = arith.addf %424, %425 : vector<8x32xf32>
    %427 = math.tanh %426 : vector<8x32xf32>
    %428 = arith.mulf %423, %427 : vector<8x32xf32>
    %429 = vector.extract_strided_slice %412 {offsets = [0, 0], sizes = [8, 96], strides = [1, 1]} : vector<8x128xf32> to vector<8x96xf32>
    %430 = arith.negf %429 : vector<8x96xf32>
    %431 = math.exp %430 : vector<8x96xf32>
    %cst_97 = arith.constant 1.000000e+00 : f32
    %432 = vector.broadcast %cst_97 : f32 to vector<8x96xf32>
    %433 = arith.addf %432, %431 : vector<8x96xf32>
    %434 = arith.divf %432, %433 : vector<8x96xf32>
    %435 = vector.extract_strided_slice %412 {offsets = [0, 96], sizes = [8, 32], strides = [1, 1]} : vector<8x128xf32> to vector<8x32xf32>
    %436 = math.tanh %435 : vector<8x32xf32>
    %437 = vector.extract_strided_slice %434 {offsets = [0, 0], sizes = [8, 32], strides = [1, 1]} : vector<8x96xf32> to vector<8x32xf32>
    %438 = vector.extract_strided_slice %434 {offsets = [0, 32], sizes = [8, 32], strides = [1, 1]} : vector<8x96xf32> to vector<8x32xf32>
    %439 = vector.extract_strided_slice %434 {offsets = [0, 64], sizes = [8, 32], strides = [1, 1]} : vector<8x96xf32> to vector<8x32xf32>
    %440 = arith.mulf %438, %399 : vector<8x32xf32>
    %441 = arith.mulf %437, %436 : vector<8x32xf32>
    %442 = arith.addf %440, %441 : vector<8x32xf32>
    %443 = math.tanh %442 : vector<8x32xf32>
    %444 = arith.mulf %439, %443 : vector<8x32xf32>
    %445 = vector.broadcast %c5_i32 : i32 to vector<8x1xi32>
    %446 = arith.cmpi sgt, %0, %445 : vector<8x1xi32>
    %447 = vector.broadcast %400 : i32 to vector<8x1xi32>
    %448 = arith.cmpi sgt, %0, %447 : vector<8x1xi32>
    %449 = arith.truncf %428 : vector<8x32xf32> to vector<8x32xbf16>
    %450 = arith.truncf %444 : vector<8x32xf32> to vector<8x32xbf16>
    %cst_98 = arith.constant 0.000000e+00 : bf16
    %451 = vector.broadcast %cst_98 : bf16 to vector<8x32xbf16>
    %452 = vector.shape_cast %446 : vector<8x1xi1> to vector<8x1xi1>
    %453 = vector.broadcast %452 : vector<8x1xi1> to vector<8x32xi1>
    %454 = arith.select %453, %449, %451 : vector<8x32xi1>, vector<8x32xbf16>
    %455 = vector.shape_cast %454 : vector<8x32xbf16> to vector<1x8x32xbf16>
    %456 = arith.index_cast %c5_i32 : i32 to index
    %c0_99 = arith.constant 0 : index
    %c0_100 = arith.constant 0 : index
    %457 = vector.load %arg16[%456, %c0_99, %c0_100] : memref<8x8x32xbf16, #tpu.memory_space<vmem>>, vector<1x8x32xbf16>
    tpu.vector_store %arg16[%456, %c0_99, %c0_100], %455 {strides = array<i32>} : memref<8x8x32xbf16, #tpu.memory_space<vmem>>, vector<1x8x32xbf16>,
    %458 = vector.shape_cast %448 : vector<8x1xi1> to vector<8x1xi1>
    %459 = vector.broadcast %458 : vector<8x1xi1> to vector<8x32xi1>
    %460 = arith.select %459, %450, %451 : vector<8x32xi1>, vector<8x32xbf16>
    %461 = vector.shape_cast %460 : vector<8x32xbf16> to vector<1x8x32xbf16>
    %462 = arith.index_cast %400 : i32 to index
    %c0_101 = arith.constant 0 : index
    %c0_102 = arith.constant 0 : index
    %463 = vector.load %arg17[%462, %c0_101, %c0_102] : memref<8x8x32xbf16, #tpu.memory_space<vmem>>, vector<1x8x32xbf16>
    tpu.vector_store %arg17[%462, %c0_101, %c0_102], %461 {strides = array<i32>} : memref<8x8x32xbf16, #tpu.memory_space<vmem>>, vector<1x8x32xbf16>,
    %464 = vector.shape_cast %446 : vector<8x1xi1> to vector<8x1xi1>
    %465 = vector.broadcast %464 : vector<8x1xi1> to vector<8x32xi1>
    %466 = arith.select %465, %449, %390 : vector<8x32xi1>, vector<8x32xbf16>
    %467 = vector.shape_cast %446 : vector<8x1xi1> to vector<8x1xi1>
    %468 = vector.broadcast %467 : vector<8x1xi1> to vector<8x32xi1>
    %469 = arith.select %468, %426, %393 : vector<8x32xi1>, vector<8x32xf32>
    %470 = vector.shape_cast %448 : vector<8x1xi1> to vector<8x1xi1>
    %471 = vector.broadcast %470 : vector<8x1xi1> to vector<8x32xi1>
    %472 = arith.select %471, %450, %396 : vector<8x32xi1>, vector<8x32xbf16>
    %473 = vector.shape_cast %448 : vector<8x1xi1> to vector<8x1xi1>
    %474 = vector.broadcast %473 : vector<8x1xi1> to vector<8x32xi1>
    %475 = arith.select %474, %442, %399 : vector<8x32xi1>, vector<8x32xf32>
    %c6_i32 = arith.constant 6 : i32
    %c7_i32_103 = arith.constant 7 : i32
    %476 = arith.subi %c7_i32_103, %c6_i32 : i32
    %cst_104 = arith.constant dense<0.000000e+00> : vector<8x128xf32>
    %477 = tpu.matmul %466, %2, %cst_104 {dimension_numbers = #tpu.dot_dimension_numbers<[1], [0], [0], [1], [0, 0, 1, 1], [], []>} : vector<8x32xbf16>, vector<32x128xbf16>, vector<8x128xf32> -> vector<8x128xf32>
    %cst_105 = arith.constant dense<0.000000e+00> : vector<8x128xf32>
    %478 = tpu.matmul %472, %3, %cst_105 {dimension_numbers = #tpu.dot_dimension_numbers<[1], [0], [0], [1], [0, 0, 1, 1], [], []>} : vector<8x32xbf16>, vector<32x128xbf16>, vector<8x128xf32> -> vector<8x128xf32>
    %479 = arith.index_cast %c6_i32 : i32 to index
    %c0_106 = arith.constant 0 : index
    %c0_107 = arith.constant 0 : index
    %480 = vector.load %arg14[%479, %c0_106, %c0_107] : memref<8x8x128xbf16, #tpu.memory_space<vmem>>, vector<1x8x128xbf16>
    %481 = vector.shape_cast %480 : vector<1x8x128xbf16> to vector<8x128xbf16>
    %482 = arith.extf %481 : vector<8x128xbf16> to vector<8x128xf32>
    %483 = arith.addf %482, %477 : vector<8x128xf32>
    %484 = arith.index_cast %476 : i32 to index
    %c0_108 = arith.constant 0 : index
    %c0_109 = arith.constant 0 : index
    %485 = vector.load %arg15[%484, %c0_108, %c0_109] : memref<8x8x128xbf16, #tpu.memory_space<vmem>>, vector<1x8x128xbf16>
    %486 = vector.shape_cast %485 : vector<1x8x128xbf16> to vector<8x128xbf16>
    %487 = arith.extf %486 : vector<8x128xbf16> to vector<8x128xf32>
    %488 = arith.addf %487, %478 : vector<8x128xf32>
    %489 = vector.extract_strided_slice %483 {offsets = [0, 0], sizes = [8, 96], strides = [1, 1]} : vector<8x128xf32> to vector<8x96xf32>
    %490 = arith.negf %489 : vector<8x96xf32>
    %491 = math.exp %490 : vector<8x96xf32>
    %cst_110 = arith.constant 1.000000e+00 : f32
    %492 = vector.broadcast %cst_110 : f32 to vector<8x96xf32>
    %493 = arith.addf %492, %491 : vector<8x96xf32>
    %494 = arith.divf %492, %493 : vector<8x96xf32>
    %495 = vector.extract_strided_slice %483 {offsets = [0, 96], sizes = [8, 32], strides = [1, 1]} : vector<8x128xf32> to vector<8x32xf32>
    %496 = math.tanh %495 : vector<8x32xf32>
    %497 = vector.extract_strided_slice %494 {offsets = [0, 0], sizes = [8, 32], strides = [1, 1]} : vector<8x96xf32> to vector<8x32xf32>
    %498 = vector.extract_strided_slice %494 {offsets = [0, 32], sizes = [8, 32], strides = [1, 1]} : vector<8x96xf32> to vector<8x32xf32>
    %499 = vector.extract_strided_slice %494 {offsets = [0, 64], sizes = [8, 32], strides = [1, 1]} : vector<8x96xf32> to vector<8x32xf32>
    %500 = arith.mulf %498, %469 : vector<8x32xf32>
    %501 = arith.mulf %497, %496 : vector<8x32xf32>
    %502 = arith.addf %500, %501 : vector<8x32xf32>
    %503 = math.tanh %502 : vector<8x32xf32>
    %504 = arith.mulf %499, %503 : vector<8x32xf32>
    %505 = vector.extract_strided_slice %488 {offsets = [0, 0], sizes = [8, 96], strides = [1, 1]} : vector<8x128xf32> to vector<8x96xf32>
    %506 = arith.negf %505 : vector<8x96xf32>
    %507 = math.exp %506 : vector<8x96xf32>
    %cst_111 = arith.constant 1.000000e+00 : f32
    %508 = vector.broadcast %cst_111 : f32 to vector<8x96xf32>
    %509 = arith.addf %508, %507 : vector<8x96xf32>
    %510 = arith.divf %508, %509 : vector<8x96xf32>
    %511 = vector.extract_strided_slice %488 {offsets = [0, 96], sizes = [8, 32], strides = [1, 1]} : vector<8x128xf32> to vector<8x32xf32>
    %512 = math.tanh %511 : vector<8x32xf32>
    %513 = vector.extract_strided_slice %510 {offsets = [0, 0], sizes = [8, 32], strides = [1, 1]} : vector<8x96xf32> to vector<8x32xf32>
    %514 = vector.extract_strided_slice %510 {offsets = [0, 32], sizes = [8, 32], strides = [1, 1]} : vector<8x96xf32> to vector<8x32xf32>
    %515 = vector.extract_strided_slice %510 {offsets = [0, 64], sizes = [8, 32], strides = [1, 1]} : vector<8x96xf32> to vector<8x32xf32>
    %516 = arith.mulf %514, %475 : vector<8x32xf32>
    %517 = arith.mulf %513, %512 : vector<8x32xf32>
    %518 = arith.addf %516, %517 : vector<8x32xf32>
    %519 = math.tanh %518 : vector<8x32xf32>
    %520 = arith.mulf %515, %519 : vector<8x32xf32>
    %521 = vector.broadcast %c6_i32 : i32 to vector<8x1xi32>
    %522 = arith.cmpi sgt, %0, %521 : vector<8x1xi32>
    %523 = vector.broadcast %476 : i32 to vector<8x1xi32>
    %524 = arith.cmpi sgt, %0, %523 : vector<8x1xi32>
    %525 = arith.truncf %504 : vector<8x32xf32> to vector<8x32xbf16>
    %526 = arith.truncf %520 : vector<8x32xf32> to vector<8x32xbf16>
    %cst_112 = arith.constant 0.000000e+00 : bf16
    %527 = vector.broadcast %cst_112 : bf16 to vector<8x32xbf16>
    %528 = vector.shape_cast %522 : vector<8x1xi1> to vector<8x1xi1>
    %529 = vector.broadcast %528 : vector<8x1xi1> to vector<8x32xi1>
    %530 = arith.select %529, %525, %527 : vector<8x32xi1>, vector<8x32xbf16>
    %531 = vector.shape_cast %530 : vector<8x32xbf16> to vector<1x8x32xbf16>
    %532 = arith.index_cast %c6_i32 : i32 to index
    %c0_113 = arith.constant 0 : index
    %c0_114 = arith.constant 0 : index
    %533 = vector.load %arg16[%532, %c0_113, %c0_114] : memref<8x8x32xbf16, #tpu.memory_space<vmem>>, vector<1x8x32xbf16>
    tpu.vector_store %arg16[%532, %c0_113, %c0_114], %531 {strides = array<i32>} : memref<8x8x32xbf16, #tpu.memory_space<vmem>>, vector<1x8x32xbf16>,
    %534 = vector.shape_cast %524 : vector<8x1xi1> to vector<8x1xi1>
    %535 = vector.broadcast %534 : vector<8x1xi1> to vector<8x32xi1>
    %536 = arith.select %535, %526, %527 : vector<8x32xi1>, vector<8x32xbf16>
    %537 = vector.shape_cast %536 : vector<8x32xbf16> to vector<1x8x32xbf16>
    %538 = arith.index_cast %476 : i32 to index
    %c0_115 = arith.constant 0 : index
    %c0_116 = arith.constant 0 : index
    %539 = vector.load %arg17[%538, %c0_115, %c0_116] : memref<8x8x32xbf16, #tpu.memory_space<vmem>>, vector<1x8x32xbf16>
    tpu.vector_store %arg17[%538, %c0_115, %c0_116], %537 {strides = array<i32>} : memref<8x8x32xbf16, #tpu.memory_space<vmem>>, vector<1x8x32xbf16>,
    %540 = vector.shape_cast %522 : vector<8x1xi1> to vector<8x1xi1>
    %541 = vector.broadcast %540 : vector<8x1xi1> to vector<8x32xi1>
    %542 = arith.select %541, %525, %466 : vector<8x32xi1>, vector<8x32xbf16>
    %543 = vector.shape_cast %522 : vector<8x1xi1> to vector<8x1xi1>
    %544 = vector.broadcast %543 : vector<8x1xi1> to vector<8x32xi1>
    %545 = arith.select %544, %502, %469 : vector<8x32xi1>, vector<8x32xf32>
    %546 = vector.shape_cast %524 : vector<8x1xi1> to vector<8x1xi1>
    %547 = vector.broadcast %546 : vector<8x1xi1> to vector<8x32xi1>
    %548 = arith.select %547, %526, %472 : vector<8x32xi1>, vector<8x32xbf16>
    %549 = vector.shape_cast %524 : vector<8x1xi1> to vector<8x1xi1>
    %550 = vector.broadcast %549 : vector<8x1xi1> to vector<8x32xi1>
    %551 = arith.select %550, %518, %475 : vector<8x32xi1>, vector<8x32xf32>
    %c7_i32_117 = arith.constant 7 : i32
    %c7_i32_118 = arith.constant 7 : i32
    %552 = arith.subi %c7_i32_118, %c7_i32_117 : i32
    %cst_119 = arith.constant dense<0.000000e+00> : vector<8x128xf32>
    %553 = tpu.matmul %542, %2, %cst_119 {dimension_numbers = #tpu.dot_dimension_numbers<[1], [0], [0], [1], [0, 0, 1, 1], [], []>} : vector<8x32xbf16>, vector<32x128xbf16>, vector<8x128xf32> -> vector<8x128xf32>
    %cst_120 = arith.constant dense<0.000000e+00> : vector<8x128xf32>
    %554 = tpu.matmul %548, %3, %cst_120 {dimension_numbers = #tpu.dot_dimension_numbers<[1], [0], [0], [1], [0, 0, 1, 1], [], []>} : vector<8x32xbf16>, vector<32x128xbf16>, vector<8x128xf32> -> vector<8x128xf32>
    %555 = arith.index_cast %c7_i32_117 : i32 to index
    %c0_121 = arith.constant 0 : index
    %c0_122 = arith.constant 0 : index
    %556 = vector.load %arg14[%555, %c0_121, %c0_122] : memref<8x8x128xbf16, #tpu.memory_space<vmem>>, vector<1x8x128xbf16>
    %557 = vector.shape_cast %556 : vector<1x8x128xbf16> to vector<8x128xbf16>
    %558 = arith.extf %557 : vector<8x128xbf16> to vector<8x128xf32>
    %559 = arith.addf %558, %553 : vector<8x128xf32>
    %560 = arith.index_cast %552 : i32 to index
    %c0_123 = arith.constant 0 : index
    %c0_124 = arith.constant 0 : index
    %561 = vector.load %arg15[%560, %c0_123, %c0_124] : memref<8x8x128xbf16, #tpu.memory_space<vmem>>, vector<1x8x128xbf16>
    %562 = vector.shape_cast %561 : vector<1x8x128xbf16> to vector<8x128xbf16>
    %563 = arith.extf %562 : vector<8x128xbf16> to vector<8x128xf32>
    %564 = arith.addf %563, %554 : vector<8x128xf32>
    %565 = vector.extract_strided_slice %559 {offsets = [0, 0], sizes = [8, 96], strides = [1, 1]} : vector<8x128xf32> to vector<8x96xf32>
    %566 = arith.negf %565 : vector<8x96xf32>
    %567 = math.exp %566 : vector<8x96xf32>
    %cst_125 = arith.constant 1.000000e+00 : f32
    %568 = vector.broadcast %cst_125 : f32 to vector<8x96xf32>
    %569 = arith.addf %568, %567 : vector<8x96xf32>
    %570 = arith.divf %568, %569 : vector<8x96xf32>
    %571 = vector.extract_strided_slice %559 {offsets = [0, 96], sizes = [8, 32], strides = [1, 1]} : vector<8x128xf32> to vector<8x32xf32>
    %572 = math.tanh %571 : vector<8x32xf32>
    %573 = vector.extract_strided_slice %570 {offsets = [0, 0], sizes = [8, 32], strides = [1, 1]} : vector<8x96xf32> to vector<8x32xf32>
    %574 = vector.extract_strided_slice %570 {offsets = [0, 32], sizes = [8, 32], strides = [1, 1]} : vector<8x96xf32> to vector<8x32xf32>
    %575 = vector.extract_strided_slice %570 {offsets = [0, 64], sizes = [8, 32], strides = [1, 1]} : vector<8x96xf32> to vector<8x32xf32>
    %576 = arith.mulf %574, %545 : vector<8x32xf32>
    %577 = arith.mulf %573, %572 : vector<8x32xf32>
    %578 = arith.addf %576, %577 : vector<8x32xf32>
    %579 = math.tanh %578 : vector<8x32xf32>
    %580 = arith.mulf %575, %579 : vector<8x32xf32>
    %581 = vector.extract_strided_slice %564 {offsets = [0, 0], sizes = [8, 96], strides = [1, 1]} : vector<8x128xf32> to vector<8x96xf32>
    %582 = arith.negf %581 : vector<8x96xf32>
    %583 = math.exp %582 : vector<8x96xf32>
    %cst_126 = arith.constant 1.000000e+00 : f32
    %584 = vector.broadcast %cst_126 : f32 to vector<8x96xf32>
    %585 = arith.addf %584, %583 : vector<8x96xf32>
    %586 = arith.divf %584, %585 : vector<8x96xf32>
    %587 = vector.extract_strided_slice %564 {offsets = [0, 96], sizes = [8, 32], strides = [1, 1]} : vector<8x128xf32> to vector<8x32xf32>
    %588 = math.tanh %587 : vector<8x32xf32>
    %589 = vector.extract_strided_slice %586 {offsets = [0, 0], sizes = [8, 32], strides = [1, 1]} : vector<8x96xf32> to vector<8x32xf32>
    %590 = vector.extract_strided_slice %586 {offsets = [0, 32], sizes = [8, 32], strides = [1, 1]} : vector<8x96xf32> to vector<8x32xf32>
    %591 = vector.extract_strided_slice %586 {offsets = [0, 64], sizes = [8, 32], strides = [1, 1]} : vector<8x96xf32> to vector<8x32xf32>
    %592 = arith.mulf %590, %551 : vector<8x32xf32>
    %593 = arith.mulf %589, %588 : vector<8x32xf32>
    %594 = arith.addf %592, %593 : vector<8x32xf32>
    %595 = math.tanh %594 : vector<8x32xf32>
    %596 = arith.mulf %591, %595 : vector<8x32xf32>
    %597 = vector.broadcast %c7_i32_117 : i32 to vector<8x1xi32>
    %598 = arith.cmpi sgt, %0, %597 : vector<8x1xi32>
    %599 = vector.broadcast %552 : i32 to vector<8x1xi32>
    %600 = arith.cmpi sgt, %0, %599 : vector<8x1xi32>
    %601 = arith.truncf %580 : vector<8x32xf32> to vector<8x32xbf16>
    %602 = arith.truncf %596 : vector<8x32xf32> to vector<8x32xbf16>
    %cst_127 = arith.constant 0.000000e+00 : bf16
    %603 = vector.broadcast %cst_127 : bf16 to vector<8x32xbf16>
    %604 = vector.shape_cast %598 : vector<8x1xi1> to vector<8x1xi1>
    %605 = vector.broadcast %604 : vector<8x1xi1> to vector<8x32xi1>
    %606 = arith.select %605, %601, %603 : vector<8x32xi1>, vector<8x32xbf16>
    %607 = vector.shape_cast %606 : vector<8x32xbf16> to vector<1x8x32xbf16>
    %608 = arith.index_cast %c7_i32_117 : i32 to index
    %c0_128 = arith.constant 0 : index
    %c0_129 = arith.constant 0 : index
    %609 = vector.load %arg16[%608, %c0_128, %c0_129] : memref<8x8x32xbf16, #tpu.memory_space<vmem>>, vector<1x8x32xbf16>
    tpu.vector_store %arg16[%608, %c0_128, %c0_129], %607 {strides = array<i32>} : memref<8x8x32xbf16, #tpu.memory_space<vmem>>, vector<1x8x32xbf16>,
    %610 = vector.shape_cast %600 : vector<8x1xi1> to vector<8x1xi1>
    %611 = vector.broadcast %610 : vector<8x1xi1> to vector<8x32xi1>
    %612 = arith.select %611, %602, %603 : vector<8x32xi1>, vector<8x32xbf16>
    %613 = vector.shape_cast %612 : vector<8x32xbf16> to vector<1x8x32xbf16>
    %614 = arith.index_cast %552 : i32 to index
    %c0_130 = arith.constant 0 : index
    %c0_131 = arith.constant 0 : index
    %615 = vector.load %arg17[%614, %c0_130, %c0_131] : memref<8x8x32xbf16, #tpu.memory_space<vmem>>, vector<1x8x32xbf16>
    tpu.vector_store %arg17[%614, %c0_130, %c0_131], %613 {strides = array<i32>} : memref<8x8x32xbf16, #tpu.memory_space<vmem>>, vector<1x8x32xbf16>,
    %616 = vector.shape_cast %598 : vector<8x1xi1> to vector<8x1xi1>
    %617 = vector.broadcast %616 : vector<8x1xi1> to vector<8x32xi1>
    %618 = arith.select %617, %601, %542 : vector<8x32xi1>, vector<8x32xbf16>
    %619 = vector.shape_cast %598 : vector<8x1xi1> to vector<8x1xi1>
    %620 = vector.broadcast %619 : vector<8x1xi1> to vector<8x32xi1>
    %621 = arith.select %620, %578, %545 : vector<8x32xi1>, vector<8x32xf32>
    %622 = vector.shape_cast %600 : vector<8x1xi1> to vector<8x1xi1>
    %623 = vector.broadcast %622 : vector<8x1xi1> to vector<8x32xi1>
    %624 = arith.select %623, %602, %548 : vector<8x32xi1>, vector<8x32xbf16>
    %625 = vector.shape_cast %600 : vector<8x1xi1> to vector<8x1xi1>
    %626 = vector.broadcast %625 : vector<8x1xi1> to vector<8x32xi1>
    %627 = arith.select %626, %594, %551 : vector<8x32xi1>, vector<8x32xf32>
    %c8_i32 = arith.constant 8 : i32
    %c0_132 = arith.constant 0 : index
    %c0_133 = arith.constant 0 : index
    %628 = vector.load %arg7[%c0_132, %c0_133] : memref<64x256xbf16, #tpu.memory_space<vmem>>, vector<64x256xbf16>
    %c0_134 = arith.constant 0 : index
    %c0_135 = arith.constant 0 : index
    %629 = vector.load %arg8[%c0_134, %c0_135] : memref<32x128xbf16, #tpu.memory_space<vmem>>, vector<32x128xbf16>
    %c0_136 = arith.constant 0 : index
    %c0_137 = arith.constant 0 : index
    %630 = vector.load %arg9[%c0_136, %c0_137] : memref<32x128xbf16, #tpu.memory_space<vmem>>, vector<32x128xbf16>
    %c0_138 = arith.constant 0 : index
    %c0_139 = arith.constant 0 : index
    %631 = vector.load %arg10[%c0_138, %c0_139] : memref<1x256xf32, #tpu.memory_space<vmem>>, vector<1x256xf32>
    %c0_140 = arith.constant 0 : index
    %c0_141 = arith.constant 0 : index
    %c0_142 = arith.constant 0 : index
    %632 = vector.load %arg16[%c0_140, %c0_141, %c0_142] : memref<8x8x32xbf16, #tpu.memory_space<vmem>>, vector<8x8x32xbf16>
    %633 = vector.shape_cast %632 : vector<8x8x32xbf16> to vector<64x32xbf16>
    %c0_143 = arith.constant 0 : index
    %c0_144 = arith.constant 0 : index
    %c0_145 = arith.constant 0 : index
    %634 = vector.load %arg17[%c0_143, %c0_144, %c0_145] : memref<8x8x32xbf16, #tpu.memory_space<vmem>>, vector<8x8x32xbf16>
    %635 = vector.shape_cast %634 : vector<8x8x32xbf16> to vector<64x32xbf16>
    %636 = vector.extract_strided_slice %628 {offsets = [0, 0], sizes = [32, 256], strides = [1, 1]} : vector<64x256xbf16> to vector<32x256xbf16>
    %cst_146 = arith.constant dense<0.000000e+00> : vector<64x256xf32>
    %637 = tpu.matmul %633, %636, %cst_146 {dimension_numbers = #tpu.dot_dimension_numbers<[1], [0], [0], [1], [0, 0, 1, 1], [], []>} : vector<64x32xbf16>, vector<32x256xbf16>, vector<64x256xf32> -> vector<64x256xf32>
    %638 = vector.extract_strided_slice %628 {offsets = [32, 0], sizes = [32, 256], strides = [1, 1]} : vector<64x256xbf16> to vector<32x256xbf16>
    %cst_147 = arith.constant dense<0.000000e+00> : vector<64x256xf32>
    %639 = tpu.matmul %635, %638, %cst_147 {dimension_numbers = #tpu.dot_dimension_numbers<[1], [0], [0], [1], [0, 0, 1, 1], [], []>} : vector<64x32xbf16>, vector<32x256xbf16>, vector<64x256xf32> -> vector<64x256xf32>
    %640 = arith.addf %637, %639 : vector<64x256xf32>
    %641 = vector.broadcast %631 : vector<1x256xf32> to vector<64x256xf32>
    %642 = arith.addf %640, %641 : vector<64x256xf32>
    %643 = vector.extract_strided_slice %642 {offsets = [0, 0], sizes = [64, 128], strides = [1, 1]} : vector<64x256xf32> to vector<64x128xf32>
    %644 = arith.truncf %643 : vector<64x128xf32> to vector<64x128xbf16>
    %645 = vector.shape_cast %644 : vector<64x128xbf16> to vector<8x8x128xbf16>
    %c0_148 = arith.constant 0 : index
    %c0_149 = arith.constant 0 : index
    %c0_150 = arith.constant 0 : index
    %646 = vector.load %arg14[%c0_148, %c0_149, %c0_150] : memref<8x8x128xbf16, #tpu.memory_space<vmem>>, vector<8x8x128xbf16>
    tpu.vector_store %arg14[%c0_148, %c0_149, %c0_150], %645 {strides = array<i32>} : memref<8x8x128xbf16, #tpu.memory_space<vmem>>, vector<8x8x128xbf16>,
    %647 = vector.extract_strided_slice %642 {offsets = [0, 128], sizes = [64, 128], strides = [1, 1]} : vector<64x256xf32> to vector<64x128xf32>
    %648 = arith.truncf %647 : vector<64x128xf32> to vector<64x128xbf16>
    %649 = vector.shape_cast %648 : vector<64x128xbf16> to vector<8x8x128xbf16>
    %c0_151 = arith.constant 0 : index
    %c0_152 = arith.constant 0 : index
    %c0_153 = arith.constant 0 : index
    %650 = vector.load %arg15[%c0_151, %c0_152, %c0_153] : memref<8x8x128xbf16, #tpu.memory_space<vmem>>, vector<8x8x128xbf16>
    tpu.vector_store %arg15[%c0_151, %c0_152, %c0_153], %649 {strides = array<i32>} : memref<8x8x128xbf16, #tpu.memory_space<vmem>>, vector<8x8x128xbf16>,
    %cst_154 = arith.constant 0.000000e+00 : bf16
    %651 = vector.broadcast %cst_154 : bf16 to vector<8x32xbf16>
    %cst_155 = arith.constant 0.000000e+00 : f32
    %652 = vector.broadcast %cst_155 : f32 to vector<8x32xf32>
    %c0_i32_156 = arith.constant 0 : i32
    %c7_i32_157 = arith.constant 7 : i32
    %653 = arith.subi %c7_i32_157, %c0_i32_156 : i32
    %cst_158 = arith.constant dense<0.000000e+00> : vector<8x128xf32>
    %654 = tpu.matmul %651, %629, %cst_158 {dimension_numbers = #tpu.dot_dimension_numbers<[1], [0], [0], [1], [0, 0, 1, 1], [], []>} : vector<8x32xbf16>, vector<32x128xbf16>, vector<8x128xf32> -> vector<8x128xf32>
    %cst_159 = arith.constant dense<0.000000e+00> : vector<8x128xf32>
    %655 = tpu.matmul %651, %630, %cst_159 {dimension_numbers = #tpu.dot_dimension_numbers<[1], [0], [0], [1], [0, 0, 1, 1], [], []>} : vector<8x32xbf16>, vector<32x128xbf16>, vector<8x128xf32> -> vector<8x128xf32>
    %656 = arith.index_cast %c0_i32_156 : i32 to index
    %c0_160 = arith.constant 0 : index
    %c0_161 = arith.constant 0 : index
    %657 = vector.load %arg14[%656, %c0_160, %c0_161] : memref<8x8x128xbf16, #tpu.memory_space<vmem>>, vector<1x8x128xbf16>
    %658 = vector.shape_cast %657 : vector<1x8x128xbf16> to vector<8x128xbf16>
    %659 = arith.extf %658 : vector<8x128xbf16> to vector<8x128xf32>
    %660 = arith.addf %659, %654 : vector<8x128xf32>
    %661 = arith.index_cast %653 : i32 to index
    %c0_162 = arith.constant 0 : index
    %c0_163 = arith.constant 0 : index
    %662 = vector.load %arg15[%661, %c0_162, %c0_163] : memref<8x8x128xbf16, #tpu.memory_space<vmem>>, vector<1x8x128xbf16>
    %663 = vector.shape_cast %662 : vector<1x8x128xbf16> to vector<8x128xbf16>
    %664 = arith.extf %663 : vector<8x128xbf16> to vector<8x128xf32>
    %665 = arith.addf %664, %655 : vector<8x128xf32>
    %666 = vector.extract_strided_slice %660 {offsets = [0, 0], sizes = [8, 96], strides = [1, 1]} : vector<8x128xf32> to vector<8x96xf32>
    %667 = arith.negf %666 : vector<8x96xf32>
    %668 = math.exp %667 : vector<8x96xf32>
    %cst_164 = arith.constant 1.000000e+00 : f32
    %669 = vector.broadcast %cst_164 : f32 to vector<8x96xf32>
    %670 = arith.addf %669, %668 : vector<8x96xf32>
    %671 = arith.divf %669, %670 : vector<8x96xf32>
    %672 = vector.extract_strided_slice %660 {offsets = [0, 96], sizes = [8, 32], strides = [1, 1]} : vector<8x128xf32> to vector<8x32xf32>
    %673 = math.tanh %672 : vector<8x32xf32>
    %674 = vector.extract_strided_slice %671 {offsets = [0, 0], sizes = [8, 32], strides = [1, 1]} : vector<8x96xf32> to vector<8x32xf32>
    %675 = vector.extract_strided_slice %671 {offsets = [0, 32], sizes = [8, 32], strides = [1, 1]} : vector<8x96xf32> to vector<8x32xf32>
    %676 = vector.extract_strided_slice %671 {offsets = [0, 64], sizes = [8, 32], strides = [1, 1]} : vector<8x96xf32> to vector<8x32xf32>
    %677 = arith.mulf %675, %652 : vector<8x32xf32>
    %678 = arith.mulf %674, %673 : vector<8x32xf32>
    %679 = arith.addf %677, %678 : vector<8x32xf32>
    %680 = math.tanh %679 : vector<8x32xf32>
    %681 = arith.mulf %676, %680 : vector<8x32xf32>
    %682 = vector.extract_strided_slice %665 {offsets = [0, 0], sizes = [8, 96], strides = [1, 1]} : vector<8x128xf32> to vector<8x96xf32>
    %683 = arith.negf %682 : vector<8x96xf32>
    %684 = math.exp %683 : vector<8x96xf32>
    %cst_165 = arith.constant 1.000000e+00 : f32
    %685 = vector.broadcast %cst_165 : f32 to vector<8x96xf32>
    %686 = arith.addf %685, %684 : vector<8x96xf32>
    %687 = arith.divf %685, %686 : vector<8x96xf32>
    %688 = vector.extract_strided_slice %665 {offsets = [0, 96], sizes = [8, 32], strides = [1, 1]} : vector<8x128xf32> to vector<8x32xf32>
    %689 = math.tanh %688 : vector<8x32xf32>
    %690 = vector.extract_strided_slice %687 {offsets = [0, 0], sizes = [8, 32], strides = [1, 1]} : vector<8x96xf32> to vector<8x32xf32>
    %691 = vector.extract_strided_slice %687 {offsets = [0, 32], sizes = [8, 32], strides = [1, 1]} : vector<8x96xf32> to vector<8x32xf32>
    %692 = vector.extract_strided_slice %687 {offsets = [0, 64], sizes = [8, 32], strides = [1, 1]} : vector<8x96xf32> to vector<8x32xf32>
    %693 = arith.mulf %691, %652 : vector<8x32xf32>
    %694 = arith.mulf %690, %689 : vector<8x32xf32>
    %695 = arith.addf %693, %694 : vector<8x32xf32>
    %696 = math.tanh %695 : vector<8x32xf32>
    %697 = arith.mulf %692, %696 : vector<8x32xf32>
    %698 = vector.broadcast %c0_i32_156 : i32 to vector<8x1xi32>
    %699 = arith.cmpi sgt, %0, %698 : vector<8x1xi32>
    %700 = vector.broadcast %653 : i32 to vector<8x1xi32>
    %701 = arith.cmpi sgt, %0, %700 : vector<8x1xi32>
    %702 = arith.truncf %681 : vector<8x32xf32> to vector<8x32xbf16>
    %703 = arith.truncf %697 : vector<8x32xf32> to vector<8x32xbf16>
    %cst_166 = arith.constant 0.000000e+00 : bf16
    %704 = vector.broadcast %cst_166 : bf16 to vector<8x32xbf16>
    %705 = vector.shape_cast %699 : vector<8x1xi1> to vector<8x1xi1>
    %706 = vector.broadcast %705 : vector<8x1xi1> to vector<8x32xi1>
    %707 = arith.select %706, %702, %704 : vector<8x32xi1>, vector<8x32xbf16>
    %708 = vector.shape_cast %707 : vector<8x32xbf16> to vector<1x8x32xbf16>
    %709 = arith.index_cast %c0_i32_156 : i32 to index
    %c0_167 = arith.constant 0 : index
    %c0_168 = arith.constant 0 : index
    %710 = vector.load %arg16[%709, %c0_167, %c0_168] : memref<8x8x32xbf16, #tpu.memory_space<vmem>>, vector<1x8x32xbf16>
    tpu.vector_store %arg16[%709, %c0_167, %c0_168], %708 {strides = array<i32>} : memref<8x8x32xbf16, #tpu.memory_space<vmem>>, vector<1x8x32xbf16>,
    %711 = vector.shape_cast %701 : vector<8x1xi1> to vector<8x1xi1>
    %712 = vector.broadcast %711 : vector<8x1xi1> to vector<8x32xi1>
    %713 = arith.select %712, %703, %704 : vector<8x32xi1>, vector<8x32xbf16>
    %714 = vector.shape_cast %713 : vector<8x32xbf16> to vector<1x8x32xbf16>
    %715 = arith.index_cast %653 : i32 to index
    %c0_169 = arith.constant 0 : index
    %c0_170 = arith.constant 0 : index
    %716 = vector.load %arg17[%715, %c0_169, %c0_170] : memref<8x8x32xbf16, #tpu.memory_space<vmem>>, vector<1x8x32xbf16>
    tpu.vector_store %arg17[%715, %c0_169, %c0_170], %714 {strides = array<i32>} : memref<8x8x32xbf16, #tpu.memory_space<vmem>>, vector<1x8x32xbf16>,
    %717 = vector.shape_cast %699 : vector<8x1xi1> to vector<8x1xi1>
    %718 = vector.broadcast %717 : vector<8x1xi1> to vector<8x32xi1>
    %719 = arith.select %718, %702, %651 : vector<8x32xi1>, vector<8x32xbf16>
    %720 = vector.shape_cast %699 : vector<8x1xi1> to vector<8x1xi1>
    %721 = vector.broadcast %720 : vector<8x1xi1> to vector<8x32xi1>
    %722 = arith.select %721, %679, %652 : vector<8x32xi1>, vector<8x32xf32>
    %723 = vector.shape_cast %701 : vector<8x1xi1> to vector<8x1xi1>
    %724 = vector.broadcast %723 : vector<8x1xi1> to vector<8x32xi1>
    %725 = arith.select %724, %703, %651 : vector<8x32xi1>, vector<8x32xbf16>
    %726 = vector.shape_cast %701 : vector<8x1xi1> to vector<8x1xi1>
    %727 = vector.broadcast %726 : vector<8x1xi1> to vector<8x32xi1>
    %728 = arith.select %727, %695, %652 : vector<8x32xi1>, vector<8x32xf32>
    %c1_i32_171 = arith.constant 1 : i32
    %c7_i32_172 = arith.constant 7 : i32
    %729 = arith.subi %c7_i32_172, %c1_i32_171 : i32
    %cst_173 = arith.constant dense<0.000000e+00> : vector<8x128xf32>
    %730 = tpu.matmul %719, %629, %cst_173 {dimension_numbers = #tpu.dot_dimension_numbers<[1], [0], [0], [1], [0, 0, 1, 1], [], []>} : vector<8x32xbf16>, vector<32x128xbf16>, vector<8x128xf32> -> vector<8x128xf32>
    %cst_174 = arith.constant dense<0.000000e+00> : vector<8x128xf32>
    %731 = tpu.matmul %725, %630, %cst_174 {dimension_numbers = #tpu.dot_dimension_numbers<[1], [0], [0], [1], [0, 0, 1, 1], [], []>} : vector<8x32xbf16>, vector<32x128xbf16>, vector<8x128xf32> -> vector<8x128xf32>
    %732 = arith.index_cast %c1_i32_171 : i32 to index
    %c0_175 = arith.constant 0 : index
    %c0_176 = arith.constant 0 : index
    %733 = vector.load %arg14[%732, %c0_175, %c0_176] : memref<8x8x128xbf16, #tpu.memory_space<vmem>>, vector<1x8x128xbf16>
    %734 = vector.shape_cast %733 : vector<1x8x128xbf16> to vector<8x128xbf16>
    %735 = arith.extf %734 : vector<8x128xbf16> to vector<8x128xf32>
    %736 = arith.addf %735, %730 : vector<8x128xf32>
    %737 = arith.index_cast %729 : i32 to index
    %c0_177 = arith.constant 0 : index
    %c0_178 = arith.constant 0 : index
    %738 = vector.load %arg15[%737, %c0_177, %c0_178] : memref<8x8x128xbf16, #tpu.memory_space<vmem>>, vector<1x8x128xbf16>
    %739 = vector.shape_cast %738 : vector<1x8x128xbf16> to vector<8x128xbf16>
    %740 = arith.extf %739 : vector<8x128xbf16> to vector<8x128xf32>
    %741 = arith.addf %740, %731 : vector<8x128xf32>
    %742 = vector.extract_strided_slice %736 {offsets = [0, 0], sizes = [8, 96], strides = [1, 1]} : vector<8x128xf32> to vector<8x96xf32>
    %743 = arith.negf %742 : vector<8x96xf32>
    %744 = math.exp %743 : vector<8x96xf32>
    %cst_179 = arith.constant 1.000000e+00 : f32
    %745 = vector.broadcast %cst_179 : f32 to vector<8x96xf32>
    %746 = arith.addf %745, %744 : vector<8x96xf32>
    %747 = arith.divf %745, %746 : vector<8x96xf32>
    %748 = vector.extract_strided_slice %736 {offsets = [0, 96], sizes = [8, 32], strides = [1, 1]} : vector<8x128xf32> to vector<8x32xf32>
    %749 = math.tanh %748 : vector<8x32xf32>
    %750 = vector.extract_strided_slice %747 {offsets = [0, 0], sizes = [8, 32], strides = [1, 1]} : vector<8x96xf32> to vector<8x32xf32>
    %751 = vector.extract_strided_slice %747 {offsets = [0, 32], sizes = [8, 32], strides = [1, 1]} : vector<8x96xf32> to vector<8x32xf32>
    %752 = vector.extract_strided_slice %747 {offsets = [0, 64], sizes = [8, 32], strides = [1, 1]} : vector<8x96xf32> to vector<8x32xf32>
    %753 = arith.mulf %751, %722 : vector<8x32xf32>
    %754 = arith.mulf %750, %749 : vector<8x32xf32>
    %755 = arith.addf %753, %754 : vector<8x32xf32>
    %756 = math.tanh %755 : vector<8x32xf32>
    %757 = arith.mulf %752, %756 : vector<8x32xf32>
    %758 = vector.extract_strided_slice %741 {offsets = [0, 0], sizes = [8, 96], strides = [1, 1]} : vector<8x128xf32> to vector<8x96xf32>
    %759 = arith.negf %758 : vector<8x96xf32>
    %760 = math.exp %759 : vector<8x96xf32>
    %cst_180 = arith.constant 1.000000e+00 : f32
    %761 = vector.broadcast %cst_180 : f32 to vector<8x96xf32>
    %762 = arith.addf %761, %760 : vector<8x96xf32>
    %763 = arith.divf %761, %762 : vector<8x96xf32>
    %764 = vector.extract_strided_slice %741 {offsets = [0, 96], sizes = [8, 32], strides = [1, 1]} : vector<8x128xf32> to vector<8x32xf32>
    %765 = math.tanh %764 : vector<8x32xf32>
    %766 = vector.extract_strided_slice %763 {offsets = [0, 0], sizes = [8, 32], strides = [1, 1]} : vector<8x96xf32> to vector<8x32xf32>
    %767 = vector.extract_strided_slice %763 {offsets = [0, 32], sizes = [8, 32], strides = [1, 1]} : vector<8x96xf32> to vector<8x32xf32>
    %768 = vector.extract_strided_slice %763 {offsets = [0, 64], sizes = [8, 32], strides = [1, 1]} : vector<8x96xf32> to vector<8x32xf32>
    %769 = arith.mulf %767, %728 : vector<8x32xf32>
    %770 = arith.mulf %766, %765 : vector<8x32xf32>
    %771 = arith.addf %769, %770 : vector<8x32xf32>
    %772 = math.tanh %771 : vector<8x32xf32>
    %773 = arith.mulf %768, %772 : vector<8x32xf32>
    %774 = vector.broadcast %c1_i32_171 : i32 to vector<8x1xi32>
    %775 = arith.cmpi sgt, %0, %774 : vector<8x1xi32>
    %776 = vector.broadcast %729 : i32 to vector<8x1xi32>
    %777 = arith.cmpi sgt, %0, %776 : vector<8x1xi32>
    %778 = arith.truncf %757 : vector<8x32xf32> to vector<8x32xbf16>
    %779 = arith.truncf %773 : vector<8x32xf32> to vector<8x32xbf16>
    %cst_181 = arith.constant 0.000000e+00 : bf16
    %780 = vector.broadcast %cst_181 : bf16 to vector<8x32xbf16>
    %781 = vector.shape_cast %775 : vector<8x1xi1> to vector<8x1xi1>
    %782 = vector.broadcast %781 : vector<8x1xi1> to vector<8x32xi1>
    %783 = arith.select %782, %778, %780 : vector<8x32xi1>, vector<8x32xbf16>
    %784 = vector.shape_cast %783 : vector<8x32xbf16> to vector<1x8x32xbf16>
    %785 = arith.index_cast %c1_i32_171 : i32 to index
    %c0_182 = arith.constant 0 : index
    %c0_183 = arith.constant 0 : index
    %786 = vector.load %arg16[%785, %c0_182, %c0_183] : memref<8x8x32xbf16, #tpu.memory_space<vmem>>, vector<1x8x32xbf16>
    tpu.vector_store %arg16[%785, %c0_182, %c0_183], %784 {strides = array<i32>} : memref<8x8x32xbf16, #tpu.memory_space<vmem>>, vector<1x8x32xbf16>,
    %787 = vector.shape_cast %777 : vector<8x1xi1> to vector<8x1xi1>
    %788 = vector.broadcast %787 : vector<8x1xi1> to vector<8x32xi1>
    %789 = arith.select %788, %779, %780 : vector<8x32xi1>, vector<8x32xbf16>
    %790 = vector.shape_cast %789 : vector<8x32xbf16> to vector<1x8x32xbf16>
    %791 = arith.index_cast %729 : i32 to index
    %c0_184 = arith.constant 0 : index
    %c0_185 = arith.constant 0 : index
    %792 = vector.load %arg17[%791, %c0_184, %c0_185] : memref<8x8x32xbf16, #tpu.memory_space<vmem>>, vector<1x8x32xbf16>
    tpu.vector_store %arg17[%791, %c0_184, %c0_185], %790 {strides = array<i32>} : memref<8x8x32xbf16, #tpu.memory_space<vmem>>, vector<1x8x32xbf16>,
    %793 = vector.shape_cast %775 : vector<8x1xi1> to vector<8x1xi1>
    %794 = vector.broadcast %793 : vector<8x1xi1> to vector<8x32xi1>
    %795 = arith.select %794, %778, %719 : vector<8x32xi1>, vector<8x32xbf16>
    %796 = vector.shape_cast %775 : vector<8x1xi1> to vector<8x1xi1>
    %797 = vector.broadcast %796 : vector<8x1xi1> to vector<8x32xi1>
    %798 = arith.select %797, %755, %722 : vector<8x32xi1>, vector<8x32xf32>
    %799 = vector.shape_cast %777 : vector<8x1xi1> to vector<8x1xi1>
    %800 = vector.broadcast %799 : vector<8x1xi1> to vector<8x32xi1>
    %801 = arith.select %800, %779, %725 : vector<8x32xi1>, vector<8x32xbf16>
    %802 = vector.shape_cast %777 : vector<8x1xi1> to vector<8x1xi1>
    %803 = vector.broadcast %802 : vector<8x1xi1> to vector<8x32xi1>
    %804 = arith.select %803, %771, %728 : vector<8x32xi1>, vector<8x32xf32>
    %c2_i32_186 = arith.constant 2 : i32
    %c7_i32_187 = arith.constant 7 : i32
    %805 = arith.subi %c7_i32_187, %c2_i32_186 : i32
    %cst_188 = arith.constant dense<0.000000e+00> : vector<8x128xf32>
    %806 = tpu.matmul %795, %629, %cst_188 {dimension_numbers = #tpu.dot_dimension_numbers<[1], [0], [0], [1], [0, 0, 1, 1], [], []>} : vector<8x32xbf16>, vector<32x128xbf16>, vector<8x128xf32> -> vector<8x128xf32>
    %cst_189 = arith.constant dense<0.000000e+00> : vector<8x128xf32>
    %807 = tpu.matmul %801, %630, %cst_189 {dimension_numbers = #tpu.dot_dimension_numbers<[1], [0], [0], [1], [0, 0, 1, 1], [], []>} : vector<8x32xbf16>, vector<32x128xbf16>, vector<8x128xf32> -> vector<8x128xf32>
    %808 = arith.index_cast %c2_i32_186 : i32 to index
    %c0_190 = arith.constant 0 : index
    %c0_191 = arith.constant 0 : index
    %809 = vector.load %arg14[%808, %c0_190, %c0_191] : memref<8x8x128xbf16, #tpu.memory_space<vmem>>, vector<1x8x128xbf16>
    %810 = vector.shape_cast %809 : vector<1x8x128xbf16> to vector<8x128xbf16>
    %811 = arith.extf %810 : vector<8x128xbf16> to vector<8x128xf32>
    %812 = arith.addf %811, %806 : vector<8x128xf32>
    %813 = arith.index_cast %805 : i32 to index
    %c0_192 = arith.constant 0 : index
    %c0_193 = arith.constant 0 : index
    %814 = vector.load %arg15[%813, %c0_192, %c0_193] : memref<8x8x128xbf16, #tpu.memory_space<vmem>>, vector<1x8x128xbf16>
    %815 = vector.shape_cast %814 : vector<1x8x128xbf16> to vector<8x128xbf16>
    %816 = arith.extf %815 : vector<8x128xbf16> to vector<8x128xf32>
    %817 = arith.addf %816, %807 : vector<8x128xf32>
    %818 = vector.extract_strided_slice %812 {offsets = [0, 0], sizes = [8, 96], strides = [1, 1]} : vector<8x128xf32> to vector<8x96xf32>
    %819 = arith.negf %818 : vector<8x96xf32>
    %820 = math.exp %819 : vector<8x96xf32>
    %cst_194 = arith.constant 1.000000e+00 : f32
    %821 = vector.broadcast %cst_194 : f32 to vector<8x96xf32>
    %822 = arith.addf %821, %820 : vector<8x96xf32>
    %823 = arith.divf %821, %822 : vector<8x96xf32>
    %824 = vector.extract_strided_slice %812 {offsets = [0, 96], sizes = [8, 32], strides = [1, 1]} : vector<8x128xf32> to vector<8x32xf32>
    %825 = math.tanh %824 : vector<8x32xf32>
    %826 = vector.extract_strided_slice %823 {offsets = [0, 0], sizes = [8, 32], strides = [1, 1]} : vector<8x96xf32> to vector<8x32xf32>
    %827 = vector.extract_strided_slice %823 {offsets = [0, 32], sizes = [8, 32], strides = [1, 1]} : vector<8x96xf32> to vector<8x32xf32>
    %828 = vector.extract_strided_slice %823 {offsets = [0, 64], sizes = [8, 32], strides = [1, 1]} : vector<8x96xf32> to vector<8x32xf32>
    %829 = arith.mulf %827, %798 : vector<8x32xf32>
    %830 = arith.mulf %826, %825 : vector<8x32xf32>
    %831 = arith.addf %829, %830 : vector<8x32xf32>
    %832 = math.tanh %831 : vector<8x32xf32>
    %833 = arith.mulf %828, %832 : vector<8x32xf32>
    %834 = vector.extract_strided_slice %817 {offsets = [0, 0], sizes = [8, 96], strides = [1, 1]} : vector<8x128xf32> to vector<8x96xf32>
    %835 = arith.negf %834 : vector<8x96xf32>
    %836 = math.exp %835 : vector<8x96xf32>
    %cst_195 = arith.constant 1.000000e+00 : f32
    %837 = vector.broadcast %cst_195 : f32 to vector<8x96xf32>
    %838 = arith.addf %837, %836 : vector<8x96xf32>
    %839 = arith.divf %837, %838 : vector<8x96xf32>
    %840 = vector.extract_strided_slice %817 {offsets = [0, 96], sizes = [8, 32], strides = [1, 1]} : vector<8x128xf32> to vector<8x32xf32>
    %841 = math.tanh %840 : vector<8x32xf32>
    %842 = vector.extract_strided_slice %839 {offsets = [0, 0], sizes = [8, 32], strides = [1, 1]} : vector<8x96xf32> to vector<8x32xf32>
    %843 = vector.extract_strided_slice %839 {offsets = [0, 32], sizes = [8, 32], strides = [1, 1]} : vector<8x96xf32> to vector<8x32xf32>
    %844 = vector.extract_strided_slice %839 {offsets = [0, 64], sizes = [8, 32], strides = [1, 1]} : vector<8x96xf32> to vector<8x32xf32>
    %845 = arith.mulf %843, %804 : vector<8x32xf32>
    %846 = arith.mulf %842, %841 : vector<8x32xf32>
    %847 = arith.addf %845, %846 : vector<8x32xf32>
    %848 = math.tanh %847 : vector<8x32xf32>
    %849 = arith.mulf %844, %848 : vector<8x32xf32>
    %850 = vector.broadcast %c2_i32_186 : i32 to vector<8x1xi32>
    %851 = arith.cmpi sgt, %0, %850 : vector<8x1xi32>
    %852 = vector.broadcast %805 : i32 to vector<8x1xi32>
    %853 = arith.cmpi sgt, %0, %852 : vector<8x1xi32>
    %854 = arith.truncf %833 : vector<8x32xf32> to vector<8x32xbf16>
    %855 = arith.truncf %849 : vector<8x32xf32> to vector<8x32xbf16>
    %cst_196 = arith.constant 0.000000e+00 : bf16
    %856 = vector.broadcast %cst_196 : bf16 to vector<8x32xbf16>
    %857 = vector.shape_cast %851 : vector<8x1xi1> to vector<8x1xi1>
    %858 = vector.broadcast %857 : vector<8x1xi1> to vector<8x32xi1>
    %859 = arith.select %858, %854, %856 : vector<8x32xi1>, vector<8x32xbf16>
    %860 = vector.shape_cast %859 : vector<8x32xbf16> to vector<1x8x32xbf16>
    %861 = arith.index_cast %c2_i32_186 : i32 to index
    %c0_197 = arith.constant 0 : index
    %c0_198 = arith.constant 0 : index
    %862 = vector.load %arg16[%861, %c0_197, %c0_198] : memref<8x8x32xbf16, #tpu.memory_space<vmem>>, vector<1x8x32xbf16>
    tpu.vector_store %arg16[%861, %c0_197, %c0_198], %860 {strides = array<i32>} : memref<8x8x32xbf16, #tpu.memory_space<vmem>>, vector<1x8x32xbf16>,
    %863 = vector.shape_cast %853 : vector<8x1xi1> to vector<8x1xi1>
    %864 = vector.broadcast %863 : vector<8x1xi1> to vector<8x32xi1>
    %865 = arith.select %864, %855, %856 : vector<8x32xi1>, vector<8x32xbf16>
    %866 = vector.shape_cast %865 : vector<8x32xbf16> to vector<1x8x32xbf16>
    %867 = arith.index_cast %805 : i32 to index
    %c0_199 = arith.constant 0 : index
    %c0_200 = arith.constant 0 : index
    %868 = vector.load %arg17[%867, %c0_199, %c0_200] : memref<8x8x32xbf16, #tpu.memory_space<vmem>>, vector<1x8x32xbf16>
    tpu.vector_store %arg17[%867, %c0_199, %c0_200], %866 {strides = array<i32>} : memref<8x8x32xbf16, #tpu.memory_space<vmem>>, vector<1x8x32xbf16>,
    %869 = vector.shape_cast %851 : vector<8x1xi1> to vector<8x1xi1>
    %870 = vector.broadcast %869 : vector<8x1xi1> to vector<8x32xi1>
    %871 = arith.select %870, %854, %795 : vector<8x32xi1>, vector<8x32xbf16>
    %872 = vector.shape_cast %851 : vector<8x1xi1> to vector<8x1xi1>
    %873 = vector.broadcast %872 : vector<8x1xi1> to vector<8x32xi1>
    %874 = arith.select %873, %831, %798 : vector<8x32xi1>, vector<8x32xf32>
    %875 = vector.shape_cast %853 : vector<8x1xi1> to vector<8x1xi1>
    %876 = vector.broadcast %875 : vector<8x1xi1> to vector<8x32xi1>
    %877 = arith.select %876, %855, %801 : vector<8x32xi1>, vector<8x32xbf16>
    %878 = vector.shape_cast %853 : vector<8x1xi1> to vector<8x1xi1>
    %879 = vector.broadcast %878 : vector<8x1xi1> to vector<8x32xi1>
    %880 = arith.select %879, %847, %804 : vector<8x32xi1>, vector<8x32xf32>
    %c3_i32_201 = arith.constant 3 : i32
    %c7_i32_202 = arith.constant 7 : i32
    %881 = arith.subi %c7_i32_202, %c3_i32_201 : i32
    %cst_203 = arith.constant dense<0.000000e+00> : vector<8x128xf32>
    %882 = tpu.matmul %871, %629, %cst_203 {dimension_numbers = #tpu.dot_dimension_numbers<[1], [0], [0], [1], [0, 0, 1, 1], [], []>} : vector<8x32xbf16>, vector<32x128xbf16>, vector<8x128xf32> -> vector<8x128xf32>
    %cst_204 = arith.constant dense<0.000000e+00> : vector<8x128xf32>
    %883 = tpu.matmul %877, %630, %cst_204 {dimension_numbers = #tpu.dot_dimension_numbers<[1], [0], [0], [1], [0, 0, 1, 1], [], []>} : vector<8x32xbf16>, vector<32x128xbf16>, vector<8x128xf32> -> vector<8x128xf32>
    %884 = arith.index_cast %c3_i32_201 : i32 to index
    %c0_205 = arith.constant 0 : index
    %c0_206 = arith.constant 0 : index
    %885 = vector.load %arg14[%884, %c0_205, %c0_206] : memref<8x8x128xbf16, #tpu.memory_space<vmem>>, vector<1x8x128xbf16>
    %886 = vector.shape_cast %885 : vector<1x8x128xbf16> to vector<8x128xbf16>
    %887 = arith.extf %886 : vector<8x128xbf16> to vector<8x128xf32>
    %888 = arith.addf %887, %882 : vector<8x128xf32>
    %889 = arith.index_cast %881 : i32 to index
    %c0_207 = arith.constant 0 : index
    %c0_208 = arith.constant 0 : index
    %890 = vector.load %arg15[%889, %c0_207, %c0_208] : memref<8x8x128xbf16, #tpu.memory_space<vmem>>, vector<1x8x128xbf16>
    %891 = vector.shape_cast %890 : vector<1x8x128xbf16> to vector<8x128xbf16>
    %892 = arith.extf %891 : vector<8x128xbf16> to vector<8x128xf32>
    %893 = arith.addf %892, %883 : vector<8x128xf32>
    %894 = vector.extract_strided_slice %888 {offsets = [0, 0], sizes = [8, 96], strides = [1, 1]} : vector<8x128xf32> to vector<8x96xf32>
    %895 = arith.negf %894 : vector<8x96xf32>
    %896 = math.exp %895 : vector<8x96xf32>
    %cst_209 = arith.constant 1.000000e+00 : f32
    %897 = vector.broadcast %cst_209 : f32 to vector<8x96xf32>
    %898 = arith.addf %897, %896 : vector<8x96xf32>
    %899 = arith.divf %897, %898 : vector<8x96xf32>
    %900 = vector.extract_strided_slice %888 {offsets = [0, 96], sizes = [8, 32], strides = [1, 1]} : vector<8x128xf32> to vector<8x32xf32>
    %901 = math.tanh %900 : vector<8x32xf32>
    %902 = vector.extract_strided_slice %899 {offsets = [0, 0], sizes = [8, 32], strides = [1, 1]} : vector<8x96xf32> to vector<8x32xf32>
    %903 = vector.extract_strided_slice %899 {offsets = [0, 32], sizes = [8, 32], strides = [1, 1]} : vector<8x96xf32> to vector<8x32xf32>
    %904 = vector.extract_strided_slice %899 {offsets = [0, 64], sizes = [8, 32], strides = [1, 1]} : vector<8x96xf32> to vector<8x32xf32>
    %905 = arith.mulf %903, %874 : vector<8x32xf32>
    %906 = arith.mulf %902, %901 : vector<8x32xf32>
    %907 = arith.addf %905, %906 : vector<8x32xf32>
    %908 = math.tanh %907 : vector<8x32xf32>
    %909 = arith.mulf %904, %908 : vector<8x32xf32>
    %910 = vector.extract_strided_slice %893 {offsets = [0, 0], sizes = [8, 96], strides = [1, 1]} : vector<8x128xf32> to vector<8x96xf32>
    %911 = arith.negf %910 : vector<8x96xf32>
    %912 = math.exp %911 : vector<8x96xf32>
    %cst_210 = arith.constant 1.000000e+00 : f32
    %913 = vector.broadcast %cst_210 : f32 to vector<8x96xf32>
    %914 = arith.addf %913, %912 : vector<8x96xf32>
    %915 = arith.divf %913, %914 : vector<8x96xf32>
    %916 = vector.extract_strided_slice %893 {offsets = [0, 96], sizes = [8, 32], strides = [1, 1]} : vector<8x128xf32> to vector<8x32xf32>
    %917 = math.tanh %916 : vector<8x32xf32>
    %918 = vector.extract_strided_slice %915 {offsets = [0, 0], sizes = [8, 32], strides = [1, 1]} : vector<8x96xf32> to vector<8x32xf32>
    %919 = vector.extract_strided_slice %915 {offsets = [0, 32], sizes = [8, 32], strides = [1, 1]} : vector<8x96xf32> to vector<8x32xf32>
    %920 = vector.extract_strided_slice %915 {offsets = [0, 64], sizes = [8, 32], strides = [1, 1]} : vector<8x96xf32> to vector<8x32xf32>
    %921 = arith.mulf %919, %880 : vector<8x32xf32>
    %922 = arith.mulf %918, %917 : vector<8x32xf32>
    %923 = arith.addf %921, %922 : vector<8x32xf32>
    %924 = math.tanh %923 : vector<8x32xf32>
    %925 = arith.mulf %920, %924 : vector<8x32xf32>
    %926 = vector.broadcast %c3_i32_201 : i32 to vector<8x1xi32>
    %927 = arith.cmpi sgt, %0, %926 : vector<8x1xi32>
    %928 = vector.broadcast %881 : i32 to vector<8x1xi32>
    %929 = arith.cmpi sgt, %0, %928 : vector<8x1xi32>
    %930 = arith.truncf %909 : vector<8x32xf32> to vector<8x32xbf16>
    %931 = arith.truncf %925 : vector<8x32xf32> to vector<8x32xbf16>
    %cst_211 = arith.constant 0.000000e+00 : bf16
    %932 = vector.broadcast %cst_211 : bf16 to vector<8x32xbf16>
    %933 = vector.shape_cast %927 : vector<8x1xi1> to vector<8x1xi1>
    %934 = vector.broadcast %933 : vector<8x1xi1> to vector<8x32xi1>
    %935 = arith.select %934, %930, %932 : vector<8x32xi1>, vector<8x32xbf16>
    %936 = vector.shape_cast %935 : vector<8x32xbf16> to vector<1x8x32xbf16>
    %937 = arith.index_cast %c3_i32_201 : i32 to index
    %c0_212 = arith.constant 0 : index
    %c0_213 = arith.constant 0 : index
    %938 = vector.load %arg16[%937, %c0_212, %c0_213] : memref<8x8x32xbf16, #tpu.memory_space<vmem>>, vector<1x8x32xbf16>
    tpu.vector_store %arg16[%937, %c0_212, %c0_213], %936 {strides = array<i32>} : memref<8x8x32xbf16, #tpu.memory_space<vmem>>, vector<1x8x32xbf16>,
    %939 = vector.shape_cast %929 : vector<8x1xi1> to vector<8x1xi1>
    %940 = vector.broadcast %939 : vector<8x1xi1> to vector<8x32xi1>
    %941 = arith.select %940, %931, %932 : vector<8x32xi1>, vector<8x32xbf16>
    %942 = vector.shape_cast %941 : vector<8x32xbf16> to vector<1x8x32xbf16>
    %943 = arith.index_cast %881 : i32 to index
    %c0_214 = arith.constant 0 : index
    %c0_215 = arith.constant 0 : index
    %944 = vector.load %arg17[%943, %c0_214, %c0_215] : memref<8x8x32xbf16, #tpu.memory_space<vmem>>, vector<1x8x32xbf16>
    tpu.vector_store %arg17[%943, %c0_214, %c0_215], %942 {strides = array<i32>} : memref<8x8x32xbf16, #tpu.memory_space<vmem>>, vector<1x8x32xbf16>,
    %945 = vector.shape_cast %927 : vector<8x1xi1> to vector<8x1xi1>
    %946 = vector.broadcast %945 : vector<8x1xi1> to vector<8x32xi1>
    %947 = arith.select %946, %930, %871 : vector<8x32xi1>, vector<8x32xbf16>
    %948 = vector.shape_cast %927 : vector<8x1xi1> to vector<8x1xi1>
    %949 = vector.broadcast %948 : vector<8x1xi1> to vector<8x32xi1>
    %950 = arith.select %949, %907, %874 : vector<8x32xi1>, vector<8x32xf32>
    %951 = vector.shape_cast %929 : vector<8x1xi1> to vector<8x1xi1>
    %952 = vector.broadcast %951 : vector<8x1xi1> to vector<8x32xi1>
    %953 = arith.select %952, %931, %877 : vector<8x32xi1>, vector<8x32xbf16>
    %954 = vector.shape_cast %929 : vector<8x1xi1> to vector<8x1xi1>
    %955 = vector.broadcast %954 : vector<8x1xi1> to vector<8x32xi1>
    %956 = arith.select %955, %923, %880 : vector<8x32xi1>, vector<8x32xf32>
    %c4_i32_216 = arith.constant 4 : i32
    %c7_i32_217 = arith.constant 7 : i32
    %957 = arith.subi %c7_i32_217, %c4_i32_216 : i32
    %cst_218 = arith.constant dense<0.000000e+00> : vector<8x128xf32>
    %958 = tpu.matmul %947, %629, %cst_218 {dimension_numbers = #tpu.dot_dimension_numbers<[1], [0], [0], [1], [0, 0, 1, 1], [], []>} : vector<8x32xbf16>, vector<32x128xbf16>, vector<8x128xf32> -> vector<8x128xf32>
    %cst_219 = arith.constant dense<0.000000e+00> : vector<8x128xf32>
    %959 = tpu.matmul %953, %630, %cst_219 {dimension_numbers = #tpu.dot_dimension_numbers<[1], [0], [0], [1], [0, 0, 1, 1], [], []>} : vector<8x32xbf16>, vector<32x128xbf16>, vector<8x128xf32> -> vector<8x128xf32>
    %960 = arith.index_cast %c4_i32_216 : i32 to index
    %c0_220 = arith.constant 0 : index
    %c0_221 = arith.constant 0 : index
    %961 = vector.load %arg14[%960, %c0_220, %c0_221] : memref<8x8x128xbf16, #tpu.memory_space<vmem>>, vector<1x8x128xbf16>
    %962 = vector.shape_cast %961 : vector<1x8x128xbf16> to vector<8x128xbf16>
    %963 = arith.extf %962 : vector<8x128xbf16> to vector<8x128xf32>
    %964 = arith.addf %963, %958 : vector<8x128xf32>
    %965 = arith.index_cast %957 : i32 to index
    %c0_222 = arith.constant 0 : index
    %c0_223 = arith.constant 0 : index
    %966 = vector.load %arg15[%965, %c0_222, %c0_223] : memref<8x8x128xbf16, #tpu.memory_space<vmem>>, vector<1x8x128xbf16>
    %967 = vector.shape_cast %966 : vector<1x8x128xbf16> to vector<8x128xbf16>
    %968 = arith.extf %967 : vector<8x128xbf16> to vector<8x128xf32>
    %969 = arith.addf %968, %959 : vector<8x128xf32>
    %970 = vector.extract_strided_slice %964 {offsets = [0, 0], sizes = [8, 96], strides = [1, 1]} : vector<8x128xf32> to vector<8x96xf32>
    %971 = arith.negf %970 : vector<8x96xf32>
    %972 = math.exp %971 : vector<8x96xf32>
    %cst_224 = arith.constant 1.000000e+00 : f32
    %973 = vector.broadcast %cst_224 : f32 to vector<8x96xf32>
    %974 = arith.addf %973, %972 : vector<8x96xf32>
    %975 = arith.divf %973, %974 : vector<8x96xf32>
    %976 = vector.extract_strided_slice %964 {offsets = [0, 96], sizes = [8, 32], strides = [1, 1]} : vector<8x128xf32> to vector<8x32xf32>
    %977 = math.tanh %976 : vector<8x32xf32>
    %978 = vector.extract_strided_slice %975 {offsets = [0, 0], sizes = [8, 32], strides = [1, 1]} : vector<8x96xf32> to vector<8x32xf32>
    %979 = vector.extract_strided_slice %975 {offsets = [0, 32], sizes = [8, 32], strides = [1, 1]} : vector<8x96xf32> to vector<8x32xf32>
    %980 = vector.extract_strided_slice %975 {offsets = [0, 64], sizes = [8, 32], strides = [1, 1]} : vector<8x96xf32> to vector<8x32xf32>
    %981 = arith.mulf %979, %950 : vector<8x32xf32>
    %982 = arith.mulf %978, %977 : vector<8x32xf32>
    %983 = arith.addf %981, %982 : vector<8x32xf32>
    %984 = math.tanh %983 : vector<8x32xf32>
    %985 = arith.mulf %980, %984 : vector<8x32xf32>
    %986 = vector.extract_strided_slice %969 {offsets = [0, 0], sizes = [8, 96], strides = [1, 1]} : vector<8x128xf32> to vector<8x96xf32>
    %987 = arith.negf %986 : vector<8x96xf32>
    %988 = math.exp %987 : vector<8x96xf32>
    %cst_225 = arith.constant 1.000000e+00 : f32
    %989 = vector.broadcast %cst_225 : f32 to vector<8x96xf32>
    %990 = arith.addf %989, %988 : vector<8x96xf32>
    %991 = arith.divf %989, %990 : vector<8x96xf32>
    %992 = vector.extract_strided_slice %969 {offsets = [0, 96], sizes = [8, 32], strides = [1, 1]} : vector<8x128xf32> to vector<8x32xf32>
    %993 = math.tanh %992 : vector<8x32xf32>
    %994 = vector.extract_strided_slice %991 {offsets = [0, 0], sizes = [8, 32], strides = [1, 1]} : vector<8x96xf32> to vector<8x32xf32>
    %995 = vector.extract_strided_slice %991 {offsets = [0, 32], sizes = [8, 32], strides = [1, 1]} : vector<8x96xf32> to vector<8x32xf32>
    %996 = vector.extract_strided_slice %991 {offsets = [0, 64], sizes = [8, 32], strides = [1, 1]} : vector<8x96xf32> to vector<8x32xf32>
    %997 = arith.mulf %995, %956 : vector<8x32xf32>
    %998 = arith.mulf %994, %993 : vector<8x32xf32>
    %999 = arith.addf %997, %998 : vector<8x32xf32>
    %1000 = math.tanh %999 : vector<8x32xf32>
    %1001 = arith.mulf %996, %1000 : vector<8x32xf32>
    %1002 = vector.broadcast %c4_i32_216 : i32 to vector<8x1xi32>
    %1003 = arith.cmpi sgt, %0, %1002 : vector<8x1xi32>
    %1004 = vector.broadcast %957 : i32 to vector<8x1xi32>
    %1005 = arith.cmpi sgt, %0, %1004 : vector<8x1xi32>
    %1006 = arith.truncf %985 : vector<8x32xf32> to vector<8x32xbf16>
    %1007 = arith.truncf %1001 : vector<8x32xf32> to vector<8x32xbf16>
    %cst_226 = arith.constant 0.000000e+00 : bf16
    %1008 = vector.broadcast %cst_226 : bf16 to vector<8x32xbf16>
    %1009 = vector.shape_cast %1003 : vector<8x1xi1> to vector<8x1xi1>
    %1010 = vector.broadcast %1009 : vector<8x1xi1> to vector<8x32xi1>
    %1011 = arith.select %1010, %1006, %1008 : vector<8x32xi1>, vector<8x32xbf16>
    %1012 = vector.shape_cast %1011 : vector<8x32xbf16> to vector<1x8x32xbf16>
    %1013 = arith.index_cast %c4_i32_216 : i32 to index
    %c0_227 = arith.constant 0 : index
    %c0_228 = arith.constant 0 : index
    %1014 = vector.load %arg16[%1013, %c0_227, %c0_228] : memref<8x8x32xbf16, #tpu.memory_space<vmem>>, vector<1x8x32xbf16>
    tpu.vector_store %arg16[%1013, %c0_227, %c0_228], %1012 {strides = array<i32>} : memref<8x8x32xbf16, #tpu.memory_space<vmem>>, vector<1x8x32xbf16>,
    %1015 = vector.shape_cast %1005 : vector<8x1xi1> to vector<8x1xi1>
    %1016 = vector.broadcast %1015 : vector<8x1xi1> to vector<8x32xi1>
    %1017 = arith.select %1016, %1007, %1008 : vector<8x32xi1>, vector<8x32xbf16>
    %1018 = vector.shape_cast %1017 : vector<8x32xbf16> to vector<1x8x32xbf16>
    %1019 = arith.index_cast %957 : i32 to index
    %c0_229 = arith.constant 0 : index
    %c0_230 = arith.constant 0 : index
    %1020 = vector.load %arg17[%1019, %c0_229, %c0_230] : memref<8x8x32xbf16, #tpu.memory_space<vmem>>, vector<1x8x32xbf16>
    tpu.vector_store %arg17[%1019, %c0_229, %c0_230], %1018 {strides = array<i32>} : memref<8x8x32xbf16, #tpu.memory_space<vmem>>, vector<1x8x32xbf16>,
    %1021 = vector.shape_cast %1003 : vector<8x1xi1> to vector<8x1xi1>
    %1022 = vector.broadcast %1021 : vector<8x1xi1> to vector<8x32xi1>
    %1023 = arith.select %1022, %1006, %947 : vector<8x32xi1>, vector<8x32xbf16>
    %1024 = vector.shape_cast %1003 : vector<8x1xi1> to vector<8x1xi1>
    %1025 = vector.broadcast %1024 : vector<8x1xi1> to vector<8x32xi1>
    %1026 = arith.select %1025, %983, %950 : vector<8x32xi1>, vector<8x32xf32>
    %1027 = vector.shape_cast %1005 : vector<8x1xi1> to vector<8x1xi1>
    %1028 = vector.broadcast %1027 : vector<8x1xi1> to vector<8x32xi1>
    %1029 = arith.select %1028, %1007, %953 : vector<8x32xi1>, vector<8x32xbf16>
    %1030 = vector.shape_cast %1005 : vector<8x1xi1> to vector<8x1xi1>
    %1031 = vector.broadcast %1030 : vector<8x1xi1> to vector<8x32xi1>
    %1032 = arith.select %1031, %999, %956 : vector<8x32xi1>, vector<8x32xf32>
    %c5_i32_231 = arith.constant 5 : i32
    %c7_i32_232 = arith.constant 7 : i32
    %1033 = arith.subi %c7_i32_232, %c5_i32_231 : i32
    %cst_233 = arith.constant dense<0.000000e+00> : vector<8x128xf32>
    %1034 = tpu.matmul %1023, %629, %cst_233 {dimension_numbers = #tpu.dot_dimension_numbers<[1], [0], [0], [1], [0, 0, 1, 1], [], []>} : vector<8x32xbf16>, vector<32x128xbf16>, vector<8x128xf32> -> vector<8x128xf32>
    %cst_234 = arith.constant dense<0.000000e+00> : vector<8x128xf32>
    %1035 = tpu.matmul %1029, %630, %cst_234 {dimension_numbers = #tpu.dot_dimension_numbers<[1], [0], [0], [1], [0, 0, 1, 1], [], []>} : vector<8x32xbf16>, vector<32x128xbf16>, vector<8x128xf32> -> vector<8x128xf32>
    %1036 = arith.index_cast %c5_i32_231 : i32 to index
    %c0_235 = arith.constant 0 : index
    %c0_236 = arith.constant 0 : index
    %1037 = vector.load %arg14[%1036, %c0_235, %c0_236] : memref<8x8x128xbf16, #tpu.memory_space<vmem>>, vector<1x8x128xbf16>
    %1038 = vector.shape_cast %1037 : vector<1x8x128xbf16> to vector<8x128xbf16>
    %1039 = arith.extf %1038 : vector<8x128xbf16> to vector<8x128xf32>
    %1040 = arith.addf %1039, %1034 : vector<8x128xf32>
    %1041 = arith.index_cast %1033 : i32 to index
    %c0_237 = arith.constant 0 : index
    %c0_238 = arith.constant 0 : index
    %1042 = vector.load %arg15[%1041, %c0_237, %c0_238] : memref<8x8x128xbf16, #tpu.memory_space<vmem>>, vector<1x8x128xbf16>
    %1043 = vector.shape_cast %1042 : vector<1x8x128xbf16> to vector<8x128xbf16>
    %1044 = arith.extf %1043 : vector<8x128xbf16> to vector<8x128xf32>
    %1045 = arith.addf %1044, %1035 : vector<8x128xf32>
    %1046 = vector.extract_strided_slice %1040 {offsets = [0, 0], sizes = [8, 96], strides = [1, 1]} : vector<8x128xf32> to vector<8x96xf32>
    %1047 = arith.negf %1046 : vector<8x96xf32>
    %1048 = math.exp %1047 : vector<8x96xf32>
    %cst_239 = arith.constant 1.000000e+00 : f32
    %1049 = vector.broadcast %cst_239 : f32 to vector<8x96xf32>
    %1050 = arith.addf %1049, %1048 : vector<8x96xf32>
    %1051 = arith.divf %1049, %1050 : vector<8x96xf32>
    %1052 = vector.extract_strided_slice %1040 {offsets = [0, 96], sizes = [8, 32], strides = [1, 1]} : vector<8x128xf32> to vector<8x32xf32>
    %1053 = math.tanh %1052 : vector<8x32xf32>
    %1054 = vector.extract_strided_slice %1051 {offsets = [0, 0], sizes = [8, 32], strides = [1, 1]} : vector<8x96xf32> to vector<8x32xf32>
    %1055 = vector.extract_strided_slice %1051 {offsets = [0, 32], sizes = [8, 32], strides = [1, 1]} : vector<8x96xf32> to vector<8x32xf32>
    %1056 = vector.extract_strided_slice %1051 {offsets = [0, 64], sizes = [8, 32], strides = [1, 1]} : vector<8x96xf32> to vector<8x32xf32>
    %1057 = arith.mulf %1055, %1026 : vector<8x32xf32>
    %1058 = arith.mulf %1054, %1053 : vector<8x32xf32>
    %1059 = arith.addf %1057, %1058 : vector<8x32xf32>
    %1060 = math.tanh %1059 : vector<8x32xf32>
    %1061 = arith.mulf %1056, %1060 : vector<8x32xf32>
    %1062 = vector.extract_strided_slice %1045 {offsets = [0, 0], sizes = [8, 96], strides = [1, 1]} : vector<8x128xf32> to vector<8x96xf32>
    %1063 = arith.negf %1062 : vector<8x96xf32>
    %1064 = math.exp %1063 : vector<8x96xf32>
    %cst_240 = arith.constant 1.000000e+00 : f32
    %1065 = vector.broadcast %cst_240 : f32 to vector<8x96xf32>
    %1066 = arith.addf %1065, %1064 : vector<8x96xf32>
    %1067 = arith.divf %1065, %1066 : vector<8x96xf32>
    %1068 = vector.extract_strided_slice %1045 {offsets = [0, 96], sizes = [8, 32], strides = [1, 1]} : vector<8x128xf32> to vector<8x32xf32>
    %1069 = math.tanh %1068 : vector<8x32xf32>
    %1070 = vector.extract_strided_slice %1067 {offsets = [0, 0], sizes = [8, 32], strides = [1, 1]} : vector<8x96xf32> to vector<8x32xf32>
    %1071 = vector.extract_strided_slice %1067 {offsets = [0, 32], sizes = [8, 32], strides = [1, 1]} : vector<8x96xf32> to vector<8x32xf32>
    %1072 = vector.extract_strided_slice %1067 {offsets = [0, 64], sizes = [8, 32], strides = [1, 1]} : vector<8x96xf32> to vector<8x32xf32>
    %1073 = arith.mulf %1071, %1032 : vector<8x32xf32>
    %1074 = arith.mulf %1070, %1069 : vector<8x32xf32>
    %1075 = arith.addf %1073, %1074 : vector<8x32xf32>
    %1076 = math.tanh %1075 : vector<8x32xf32>
    %1077 = arith.mulf %1072, %1076 : vector<8x32xf32>
    %1078 = vector.broadcast %c5_i32_231 : i32 to vector<8x1xi32>
    %1079 = arith.cmpi sgt, %0, %1078 : vector<8x1xi32>
    %1080 = vector.broadcast %1033 : i32 to vector<8x1xi32>
    %1081 = arith.cmpi sgt, %0, %1080 : vector<8x1xi32>
    %1082 = arith.truncf %1061 : vector<8x32xf32> to vector<8x32xbf16>
    %1083 = arith.truncf %1077 : vector<8x32xf32> to vector<8x32xbf16>
    %cst_241 = arith.constant 0.000000e+00 : bf16
    %1084 = vector.broadcast %cst_241 : bf16 to vector<8x32xbf16>
    %1085 = vector.shape_cast %1079 : vector<8x1xi1> to vector<8x1xi1>
    %1086 = vector.broadcast %1085 : vector<8x1xi1> to vector<8x32xi1>
    %1087 = arith.select %1086, %1082, %1084 : vector<8x32xi1>, vector<8x32xbf16>
    %1088 = vector.shape_cast %1087 : vector<8x32xbf16> to vector<1x8x32xbf16>
    %1089 = arith.index_cast %c5_i32_231 : i32 to index
    %c0_242 = arith.constant 0 : index
    %c0_243 = arith.constant 0 : index
    %1090 = vector.load %arg16[%1089, %c0_242, %c0_243] : memref<8x8x32xbf16, #tpu.memory_space<vmem>>, vector<1x8x32xbf16>
    tpu.vector_store %arg16[%1089, %c0_242, %c0_243], %1088 {strides = array<i32>} : memref<8x8x32xbf16, #tpu.memory_space<vmem>>, vector<1x8x32xbf16>,
    %1091 = vector.shape_cast %1081 : vector<8x1xi1> to vector<8x1xi1>
    %1092 = vector.broadcast %1091 : vector<8x1xi1> to vector<8x32xi1>
    %1093 = arith.select %1092, %1083, %1084 : vector<8x32xi1>, vector<8x32xbf16>
    %1094 = vector.shape_cast %1093 : vector<8x32xbf16> to vector<1x8x32xbf16>
    %1095 = arith.index_cast %1033 : i32 to index
    %c0_244 = arith.constant 0 : index
    %c0_245 = arith.constant 0 : index
    %1096 = vector.load %arg17[%1095, %c0_244, %c0_245] : memref<8x8x32xbf16, #tpu.memory_space<vmem>>, vector<1x8x32xbf16>
    tpu.vector_store %arg17[%1095, %c0_244, %c0_245], %1094 {strides = array<i32>} : memref<8x8x32xbf16, #tpu.memory_space<vmem>>, vector<1x8x32xbf16>,
    %1097 = vector.shape_cast %1079 : vector<8x1xi1> to vector<8x1xi1>
    %1098 = vector.broadcast %1097 : vector<8x1xi1> to vector<8x32xi1>
    %1099 = arith.select %1098, %1082, %1023 : vector<8x32xi1>, vector<8x32xbf16>
    %1100 = vector.shape_cast %1079 : vector<8x1xi1> to vector<8x1xi1>
    %1101 = vector.broadcast %1100 : vector<8x1xi1> to vector<8x32xi1>
    %1102 = arith.select %1101, %1059, %1026 : vector<8x32xi1>, vector<8x32xf32>
    %1103 = vector.shape_cast %1081 : vector<8x1xi1> to vector<8x1xi1>
    %1104 = vector.broadcast %1103 : vector<8x1xi1> to vector<8x32xi1>
    %1105 = arith.select %1104, %1083, %1029 : vector<8x32xi1>, vector<8x32xbf16>
    %1106 = vector.shape_cast %1081 : vector<8x1xi1> to vector<8x1xi1>
    %1107 = vector.broadcast %1106 : vector<8x1xi1> to vector<8x32xi1>
    %1108 = arith.select %1107, %1075, %1032 : vector<8x32xi1>, vector<8x32xf32>
    %c6_i32_246 = arith.constant 6 : i32
    %c7_i32_247 = arith.constant 7 : i32
    %1109 = arith.subi %c7_i32_247, %c6_i32_246 : i32
    %cst_248 = arith.constant dense<0.000000e+00> : vector<8x128xf32>
    %1110 = tpu.matmul %1099, %629, %cst_248 {dimension_numbers = #tpu.dot_dimension_numbers<[1], [0], [0], [1], [0, 0, 1, 1], [], []>} : vector<8x32xbf16>, vector<32x128xbf16>, vector<8x128xf32> -> vector<8x128xf32>
    %cst_249 = arith.constant dense<0.000000e+00> : vector<8x128xf32>
    %1111 = tpu.matmul %1105, %630, %cst_249 {dimension_numbers = #tpu.dot_dimension_numbers<[1], [0], [0], [1], [0, 0, 1, 1], [], []>} : vector<8x32xbf16>, vector<32x128xbf16>, vector<8x128xf32> -> vector<8x128xf32>
    %1112 = arith.index_cast %c6_i32_246 : i32 to index
    %c0_250 = arith.constant 0 : index
    %c0_251 = arith.constant 0 : index
    %1113 = vector.load %arg14[%1112, %c0_250, %c0_251] : memref<8x8x128xbf16, #tpu.memory_space<vmem>>, vector<1x8x128xbf16>
    %1114 = vector.shape_cast %1113 : vector<1x8x128xbf16> to vector<8x128xbf16>
    %1115 = arith.extf %1114 : vector<8x128xbf16> to vector<8x128xf32>
    %1116 = arith.addf %1115, %1110 : vector<8x128xf32>
    %1117 = arith.index_cast %1109 : i32 to index
    %c0_252 = arith.constant 0 : index
    %c0_253 = arith.constant 0 : index
    %1118 = vector.load %arg15[%1117, %c0_252, %c0_253] : memref<8x8x128xbf16, #tpu.memory_space<vmem>>, vector<1x8x128xbf16>
    %1119 = vector.shape_cast %1118 : vector<1x8x128xbf16> to vector<8x128xbf16>
    %1120 = arith.extf %1119 : vector<8x128xbf16> to vector<8x128xf32>
    %1121 = arith.addf %1120, %1111 : vector<8x128xf32>
    %1122 = vector.extract_strided_slice %1116 {offsets = [0, 0], sizes = [8, 96], strides = [1, 1]} : vector<8x128xf32> to vector<8x96xf32>
    %1123 = arith.negf %1122 : vector<8x96xf32>
    %1124 = math.exp %1123 : vector<8x96xf32>
    %cst_254 = arith.constant 1.000000e+00 : f32
    %1125 = vector.broadcast %cst_254 : f32 to vector<8x96xf32>
    %1126 = arith.addf %1125, %1124 : vector<8x96xf32>
    %1127 = arith.divf %1125, %1126 : vector<8x96xf32>
    %1128 = vector.extract_strided_slice %1116 {offsets = [0, 96], sizes = [8, 32], strides = [1, 1]} : vector<8x128xf32> to vector<8x32xf32>
    %1129 = math.tanh %1128 : vector<8x32xf32>
    %1130 = vector.extract_strided_slice %1127 {offsets = [0, 0], sizes = [8, 32], strides = [1, 1]} : vector<8x96xf32> to vector<8x32xf32>
    %1131 = vector.extract_strided_slice %1127 {offsets = [0, 32], sizes = [8, 32], strides = [1, 1]} : vector<8x96xf32> to vector<8x32xf32>
    %1132 = vector.extract_strided_slice %1127 {offsets = [0, 64], sizes = [8, 32], strides = [1, 1]} : vector<8x96xf32> to vector<8x32xf32>
    %1133 = arith.mulf %1131, %1102 : vector<8x32xf32>
    %1134 = arith.mulf %1130, %1129 : vector<8x32xf32>
    %1135 = arith.addf %1133, %1134 : vector<8x32xf32>
    %1136 = math.tanh %1135 : vector<8x32xf32>
    %1137 = arith.mulf %1132, %1136 : vector<8x32xf32>
    %1138 = vector.extract_strided_slice %1121 {offsets = [0, 0], sizes = [8, 96], strides = [1, 1]} : vector<8x128xf32> to vector<8x96xf32>
    %1139 = arith.negf %1138 : vector<8x96xf32>
    %1140 = math.exp %1139 : vector<8x96xf32>
    %cst_255 = arith.constant 1.000000e+00 : f32
    %1141 = vector.broadcast %cst_255 : f32 to vector<8x96xf32>
    %1142 = arith.addf %1141, %1140 : vector<8x96xf32>
    %1143 = arith.divf %1141, %1142 : vector<8x96xf32>
    %1144 = vector.extract_strided_slice %1121 {offsets = [0, 96], sizes = [8, 32], strides = [1, 1]} : vector<8x128xf32> to vector<8x32xf32>
    %1145 = math.tanh %1144 : vector<8x32xf32>
    %1146 = vector.extract_strided_slice %1143 {offsets = [0, 0], sizes = [8, 32], strides = [1, 1]} : vector<8x96xf32> to vector<8x32xf32>
    %1147 = vector.extract_strided_slice %1143 {offsets = [0, 32], sizes = [8, 32], strides = [1, 1]} : vector<8x96xf32> to vector<8x32xf32>
    %1148 = vector.extract_strided_slice %1143 {offsets = [0, 64], sizes = [8, 32], strides = [1, 1]} : vector<8x96xf32> to vector<8x32xf32>
    %1149 = arith.mulf %1147, %1108 : vector<8x32xf32>
    %1150 = arith.mulf %1146, %1145 : vector<8x32xf32>
    %1151 = arith.addf %1149, %1150 : vector<8x32xf32>
    %1152 = math.tanh %1151 : vector<8x32xf32>
    %1153 = arith.mulf %1148, %1152 : vector<8x32xf32>
    %1154 = vector.broadcast %c6_i32_246 : i32 to vector<8x1xi32>
    %1155 = arith.cmpi sgt, %0, %1154 : vector<8x1xi32>
    %1156 = vector.broadcast %1109 : i32 to vector<8x1xi32>
    %1157 = arith.cmpi sgt, %0, %1156 : vector<8x1xi32>
    %1158 = arith.truncf %1137 : vector<8x32xf32> to vector<8x32xbf16>
    %1159 = arith.truncf %1153 : vector<8x32xf32> to vector<8x32xbf16>
    %cst_256 = arith.constant 0.000000e+00 : bf16
    %1160 = vector.broadcast %cst_256 : bf16 to vector<8x32xbf16>
    %1161 = vector.shape_cast %1155 : vector<8x1xi1> to vector<8x1xi1>
    %1162 = vector.broadcast %1161 : vector<8x1xi1> to vector<8x32xi1>
    %1163 = arith.select %1162, %1158, %1160 : vector<8x32xi1>, vector<8x32xbf16>
    %1164 = vector.shape_cast %1163 : vector<8x32xbf16> to vector<1x8x32xbf16>
    %1165 = arith.index_cast %c6_i32_246 : i32 to index
    %c0_257 = arith.constant 0 : index
    %c0_258 = arith.constant 0 : index
    %1166 = vector.load %arg16[%1165, %c0_257, %c0_258] : memref<8x8x32xbf16, #tpu.memory_space<vmem>>, vector<1x8x32xbf16>
    tpu.vector_store %arg16[%1165, %c0_257, %c0_258], %1164 {strides = array<i32>} : memref<8x8x32xbf16, #tpu.memory_space<vmem>>, vector<1x8x32xbf16>,
    %1167 = vector.shape_cast %1157 : vector<8x1xi1> to vector<8x1xi1>
    %1168 = vector.broadcast %1167 : vector<8x1xi1> to vector<8x32xi1>
    %1169 = arith.select %1168, %1159, %1160 : vector<8x32xi1>, vector<8x32xbf16>
    %1170 = vector.shape_cast %1169 : vector<8x32xbf16> to vector<1x8x32xbf16>
    %1171 = arith.index_cast %1109 : i32 to index
    %c0_259 = arith.constant 0 : index
    %c0_260 = arith.constant 0 : index
    %1172 = vector.load %arg17[%1171, %c0_259, %c0_260] : memref<8x8x32xbf16, #tpu.memory_space<vmem>>, vector<1x8x32xbf16>
    tpu.vector_store %arg17[%1171, %c0_259, %c0_260], %1170 {strides = array<i32>} : memref<8x8x32xbf16, #tpu.memory_space<vmem>>, vector<1x8x32xbf16>,
    %1173 = vector.shape_cast %1155 : vector<8x1xi1> to vector<8x1xi1>
    %1174 = vector.broadcast %1173 : vector<8x1xi1> to vector<8x32xi1>
    %1175 = arith.select %1174, %1158, %1099 : vector<8x32xi1>, vector<8x32xbf16>
    %1176 = vector.shape_cast %1155 : vector<8x1xi1> to vector<8x1xi1>
    %1177 = vector.broadcast %1176 : vector<8x1xi1> to vector<8x32xi1>
    %1178 = arith.select %1177, %1135, %1102 : vector<8x32xi1>, vector<8x32xf32>
    %1179 = vector.shape_cast %1157 : vector<8x1xi1> to vector<8x1xi1>
    %1180 = vector.broadcast %1179 : vector<8x1xi1> to vector<8x32xi1>
    %1181 = arith.select %1180, %1159, %1105 : vector<8x32xi1>, vector<8x32xbf16>
    %1182 = vector.shape_cast %1157 : vector<8x1xi1> to vector<8x1xi1>
    %1183 = vector.broadcast %1182 : vector<8x1xi1> to vector<8x32xi1>
    %1184 = arith.select %1183, %1151, %1108 : vector<8x32xi1>, vector<8x32xf32>
    %c7_i32_261 = arith.constant 7 : i32
    %c7_i32_262 = arith.constant 7 : i32
    %1185 = arith.subi %c7_i32_262, %c7_i32_261 : i32
    %cst_263 = arith.constant dense<0.000000e+00> : vector<8x128xf32>
    %1186 = tpu.matmul %1175, %629, %cst_263 {dimension_numbers = #tpu.dot_dimension_numbers<[1], [0], [0], [1], [0, 0, 1, 1], [], []>} : vector<8x32xbf16>, vector<32x128xbf16>, vector<8x128xf32> -> vector<8x128xf32>
    %cst_264 = arith.constant dense<0.000000e+00> : vector<8x128xf32>
    %1187 = tpu.matmul %1181, %630, %cst_264 {dimension_numbers = #tpu.dot_dimension_numbers<[1], [0], [0], [1], [0, 0, 1, 1], [], []>} : vector<8x32xbf16>, vector<32x128xbf16>, vector<8x128xf32> -> vector<8x128xf32>
    %1188 = arith.index_cast %c7_i32_261 : i32 to index
    %c0_265 = arith.constant 0 : index
    %c0_266 = arith.constant 0 : index
    %1189 = vector.load %arg14[%1188, %c0_265, %c0_266] : memref<8x8x128xbf16, #tpu.memory_space<vmem>>, vector<1x8x128xbf16>
    %1190 = vector.shape_cast %1189 : vector<1x8x128xbf16> to vector<8x128xbf16>
    %1191 = arith.extf %1190 : vector<8x128xbf16> to vector<8x128xf32>
    %1192 = arith.addf %1191, %1186 : vector<8x128xf32>
    %1193 = arith.index_cast %1185 : i32 to index
    %c0_267 = arith.constant 0 : index
    %c0_268 = arith.constant 0 : index
    %1194 = vector.load %arg15[%1193, %c0_267, %c0_268] : memref<8x8x128xbf16, #tpu.memory_space<vmem>>, vector<1x8x128xbf16>
    %1195 = vector.shape_cast %1194 : vector<1x8x128xbf16> to vector<8x128xbf16>
    %1196 = arith.extf %1195 : vector<8x128xbf16> to vector<8x128xf32>
    %1197 = arith.addf %1196, %1187 : vector<8x128xf32>
    %1198 = vector.extract_strided_slice %1192 {offsets = [0, 0], sizes = [8, 96], strides = [1, 1]} : vector<8x128xf32> to vector<8x96xf32>
    %1199 = arith.negf %1198 : vector<8x96xf32>
    %1200 = math.exp %1199 : vector<8x96xf32>
    %cst_269 = arith.constant 1.000000e+00 : f32
    %1201 = vector.broadcast %cst_269 : f32 to vector<8x96xf32>
    %1202 = arith.addf %1201, %1200 : vector<8x96xf32>
    %1203 = arith.divf %1201, %1202 : vector<8x96xf32>
    %1204 = vector.extract_strided_slice %1192 {offsets = [0, 96], sizes = [8, 32], strides = [1, 1]} : vector<8x128xf32> to vector<8x32xf32>
    %1205 = math.tanh %1204 : vector<8x32xf32>
    %1206 = vector.extract_strided_slice %1203 {offsets = [0, 0], sizes = [8, 32], strides = [1, 1]} : vector<8x96xf32> to vector<8x32xf32>
    %1207 = vector.extract_strided_slice %1203 {offsets = [0, 32], sizes = [8, 32], strides = [1, 1]} : vector<8x96xf32> to vector<8x32xf32>
    %1208 = vector.extract_strided_slice %1203 {offsets = [0, 64], sizes = [8, 32], strides = [1, 1]} : vector<8x96xf32> to vector<8x32xf32>
    %1209 = arith.mulf %1207, %1178 : vector<8x32xf32>
    %1210 = arith.mulf %1206, %1205 : vector<8x32xf32>
    %1211 = arith.addf %1209, %1210 : vector<8x32xf32>
    %1212 = math.tanh %1211 : vector<8x32xf32>
    %1213 = arith.mulf %1208, %1212 : vector<8x32xf32>
    %1214 = vector.extract_strided_slice %1197 {offsets = [0, 0], sizes = [8, 96], strides = [1, 1]} : vector<8x128xf32> to vector<8x96xf32>
    %1215 = arith.negf %1214 : vector<8x96xf32>
    %1216 = math.exp %1215 : vector<8x96xf32>
    %cst_270 = arith.constant 1.000000e+00 : f32
    %1217 = vector.broadcast %cst_270 : f32 to vector<8x96xf32>
    %1218 = arith.addf %1217, %1216 : vector<8x96xf32>
    %1219 = arith.divf %1217, %1218 : vector<8x96xf32>
    %1220 = vector.extract_strided_slice %1197 {offsets = [0, 96], sizes = [8, 32], strides = [1, 1]} : vector<8x128xf32> to vector<8x32xf32>
    %1221 = math.tanh %1220 : vector<8x32xf32>
    %1222 = vector.extract_strided_slice %1219 {offsets = [0, 0], sizes = [8, 32], strides = [1, 1]} : vector<8x96xf32> to vector<8x32xf32>
    %1223 = vector.extract_strided_slice %1219 {offsets = [0, 32], sizes = [8, 32], strides = [1, 1]} : vector<8x96xf32> to vector<8x32xf32>
    %1224 = vector.extract_strided_slice %1219 {offsets = [0, 64], sizes = [8, 32], strides = [1, 1]} : vector<8x96xf32> to vector<8x32xf32>
    %1225 = arith.mulf %1223, %1184 : vector<8x32xf32>
    %1226 = arith.mulf %1222, %1221 : vector<8x32xf32>
    %1227 = arith.addf %1225, %1226 : vector<8x32xf32>
    %1228 = math.tanh %1227 : vector<8x32xf32>
    %1229 = arith.mulf %1224, %1228 : vector<8x32xf32>
    %1230 = vector.broadcast %c7_i32_261 : i32 to vector<8x1xi32>
    %1231 = arith.cmpi sgt, %0, %1230 : vector<8x1xi32>
    %1232 = vector.broadcast %1185 : i32 to vector<8x1xi32>
    %1233 = arith.cmpi sgt, %0, %1232 : vector<8x1xi32>
    %1234 = arith.truncf %1213 : vector<8x32xf32> to vector<8x32xbf16>
    %1235 = arith.truncf %1229 : vector<8x32xf32> to vector<8x32xbf16>
    %cst_271 = arith.constant 0.000000e+00 : bf16
    %1236 = vector.broadcast %cst_271 : bf16 to vector<8x32xbf16>
    %1237 = vector.shape_cast %1231 : vector<8x1xi1> to vector<8x1xi1>
    %1238 = vector.broadcast %1237 : vector<8x1xi1> to vector<8x32xi1>
    %1239 = arith.select %1238, %1234, %1236 : vector<8x32xi1>, vector<8x32xbf16>
    %1240 = vector.shape_cast %1239 : vector<8x32xbf16> to vector<1x8x32xbf16>
    %1241 = arith.index_cast %c7_i32_261 : i32 to index
    %c0_272 = arith.constant 0 : index
    %c0_273 = arith.constant 0 : index
    %1242 = vector.load %arg16[%1241, %c0_272, %c0_273] : memref<8x8x32xbf16, #tpu.memory_space<vmem>>, vector<1x8x32xbf16>
    tpu.vector_store %arg16[%1241, %c0_272, %c0_273], %1240 {strides = array<i32>} : memref<8x8x32xbf16, #tpu.memory_space<vmem>>, vector<1x8x32xbf16>,
    %1243 = vector.shape_cast %1233 : vector<8x1xi1> to vector<8x1xi1>
    %1244 = vector.broadcast %1243 : vector<8x1xi1> to vector<8x32xi1>
    %1245 = arith.select %1244, %1235, %1236 : vector<8x32xi1>, vector<8x32xbf16>
    %1246 = vector.shape_cast %1245 : vector<8x32xbf16> to vector<1x8x32xbf16>
    %1247 = arith.index_cast %1185 : i32 to index
    %c0_274 = arith.constant 0 : index
    %c0_275 = arith.constant 0 : index
    %1248 = vector.load %arg17[%1247, %c0_274, %c0_275] : memref<8x8x32xbf16, #tpu.memory_space<vmem>>, vector<1x8x32xbf16>
    tpu.vector_store %arg17[%1247, %c0_274, %c0_275], %1246 {strides = array<i32>} : memref<8x8x32xbf16, #tpu.memory_space<vmem>>, vector<1x8x32xbf16>,
    %1249 = vector.shape_cast %1231 : vector<8x1xi1> to vector<8x1xi1>
    %1250 = vector.broadcast %1249 : vector<8x1xi1> to vector<8x32xi1>
    %1251 = arith.select %1250, %1234, %1175 : vector<8x32xi1>, vector<8x32xbf16>
    %1252 = vector.shape_cast %1231 : vector<8x1xi1> to vector<8x1xi1>
    %1253 = vector.broadcast %1252 : vector<8x1xi1> to vector<8x32xi1>
    %1254 = arith.select %1253, %1211, %1178 : vector<8x32xi1>, vector<8x32xf32>
    %1255 = vector.shape_cast %1233 : vector<8x1xi1> to vector<8x1xi1>
    %1256 = vector.broadcast %1255 : vector<8x1xi1> to vector<8x32xi1>
    %1257 = arith.select %1256, %1235, %1181 : vector<8x32xi1>, vector<8x32xbf16>
    %1258 = vector.shape_cast %1233 : vector<8x1xi1> to vector<8x1xi1>
    %1259 = vector.broadcast %1258 : vector<8x1xi1> to vector<8x32xi1>
    %1260 = arith.select %1259, %1227, %1184 : vector<8x32xi1>, vector<8x32xf32>
    %c8_i32_276 = arith.constant 8 : i32
    %c0_277 = arith.constant 0 : index
    %c0_278 = arith.constant 0 : index
    %c0_279 = arith.constant 0 : index
    %1261 = vector.load %arg16[%c0_277, %c0_278, %c0_279] : memref<8x8x32xbf16, #tpu.memory_space<vmem>>, vector<8x8x32xbf16>
    %1262 = vector.shape_cast %1261 : vector<8x8x32xbf16> to vector<64x32xbf16>
    %c0_280 = arith.constant 0 : index
    %c0_281 = arith.constant 0 : index
    %c0_282 = arith.constant 0 : index
    %1263 = vector.load %arg17[%c0_280, %c0_281, %c0_282] : memref<8x8x32xbf16, #tpu.memory_space<vmem>>, vector<8x8x32xbf16>
    %1264 = vector.shape_cast %1263 : vector<8x8x32xbf16> to vector<64x32xbf16>
    %c0_283 = arith.constant 0 : index
    %c0_284 = arith.constant 0 : index
    %1265 = vector.load %arg11[%c0_283, %c0_284] : memref<64x128xbf16, #tpu.memory_space<vmem>>, vector<64x128xbf16>
    %1266 = vector.extract_strided_slice %1265 {offsets = [0, 0], sizes = [32, 128], strides = [1, 1]} : vector<64x128xbf16> to vector<32x128xbf16>
    %cst_285 = arith.constant dense<0.000000e+00> : vector<64x128xf32>
    %1267 = tpu.matmul %1262, %1266, %cst_285 {dimension_numbers = #tpu.dot_dimension_numbers<[1], [0], [0], [1], [0, 0, 1, 1], [], []>} : vector<64x32xbf16>, vector<32x128xbf16>, vector<64x128xf32> -> vector<64x128xf32>
    %1268 = vector.extract_strided_slice %1265 {offsets = [32, 0], sizes = [32, 128], strides = [1, 1]} : vector<64x128xbf16> to vector<32x128xbf16>
    %cst_286 = arith.constant dense<0.000000e+00> : vector<64x128xf32>
    %1269 = tpu.matmul %1264, %1268, %cst_286 {dimension_numbers = #tpu.dot_dimension_numbers<[1], [0], [0], [1], [0, 0, 1, 1], [], []>} : vector<64x32xbf16>, vector<32x128xbf16>, vector<64x128xf32> -> vector<64x128xf32>
    %1270 = arith.addf %1267, %1269 : vector<64x128xf32>
    %c0_287 = arith.constant 0 : index
    %c0_288 = arith.constant 0 : index
    %1271 = vector.load %arg12[%c0_287, %c0_288] : memref<1x128xf32, #tpu.memory_space<vmem>>, vector<1x128xf32>
    %1272 = vector.broadcast %1271 : vector<1x128xf32> to vector<64x128xf32>
    %1273 = arith.addf %1270, %1272 : vector<64x128xf32>
    %1274 = vector.shape_cast %1273 : vector<64x128xf32> to vector<8x8x128xf32>
    %1275 = arith.truncf %1274 : vector<8x8x128xf32> to vector<8x8x128xbf16>
    %c0_289 = arith.constant 0 : index
    %c0_290 = arith.constant 0 : index
    %c0_291 = arith.constant 0 : index
    %1276 = vector.load %arg13[%c0_289, %c0_290, %c0_291] : memref<8x8x128xbf16, #tpu.memory_space<vmem>>, vector<8x8x128xbf16>
    tpu.vector_store %arg13[%c0_289, %c0_290, %c0_291], %1275 {strides = array<i32>} : memref<8x8x128xbf16, #tpu.memory_space<vmem>>, vector<8x8x128xbf16>,
    return
  }
  func.func @transform_0(%arg0: i32) -> (i32, i32, i32) {
    %c0_i32 = arith.constant 0 : i32
    %c0_i32_0 = arith.constant 0 : i32
    %c0_i32_1 = arith.constant 0 : i32
    return %c0_i32, %arg0, %c0_i32_0 : i32, i32, i32
  }
  func.func @transform_1(%arg0: i32) -> (i32, i32) {
    %c0_i32 = arith.constant 0 : i32
    %c0_i32_0 = arith.constant 0 : i32
    return %arg0, %c0_i32 : i32, i32
  }
  func.func @transform_2(%arg0: i32) -> (i32, i32) {
    %c0_i32 = arith.constant 0 : i32
    %c0_i32_0 = arith.constant 0 : i32
    %c0_i32_1 = arith.constant 0 : i32
    return %c0_i32, %c0_i32_0 : i32, i32
  }
  func.func @transform_3(%arg0: i32) -> (i32, i32) {
    %c0_i32 = arith.constant 0 : i32
    %c0_i32_0 = arith.constant 0 : i32
    %c0_i32_1 = arith.constant 0 : i32
    return %c0_i32, %c0_i32_0 : i32, i32
  }
  func.func @transform_4(%arg0: i32) -> (i32, i32) {
    %c0_i32 = arith.constant 0 : i32
    %c0_i32_0 = arith.constant 0 : i32
    %c0_i32_1 = arith.constant 0 : i32
    return %c0_i32, %c0_i32_0 : i32, i32
  }
  func.func @transform_5(%arg0: i32) -> (i32, i32) {
    %c0_i32 = arith.constant 0 : i32
    %c0_i32_0 = arith.constant 0 : i32
    %c0_i32_1 = arith.constant 0 : i32
    return %c0_i32, %c0_i32_0 : i32, i32
  }
  func.func @transform_6(%arg0: i32) -> (i32, i32) {
    %c0_i32 = arith.constant 0 : i32
    %c0_i32_0 = arith.constant 0 : i32
    %c0_i32_1 = arith.constant 0 : i32
    return %c0_i32, %c0_i32_0 : i32, i32
  }
  func.func @transform_7(%arg0: i32) -> (i32, i32) {
    %c0_i32 = arith.constant 0 : i32
    %c0_i32_0 = arith.constant 0 : i32
    %c0_i32_1 = arith.constant 0 : i32
    return %c0_i32, %c0_i32_0 : i32, i32
  }
  func.func @transform_8(%arg0: i32) -> (i32, i32) {
    %c0_i32 = arith.constant 0 : i32
    %c0_i32_0 = arith.constant 0 : i32
    %c0_i32_1 = arith.constant 0 : i32
    return %c0_i32, %c0_i32_0 : i32, i32
  }
  func.func @transform_9(%arg0: i32) -> (i32, i32) {
    %c0_i32 = arith.constant 0 : i32
    %c0_i32_0 = arith.constant 0 : i32
    %c0_i32_1 = arith.constant 0 : i32
    return %c0_i32, %c0_i32_0 : i32, i32
  }
  func.func @transform_10(%arg0: i32) -> (i32, i32) {
    %c0_i32 = arith.constant 0 : i32
    %c0_i32_0 = arith.constant 0 : i32
    %c0_i32_1 = arith.constant 0 : i32
    return %c0_i32, %c0_i32_0 : i32, i32
  }
  func.func @transform_11(%arg0: i32) -> (i32, i32) {
    %c0_i32 = arith.constant 0 : i32
    %c0_i32_0 = arith.constant 0 : i32
    %c0_i32_1 = arith.constant 0 : i32
    return %c0_i32, %c0_i32_0 : i32, i32
  }
  func.func @transform_12(%arg0: i32) -> (i32, i32, i32) {
    %c0_i32 = arith.constant 0 : i32
    %c0_i32_0 = arith.constant 0 : i32
    %c0_i32_1 = arith.constant 0 : i32
    return %c0_i32, %arg0, %c0_i32_0 : i32, i32, i32
  }
}

</mosaic_0001>

<bundles_post_ra>
// kernel: tpu_custom_call.1
= control target key start
LH: loop header
LB: loop body
LE: loop exit
PB: predicated region body
PF: predicated region fallthrough
CT: control target
= control target key end

     0   :  { %17 = vsyncpa [#allocation7], 0  ;;  %s6566_s0 = inlined_call_operand.hbm [shape: bf16[8,8,32], index: 0, kind: input, shape index: {}]   ;;  %s6567_s1 = inlined_call_operand.vmem [shape: s32[8,1], index: 1, kind: input, shape index: {}]   ;;  %s6568_s2 = inlined_call_operand.hbm [shape: bf16[32,256], index: 2, kind: input, shape index: {}]   ;;  %s6569_s3 = inlined_call_operand.hbm [shape: bf16[32,128], index: 3, kind: input, shape index: {}]   ;;  %s6570_s4 = inlined_call_operand.hbm [shape: bf16[32,128], index: 4, kind: input, shape index: {}]   ;;  %s6571_s5 = inlined_call_operand.vmem [shape: f32[1,256], index: 5, kind: input, shape index: {}]   ;;  %s6572_s6 = inlined_call_operand.hbm [shape: bf16[64,256], index: 6, kind: input, shape index: {}]   ;;  %s6573_s7 = inlined_call_operand.hbm [shape: bf16[32,128], index: 7, kind: input, shape index: {}]   ;;  %s6574_s8 = inlined_call_operand.hbm [shape: bf16[32,128], index: 8, kind: input, shape index: {}]   ;;  %s6575_s9 = inlined_call_operand.vmem [shape: f32[1,256], index: 9, kind: input, shape index: {}]   ;;  %s6576_s10 = inlined_call_operand.vmem [shape: bf16[64,128], index: 10, kind: input, shape index: {}]   ;;  %s6577_s11 = inlined_call_operand.vmem [shape: f32[1,128], index: 11, kind: input, shape index: {}]   ;;  %s6578_s12 = inlined_call_operand.hbm [shape: bf16[8,8,128], index: 12, kind: output, shape index: {}]  }
   0x1   :  { %18 = vsyncpa [#allocation10], 0 }
   0x2   :  { %19 = vsyncpa [#allocation13], 0 }
   0x3   :  { %20 = vsyncpa [#allocation16], 0 }
   0x4   :  { %21 = vsyncpa [#allocation8], 0  ;;  %s5114_s21 = smov [#allocation9]   ;;  %s4928_s25 = scalar_lea.hbm %s6568_s2, 512 }
   0x5   :  { %s41_s22 = sshll.u32 %s5114_s21, 4  ;;  %p4929_p0 = scmp.ne.s32.totalorder %s6568_s2, %s4928_s25  ;;  %s42_s22 = int_to_ptr.vmem [resolvable:$true] %s41_s22 }
   0x6   :  { %p4932_p1 = scmp.lt.u32.totalorder %s4928_s25, %s6568_s2 }
   0x8   :  { %p4934_p2 = pnand %p4932_p1, %p4929_p0 }
   0xa   :  { %4937 = shalt.err (!%p4934_p2)
}
   0xb   :  { %s4938_s30 = scalar_lea.vmem %s42_s22, 512  ;;  %p4943_p4 = scmp.lt.s32.totalorder %s42_s22, %s42_s22 }
   0xc   :  { %p4939_p3 = scmp.ne.s32.totalorder %s42_s22, %s4938_s30  ;;  %p4944_p5 = scmp.lt.s32.totalorder %s4938_s30, %s4938_s30 }
   0xe   :  { %p4945_p6 = por %p4944_p5, %p4943_p4 }
  0x10   :  { %p4946_p7 = pnand %p4945_p6, %p4939_p3 }
  0x12   :  { %4949 = shalt.err (!%p4946_p7)
}
  0x13   :  { %s5115_s13 = smov 128   ;;  %s5116_s14 = smov 8  }
  0x14   :  { %47 = dma.hbm_to_vmem [thread:$0]  %s6568_s2, 512, %s42_s22, [#allocation10], %s5115_s13, %s5115_s13, %s5116_s14  }
  0x15   :  { %s5117_s17 = smov [#allocation12]   ;;  %s5118_s19 = smov [#allocation15]  }
  0x16   :  { %s65_s18 = sshll.u32 %s5117_s17, 4  ;;  %s91_s20 = sshll.u32 %s5118_s19, 4  ;;  %s66_s18 = int_to_ptr.vmem [resolvable:$true] %s65_s18  ;;  %s92_s20 = int_to_ptr.vmem [resolvable:$true] %s91_s20 }
  0x17   :  { %s4950_s24 = scalar_lea.hbm %s6570_s4, 256 }
  0x18   :  { %p4951_p8 = scmp.ne.s32.totalorder %s6570_s4, %s4950_s24  ;;  %p4954_p9 = scmp.lt.u32.totalorder %s4950_s24, %s6570_s4 }
  0x1a   :  { %p4956_p10 = pnand %p4954_p9, %p4951_p8 }
  0x1c   :  { %4959 = shalt.err (!%p4956_p10)
}
  0x1d   :  { %s4960_s2 = scalar_lea.vmem %s66_s18, 256  ;;  %p4965_p12 = scmp.lt.s32.totalorder %s66_s18, %s66_s18 }
  0x1e   :  { %p4961_p11 = scmp.ne.s32.totalorder %s66_s18, %s4960_s2  ;;  %p4966_p13 = scmp.lt.s32.totalorder %s4960_s2, %s4960_s2 }
  0x20   :  { %p4967_p0 = por %p4966_p13, %p4965_p12 }
  0x22   :  { %p4968_p1 = pnand %p4967_p0, %p4961_p11 }
  0x24   :  { %4971 = shalt.err (!%p4968_p1)
}
  0x25   :  { %s5119_s22 = smov 64   ;;  %s5120_s29 = smov 4  }
  0x26   :  { %71 = dma.hbm_to_vmem [thread:$0]  %s6570_s4, 256, %s66_s18, [#allocation13], %s5119_s22, %s5119_s22, %s5120_s29  }
  0x27   :  { %s4972_s19 = scalar_lea.hbm %s6573_s7, 256 }
  0x28   :  { %p4973_p2 = scmp.ne.s32.totalorder %s6573_s7, %s4972_s19  ;;  %p4976_p3 = scmp.lt.u32.totalorder %s4972_s19, %s6573_s7 }
  0x2a   :  { %p4978_p4 = pnand %p4976_p3, %p4973_p2 }
  0x2c   :  { %4981 = shalt.err (!%p4978_p4)
}
  0x2d   :  { %s4982_s26 = scalar_lea.vmem %s92_s20, 256  ;;  %p4987_p6 = scmp.lt.s32.totalorder %s92_s20, %s92_s20 }
  0x2e   :  { %p4983_p5 = scmp.ne.s32.totalorder %s92_s20, %s4982_s26  ;;  %p4988_p7 = scmp.lt.s32.totalorder %s4982_s26, %s4982_s26 }
  0x30   :  { %p4989_p8 = por %p4988_p7, %p4987_p6 }
  0x32   :  { %p4990_p9 = pnand %p4989_p8, %p4983_p5 }
  0x34   :  { %4993 = shalt.err (!%p4990_p9)
}
  0x35   :  { %97 = dma.hbm_to_vmem [thread:$0]  %s6573_s7, 256, %s92_s20, [#allocation16], %s5119_s22, %s5119_s22, %s5120_s29  }
  0x36   :  { %s5121_s27 = smov [#allocation6]   ;;  %s5122_s2 = smov [#allocation11]  }
  0x37   :  { %s27_s28 = sshll.u32 %s5121_s27, 4  ;;  %s53_s30 = sshll.u32 %s5122_s2, 4  ;;  %s28_s28 = int_to_ptr.vmem [resolvable:$true] %s27_s28  ;;  %s54_s30 = int_to_ptr.vmem [resolvable:$true] %s53_s30 }
  0x38   :  { %s4994_s17 = scalar_lea.hbm %s6566_s0, 512 }
  0x39   :  { %p4995_p10 = scmp.ne.s32.totalorder %s6566_s0, %s4994_s17  ;;  %p4998_p11 = scmp.lt.u32.totalorder %s4994_s17, %s6566_s0 }
  0x3b   :  { %p5000_p12 = pnand %p4998_p11, %p4995_p10 }
  0x3d   :  { %5003 = shalt.err (!%p5000_p12)
}
  0x3e   :  { %s5004_s7 = scalar_lea.vmem %s28_s28, 512  ;;  %p5009_p0 = scmp.lt.s32.totalorder %s28_s28, %s28_s28 }
  0x3f   :  { %p5005_p13 = scmp.ne.s32.totalorder %s28_s28, %s5004_s7  ;;  %p5010_p1 = scmp.lt.s32.totalorder %s5004_s7, %s5004_s7 }
  0x41   :  { %p5011_p2 = por %p5010_p1, %p5009_p0 }
  0x43   :  { %p5012_p3 = pnand %p5011_p2, %p5005_p13 }
  0x45   :  { %5015 = shalt.err (!%p5012_p3)
}
  0x46   :  { %33 = dma.hbm_to_vmem [thread:$0]  %s6566_s0, 512, %s28_s28, [#allocation7], %s5119_s22, %s5119_s22, %s5120_s29  }
  0x47   :  { %s5016_s18 = scalar_lea.hbm %s6569_s3, 256 }
  0x48   :  { %p5017_p4 = scmp.ne.s32.totalorder %s6569_s3, %s5016_s18  ;;  %p5020_p5 = scmp.lt.u32.totalorder %s5016_s18, %s6569_s3 }
  0x4a   :  { %p5022_p6 = pnand %p5020_p5, %p5017_p4 }
  0x4c   :  { %5025 = shalt.err (!%p5022_p6)
}
  0x4d   :  { %s5026_s17 = scalar_lea.vmem %s54_s30, 256  ;;  %p5031_p8 = scmp.lt.s32.totalorder %s54_s30, %s54_s30 }
  0x4e   :  { %p5027_p7 = scmp.ne.s32.totalorder %s54_s30, %s5026_s17  ;;  %p5032_p9 = scmp.lt.s32.totalorder %s5026_s17, %s5026_s17 }
  0x50   :  { %p5033_p10 = por %p5032_p9, %p5031_p8 }
  0x52   :  { %p5034_p11 = pnand %p5033_p10, %p5027_p7 }
  0x54   :  { %5037 = shalt.err (!%p5034_p11)
}
  0x55   :  { %59 = dma.hbm_to_vmem [thread:$0]  %s6569_s3, 256, %s54_s30, [#allocation10], %s5119_s22, %s5119_s22, %s5120_s29  }
  0x56   :  { %s5123_s19 = smov [#allocation14]   ;;  %s5124_s23 = smov [#allocation17]  }
  0x57   :  { %s79_s21 = sshll.u32 %s5123_s19, 4  ;;  %s103_s24 = sshll.u32 %s5124_s23, 4  ;;  %s80_s21 = int_to_ptr.vmem [resolvable:$true] %s79_s21  ;;  %s104_s24 = int_to_ptr.vmem [resolvable:$true] %s103_s24 }
  0x58   :  { %s5038_s25 = scalar_lea.hbm %s6572_s6, 1024 }
  0x59   :  { %p5039_p12 = scmp.ne.s32.totalorder %s6572_s6, %s5038_s25  ;;  %p5042_p13 = scmp.lt.u32.totalorder %s5038_s25, %s6572_s6 }
  0x5b   :  { %p5044_p0 = pnand %p5042_p13, %p5039_p12 }
  0x5d   :  { %5047 = shalt.err (!%p5044_p0)
}
  0x5e   :  { %s5048_s3 = scalar_lea.vmem %s80_s21, 1024  ;;  %p5053_p2 = scmp.lt.s32.totalorder %s80_s21, %s80_s21 }
  0x5f   :  { %p5049_p1 = scmp.ne.s32.totalorder %s80_s21, %s5048_s3  ;;  %p5054_p3 = scmp.lt.s32.totalorder %s5048_s3, %s5048_s3 }
  0x61   :  { %p5055_p4 = por %p5054_p3, %p5053_p2 }
  0x63   :  { %p5056_p5 = pnand %p5055_p4, %p5049_p1 }
  0x65   :  { %5059 = shalt.err (!%p5056_p5)
}
  0x66   :  { %85 = dma.hbm_to_vmem [thread:$0]  %s6572_s6, 1024, %s80_s21, [#allocation13], %s5115_s13, %s5115_s13, %s5116_s14  }
  0x67   :  { %s5060_s17 = scalar_lea.hbm %s6574_s8, 256 }
  0x68   :  { %p5061_p6 = scmp.ne.s32.totalorder %s6574_s8, %s5060_s17  ;;  %p5064_p7 = scmp.lt.u32.totalorder %s5060_s17, %s6574_s8 }
  0x6a   :  { %p5066_p8 = pnand %p5064_p7, %p5061_p6 }
  0x6c   :  { %5069 = shalt.err (!%p5066_p8)
}
  0x6d   :  { %s5070_s7 = scalar_lea.vmem %s104_s24, 256  ;;  %p5075_p10 = scmp.lt.s32.totalorder %s104_s24, %s104_s24 }
  0x6e   :  { %p5071_p9 = scmp.ne.s32.totalorder %s104_s24, %s5070_s7  ;;  %p5076_p11 = scmp.lt.s32.totalorder %s5070_s7, %s5070_s7 }
  0x70   :  { %p5077_p12 = por %p5076_p11, %p5075_p10 }
  0x72   :  { %p5078_p13 = pnand %p5077_p12, %p5071_p9 }
  0x74   :  { %5081 = shalt.err (!%p5078_p13)
}
  0x75   :  { %109 = dma.hbm_to_vmem [thread:$0]  %s6574_s8, 256, %s104_s24, [#allocation16], %s5119_s22, %s5119_s22, %s5120_s29  }
  0x76   :  { %5104 = dma.done.wait [#allocation7], 512  }
  0x77   :  { %5105 = vsyncadd [#allocation7], 4294966784 }
  0x78   :  { %5106 = dma.done.wait [#allocation10], 768  }
  0x79   :  { %5107 = vsyncadd [#allocation10], 4294966528 }
  0x7a   :  { %5108 = dma.done.wait [#allocation13], 1280  }
  0x7b   :  { %5109 = vsyncadd [#allocation13], 4294966016 }
  0x7c   :  { %5110 = dma.done.wait [#allocation16], 512  }
  0x7d   :  { %5111 = vsyncadd [#allocation16], 4294966784  ;;  %v5125_v0 = vmov 0   ;;  %v4614_v1 = vld [vmem:[#allocation9 + $0x4] ss:$8 sps:$4 sm:$0xff]   ;;  %v4621_v6 = vld [vmem:[#allocation6 + $0x10] sm:$0xff]   ;;  %v161_v13 = vlaneseq }
  0x7e   :  { %256 = vmatprep.mubr.bf16.mxu0 %v5125_v0  ;;  %276 = vmatprep.mubr.bf16.mxu1 %v5125_v0  ;;  %v4616_v2 = vld [vmem:[#allocation9] ss:$8 sps:$4 sm:$0xff]   ;;  %v4617_v3 = vld [vmem:[#allocation9 + $0x14] ss:$8 sps:$4 sm:$0xff]   ;;  %v4619_v4 = vld [vmem:[#allocation9 + $0x10] ss:$8 sps:$4 sm:$0xff]  }
  0x7f   :  { %4612 = vset.pattern.permute.xlu0 %v5125_v0  ;;  %4613 = vset.pattern.permute.xlu1 %v5125_v0  ;;  %v4620_v5 = vld [vmem:[#allocation6] sm:$0xff]   ;;  %vm211_vm0 = vcmask 261120   ;;  %v5126_v8 = vmov 0.0   ;;  %v5308_v9 = vld [vmem:[#allocation11 + $0x8] sm:$0xff]   ;;  %v4623_v10 = vld [vmem:[#allocation6 + $0x18] sm:$0xff]   ;;  %vm5127_vm1 = vmmov 0  }
  0x80   :  { %224 = vmatprep.subr.bf16.mxu0 %v4614_v1  ;;  %4568 = vmatprep.subr.bf16.mxu1 %v4614_v1  ;;  %v5304_v7 = vld [vmem:[#allocation11] sm:$0xff]   ;;  %v5325_v11 = vld [vmem:[#allocation12] sm:$0xff]   ;;  %v5329_v12 = vld [vmem:[#allocation12 + $0x8] sm:$0xff]   ;;  %v5343_v14 = vshrl.u32 %v161_v13, 7  ;;  %s5129_s15 = smov [#allocation18]  }
  0x81   :  { %225 = vmatpush1.bf16.msra.mxu0 %v4616_v2  ;;  %4570 = vmatpush1.bf16.msra.mxu1 %v4616_v2  ;;  %v151_v16 = vld [vmem:[%s6571_s5] sm:$0x3]  ;;  %s5128_s5 = smov 32   ;;  %s3829_s16 = sshll.u32 %s5129_s15, 4  ;;  %s3830_s16 = int_to_ptr.vmem [resolvable:$true] %s3829_s16 }
  0x82   :  { %226 = vmatprep.subr.bf16.mxu0 %v4617_v3  ;;  %4569 = vmatprep.subr.bf16.mxu1 %v4617_v3  ;;  %v163_v15 = vsub.s32 0, %v5343_v14  ;;  %v167_v17 = vsub.s32 1, %v5343_v14  ;;  %v5380_v2 = vld [vmem:[%s6567_s1] sm:$0xff]  ;;  %p5087_p1 = scmp.lt.s32.totalorder %s3830_s16, %s3830_s16 }
  0x83   :  { %vm539_vm2 = vcmp.gt.s32.totalorder %v5380_v2, 0  ;;  %vm540_vm3 = vcmp.gt.s32.totalorder %v5380_v2, 7  ;;  %vm722_vm8 = vcmp.gt.s32.totalorder %v5380_v2, 6  ;;  %vm721_vm9 = vcmp.gt.s32.totalorder %v5380_v2, 1 }
  0x84   :  { %v5352_v18 = vrot.slane %v151_v16, %v163_v15  ;;  %v5356_v21 = vrot.slane %v151_v16, %v167_v17  ;;  %vm908_vm14 = vcmp.gt.s32.totalorder %v5380_v2, 5  ;;  %vm907_vm15 = vcmp.gt.s32.totalorder %v5380_v2, 2 }
  0x85   :  { %227 = vmatpush1.bf16.msra.mxu0 %v4619_v4  ;;  %4571 = vmatpush1.bf16.msra.mxu1 %v4619_v4  ;;  %v543_v4 = vsel %vm539_vm2, 1, %v5125_v0 }
  0x86   :  { %4288 = vmatprep.subr.bf16.mxu1 %v5126_v8  ;;  %4320 = vmatprep.subr.bf16.mxu0 %v5126_v8 }
  0x88   :  { %3852 = vmatmul.mubr.msk.bf16.vlgmr.msra.gmra.mrb[0].mxu0 %vm211_vm0, %v4620_v5  ;;  %3854 = vmatmul.mubr.msk.bf16.vlgmr.msra.gmra.mrb[0].mxu1 %vm211_vm0, %v4621_v6 }
  0x89   :  { %4289 = vmatpush3.bf16.msra.mxu1 %v5304_v7  ;;  %286 = vmatprep.mubr.bf16.mxu1 %v5125_v0 }
  0x8a   :  { %4290 = vmatprep.subr.bf16.mxu1 %v5126_v8  ;;  %266 = vmatprep.mubr.bf16.mxu0 %v5125_v0 }
  0x8b   :  { %4321 = vmatpush3.bf16.msra.mxu0 %v5304_v7 }
  0x8c   :  { %4322 = vmatprep.subr.bf16.mxu0 %v5126_v8 }
  0x8d   :  { %4291 = vmatpush3.bf16.msra.mxu1 %v5308_v9 }
  0x8e   :  { %4296 = vmatprep.subr.bf16.mxu1 %v5126_v8 }
  0x8f   :  { %4323 = vmatpush3.bf16.msra.mxu0 %v5308_v9 }
  0x90   :  { %3855 = vmatmul.mubr.msk.bf16.gmra.mrb[4].mxu1 %vm211_vm0, %v4623_v10  ;;  %4336 = vmatprep.subr.bf16.mxu0 %v5126_v8 }
  0x91   :  { %4292 = vmatprep.mubr.msk.bf16.mxu1 %vm5127_vm1, %v5126_v8 }
  0x98   :  { %4293 = vmatmul.mubr.bf16.vlgmr.msra.gmra.mrb[8].mxu1 %v5125_v0 }
  0x99   :  { %4297 = vmatpush3.bf16.msra.mxu1 %v5325_v11  ;;  %4300 = vmatprep.mubr.msk.bf16.mxu1 %vm5127_vm1, %v5126_v8 }
  0x9a   :  { %4298 = vmatprep.subr.bf16.mxu1 %v5126_v8 }
  0x9d   :  { %4299 = vmatpush3.bf16.msra.mxu1 %v5329_v12 }
  0x9e   :  { %4304 = vmatprep.subr.bf16.mxu1 %v5126_v8 }
  0xa0   :  { %4301 = vmatmul.mubr.bf16.vlgmr.msra.gmra.mrb[12].mxu1 %v5125_v0 }
  0xa1   :  { %4305 = vmatpush3.bf16.msra.mxu1 %v5304_v7  ;;  %4308 = vmatprep.mubr.msk.bf16.mxu1 %vm5127_vm1, %v5126_v8 }
  0xa2   :  { %4306 = vmatprep.subr.bf16.mxu1 %v5126_v8 }
  0xa5   :  { %4307 = vmatpush3.bf16.msra.mxu1 %v5308_v9 }
  0xa6   :  { %4312 = vmatprep.subr.bf16.mxu1 %v5126_v8 }
 0x15b   :  { %v258_v19 = vpop.f32.mrb[0].mxu0  ;;  %v278_v20 = vpop.f32.mrb[0].mxu1 }
 0x15c   :  { %v260_v22 = vpop.f32.mrb[1].mxu0  ;;  %v280_v23 = vpop.f32.mrb[1].mxu1  ;;  %v259_v26 = vadd.f32 %v258_v19, %v5352_v18  ;;  %v279_v27 = vadd.f32 %v278_v20, %v5352_v18 }
 0x15d   :  { %v262_v24 = vpop.f32.mrb[2].mxu0  ;;  %v282_v25 = vpop.f32.mrb[2].mxu1  ;;  %v261_v32 = vadd.f32 %v260_v22, %v5356_v21  ;;  %v281_v33 = vadd.f32 %v280_v23, %v5356_v21 }
 0x15e   :  { %v263_v28 = vadd.f32 %v262_v24, %v5352_v18  ;;  %v283_v29 = vadd.f32 %v282_v25, %v5352_v18  ;;  %v264_v30 = vpop.f32.mrb[3].mxu0  ;;  %v284_v31 = vpop.f32.mrb[3].mxu1 }
 0x15f   :  { %v265_v34 = vadd.f32 %v264_v30, %v5356_v21  ;;  %v285_v35 = vadd.f32 %v284_v31, %v5356_v21 }
 0x160   :  { %v4068_v36 = vpack.c.bf16 %v263_v28, %v259_v26  ;;  %v4078_v37 = vpack.c.bf16 %v283_v29, %v279_v27 }
 0x161   :  { %v4088_v38 = vpack.c.bf16 %v265_v34, %v261_v32  ;;  %v4098_v39 = vpack.c.bf16 %v285_v35, %v281_v33  ;;  %v558_v34 = vsel %vm540_vm3, 1, %v5125_v0 }
 0x162   :  { %4069 = vst [vmem:[#allocation2] sm:$0xff] %v4068_v36   ;;  %4166 = vst [vmem:[#allocation2 + $0x10] sm:$0xff] %v4078_v37  }
 0x163   :  { %4089 = vst [vmem:[#allocation3] sm:$0xff] %v4088_v38   ;;  %4169 = vst [vmem:[#allocation3 + $0x10] sm:$0xff] %v4098_v39   ;;  %v288_v40 = vpop.f32.mrb[4].mxu1 }
 0x164   :  { %v290_v41 = vpop.f32.mrb[5].mxu1  ;;  %v289_v43 = vadd.f32 %v288_v40, %v5352_v18 }
 0x165   :  { %v292_v42 = vpop.f32.mrb[6].mxu1  ;;  %v291_v46 = vadd.f32 %v290_v41, %v5356_v21 }
 0x166   :  { %v293_v44 = vadd.f32 %v292_v42, %v5352_v18  ;;  %v294_v45 = vpop.f32.mrb[7].mxu1 }
 0x167   :  { %v295_v47 = vadd.f32 %v294_v45, %v5356_v21 }
 0x168   :  { %v4083_v48 = vpack.c.bf16 %v293_v44, %v289_v43 }
 0x169   :  { %v4103_v49 = vpack.c.bf16 %v295_v47, %v291_v46  ;;  %v5370_v50 = vld [vmem:[#allocation2] sm:$0xff]  }
 0x16a   :  { %4167 = vst [vmem:[#allocation2 + $0x18] sm:$0xff] %v4083_v48   ;;  %v485_v51 = vunpack.c.l.bf16 %v5370_v50 }
 0x16b   :  { %4170 = vst [vmem:[#allocation3 + $0x18] sm:$0xff] %v4103_v49   ;;  %v426_v52 = vpop.f32.mrb[8].mxu1 }
 0x16c   :  { %v486_v53 = vadd.f32 %v485_v51, %v426_v52  ;;  %v4294_v54 = vpop.f32.mrb[9].mxu1  ;;  %v667_v51 = vunpack.c.h.bf16 %v5370_v50 }
 0x16d   :  { %v429_v55 = vpop.f32.mrb[10].mxu1 }
 0x16e   :  { %4664 = vtanh.f32 %v486_v53  ;;  %v4295_v56 = vpop.f32.mrb[11].mxu1  ;;  %v3876_v5 = vmul.f32 -1.442695, %v486_v53 }
 0x172   :  { %v5373_v57 = vld [vmem:[#allocation3 + $0x18] sm:$0xff]  }
 0x173   :  { %v478_v58 = vpop.f32.mrb[12].mxu1  ;;  %v489_v59 = vunpack.c.h.bf16 %v5373_v57 }
 0x174   :  { %v4302_v60 = vpop.f32.mrb[13].mxu1 }
 0x175   :  { %v490_v61 = vadd.f32 %v489_v59, %v478_v58  ;;  %v481_v62 = vpop.f32.mrb[14].mxu1  ;;  %v671_v59 = vunpack.c.l.bf16 %v5373_v57 }
 0x176   :  { %v4303_v63 = vpop.f32.mrb[15].mxu1 }
 0x177   :  { %4666 = vtanh.f32 %v490_v61  ;;  %v3877_v6 = vmul.f32 -1.442695, %v490_v61 }
 0x178   :  { %v4665_v1 = vpop.eup %4664  ;;  %4668 = vpow2.f32 %v3876_v5 }
 0x179   :  { %500 = vrot.lane.b32.xlu0 %v4665_v1, %s5128_s5  ;;  %4670 = vpow2.f32 %v3877_v6 }
 0x181   :  { %v4667_v3 = vpop.eup %4666 }
 0x182   :  { %524 = vrot.lane.b32.xlu0 %v4667_v3, %s5128_s5  ;;  %v4669_v10 = vpop.eup %4668 }
 0x183   :  { %v494_v13 = vadd.f32 1.0, %v4669_v10  ;;  %v4671_v16 = vpop.eup %4670 }
 0x184   :  { %v518_v19 = vadd.f32 1.0, %v4671_v16 }
 0x185   :  { %4672 = vrcp.f32 %v494_v13 }
 0x186   :  { %545 = vperm.xlu0 %4612, %v543_v4   ;;  %4674 = vrcp.f32 %v518_v19 }
 0x18f   :  { %v4673_v20 = vpop.eup %4672 }
 0x190   :  { %v4675_v24 = vpop.eup %4674  ;;  %v498_v27 = vmul.f32 0.0, %v4673_v20 }
 0x191   :  { %v522_v30 = vmul.f32 0.0, %v4675_v24 }
 0x1eb   :  { %v501_v22 = vpop.permute.xlu0 %500 }
 0x1ec   :  { %v503_v23 = vmul.f32 %v4673_v20, %v501_v22 }
 0x1ee   :  { %505 = vrot.lane.b32.xlu1 %v503_v23, %s5128_s5 }
 0x1f4   :  { %v525_v25 = vpop.permute.xlu0 %524 }
 0x1f5   :  { %v527_v26 = vmul.f32 %v4675_v24, %v525_v25  ;;  %v725_v25 = vsel %vm721_vm9, 1, %v5125_v0 }
 0x1f7   :  { %529 = vrot.lane.b32.xlu1 %v527_v26, %s5128_s5 }
 0x205   :  { %v5397_v36 = vpop.permute.xlu0 %545 }
 0x206   :  { %vm6580_vm4 = vcmp.eq.s32.totalorder %v5397_v36, 1 }
 0x207   :  { %vm5403_vm5 = vmpackc.low %vm6580_vm4, %vm6580_vm4 }
 0x260   :  { %v506_v28 = vpop.permute.xlu1 %505 }
 0x261   :  { %v5387_v29 = vadd.f32 %v506_v28, %v498_v27 }
 0x263   :  { %4676 = vtanh.f32 %v5387_v29  ;;  %v5462_v28 = vsel %vm6580_vm4, %v5387_v29, 0.0 }
 0x269   :  { %v530_v31 = vpop.permute.xlu1 %529 }
 0x26a   :  { %v5390_v32 = vadd.f32 %v530_v31, %v522_v30 }
 0x26c   :  { %4678 = vtanh.f32 %v5390_v32 }
 0x26d   :  { %v4677_v33 = vpop.eup %4676 }
 0x26e   :  { %511 = vrot.lane.b32.xlu1 %v4677_v33, %s5128_s5 }
 0x272   :  { %560 = vperm.xlu1 %4613, %v558_v34  }
 0x276   :  { %v4679_v35 = vpop.eup %4678 }
 0x277   :  { %535 = vrot.lane.b32.xlu0 %v4679_v35, %s5128_s5 }
 0x2e0   :  { %v512_v37 = vpop.permute.xlu1 %511 }
 0x2e1   :  { %v514_v38 = vmul.f32 %v4673_v20, %v512_v37 }
 0x2e3   :  { %v541_v40 = vpack.c.bf16 %v514_v38, %v514_v38 }
 0x2e5   :  { %v5409_v41 = vsel %vm5403_vm5, %v541_v40, 0 }
 0x2e6   :  { %575 = vrot.lane.b32.xlu1 %v5409_v41, %s5119_s22 }
 0x2e9   :  { %v536_v42 = vpop.permute.xlu0 %535 }
 0x2ea   :  { %v538_v43 = vmul.f32 %v4675_v24, %v536_v42  ;;  %v740_v24 = vsel %vm722_vm8, 1, %v5125_v0 }
 0x2ec   :  { %v542_v45 = vpack.c.bf16 %v538_v43, %v538_v43 }
 0x2f1   :  { %v5413_v44 = vpop.permute.xlu1 %560 }
 0x2f2   :  { %vm6579_vm6 = vcmp.eq.s32.totalorder %v5413_v44, 1 }
 0x2f3   :  { %vm5419_vm7 = vmpackc.low %vm6579_vm6, %vm6579_vm6  ;;  %v5456_v26 = vsel %vm6579_vm6, %v5390_v32, 0.0  ;;  %v4627_v32 = vld [vmem:[#allocation6 + $0x8] sm:$0xff]  }
 0x2f4   :  { %v5425_v47 = vsel %vm5419_vm7, %v542_v45, 0  ;;  %3853 = vmatmul.mubr.msk.bf16.gmra.mrb[4].mxu0 %vm211_vm0, %v4627_v32 }
 0x2f5   :  { %620 = vrot.lane.b32.xlu0 %v5425_v47, %s5119_s22  ;;  %4324 = vmatprep.mubr.msk.bf16.mxu0 %vm5127_vm1, %v5126_v8 }
 0x358   :  { %v576_v48 = vpop.permute.xlu1 %575 }
 0x359   :  { %4309 = vmatmul.mubr.msk.bf16.vlgmr.msra.gmra.mrb[16].mxu1 %vm211_vm0, %v576_v48 }
 0x35a   :  { %4313 = vmatpush3.bf16.msra.mxu1 %v5325_v11  ;;  %4316 = vmatprep.mubr.msk.bf16.mxu1 %vm5127_vm1, %v5126_v8 }
 0x35b   :  { %4314 = vmatprep.subr.bf16.mxu1 %v5126_v8 }
 0x35e   :  { %4315 = vmatpush3.bf16.msra.mxu1 %v5329_v12 }
 0x35f   :  { %4328 = vmatprep.subr.bf16.mxu1 %v5126_v8 }
 0x367   :  { %v621_v49 = vpop.permute.xlu0 %620 }
 0x368   :  { %4317 = vmatmul.mubr.msk.bf16.vlgmr.msra.gmra.mrb[20].mxu1 %vm211_vm0, %v621_v49 }
 0x369   :  { %4329 = vmatpush3.bf16.msra.mxu1 %v5325_v11  ;;  %4332 = vmatprep.mubr.msk.bf16.mxu1 %vm5127_vm1, %v5126_v8 }
 0x36a   :  { %4330 = vmatprep.subr.bf16.mxu1 %v5126_v8 }
 0x36d   :  { %4331 = vmatpush3.bf16.msra.mxu1 %v5329_v12 }
 0x36e   :  { %4344 = vmatprep.subr.bf16.mxu1 %v5126_v8 }
 0x42c   :  { %v614_v52 = vpop.f32.mrb[16].mxu1 }
 0x42d   :  { %v668_v53 = vadd.f32 %v667_v51, %v614_v52  ;;  %v4310_v54 = vpop.f32.mrb[17].mxu1 }
 0x42e   :  { %v617_v55 = vpop.f32.mrb[18].mxu1 }
 0x42f   :  { %4680 = vtanh.f32 %v668_v53  ;;  %v4311_v56 = vpop.f32.mrb[19].mxu1  ;;  %v3882_v50 = vmul.f32 -1.442695, %v668_v53 }
 0x430   :  { %v268_v56 = vpop.f32.mrb[4].mxu0 }
 0x439   :  { %v4681_v58 = vpop.eup %4680 }
 0x43a   :  { %682 = vrot.lane.b32.xlu0 %v4681_v58, %s5128_s5  ;;  %v269_v58 = vadd.f32 %v268_v56, %v5352_v18 }
 0x43b   :  { %v659_v60 = vpop.f32.mrb[20].mxu1 }
 0x43c   :  { %v672_v61 = vadd.f32 %v671_v59, %v659_v60  ;;  %v4318_v62 = vpop.f32.mrb[21].mxu1  ;;  %v270_v59 = vpop.f32.mrb[5].mxu0 }
 0x43d   :  { %v662_v63 = vpop.f32.mrb[22].mxu1  ;;  %v272_v60 = vpop.f32.mrb[6].mxu0 }
 0x43e   :  { %v4319_v1 = vpop.f32.mrb[23].mxu1  ;;  %4682 = vtanh.f32 %v672_v61  ;;  %v3883_v5 = vmul.f32 -1.442695, %v672_v61  ;;  %v273_v61 = vadd.f32 %v272_v60, %v5352_v18  ;;  %v274_v18 = vpop.f32.mrb[7].mxu0  ;;  %v926_v60 = vsel %vm908_vm14, 1, %v5125_v0 }
 0x43f   :  { %4684 = vpow2.f32 %v3882_v50  ;;  %v275_v50 = vadd.f32 %v274_v18, %v5356_v21  ;;  %vm1094_vm14 = vcmp.gt.s32.totalorder %v5380_v2, 4 }
 0x440   :  { %4686 = vpow2.f32 %v3883_v5  ;;  %v4073_v62 = vpack.c.bf16 %v273_v61, %v269_v58  ;;  %v5534_v5 = vld [vmem:[#allocation3 + $0x10] sm:$0xff]  }
 0x442   :  { %4165 = vst [vmem:[#allocation2 + $0x8] sm:$0xff] %v4073_v62   ;;  %v911_v62 = vsel %vm907_vm15, 1, %v5125_v0  ;;  %vm1093_vm15 = vcmp.gt.s32.totalorder %v5380_v2, 3 }
 0x448   :  { %v4683_v3 = vpop.eup %4682 }
 0x449   :  { %706 = vrot.lane.b32.xlu1 %v4683_v3, %s5128_s5  ;;  %v4685_v4 = vpop.eup %4684  ;;  %v271_v3 = vadd.f32 %v270_v59, %v5356_v21 }
 0x44a   :  { %v676_v6 = vadd.f32 1.0, %v4685_v4  ;;  %v4687_v10 = vpop.eup %4686 }
 0x44b   :  { %v700_v19 = vadd.f32 1.0, %v4687_v10  ;;  %v4093_v4 = vpack.c.bf16 %v275_v50, %v271_v3  ;;  %v857_v10 = vunpack.c.h.bf16 %v5534_v5 }
 0x44c   :  { %4688 = vrcp.f32 %v676_v6  ;;  %v5536_v6 = vld [vmem:[#allocation2 + $0x8] sm:$0xff]  }
 0x44d   :  { %4690 = vrcp.f32 %v700_v19  ;;  %4168 = vst [vmem:[#allocation3 + $0x8] sm:$0xff] %v4093_v4   ;;  %v853_v19 = vunpack.c.l.bf16 %v5536_v6 }
 0x456   :  { %v4689_v13 = vpop.eup %4688 }
 0x457   :  { %v4691_v20 = vpop.eup %4690  ;;  %v680_v33 = vmul.f32 %v4689_v13, %v5462_v28 }
 0x458   :  { %v704_v27 = vmul.f32 %v4691_v20, %v5456_v26 }
 0x4ac   :  { %v683_v16 = vpop.permute.xlu0 %682 }
 0x4ad   :  { %v685_v57 = vmul.f32 %v4689_v13, %v683_v16 }
 0x4af   :  { %687 = vrot.lane.b32.xlu0 %v685_v57, %s5128_s5 }
 0x4bb   :  { %v707_v22 = vpop.permute.xlu1 %706 }
 0x4bc   :  { %v709_v23 = vmul.f32 %v4691_v20, %v707_v22 }
 0x4be   :  { %711 = vrot.lane.b32.xlu1 %v709_v23, %s5128_s5 }
 0x4c2   :  { %742 = vperm.xlu1 %4613, %v740_v24  }
 0x4c6   :  { %727 = vperm.xlu1 %4613, %v725_v25  }
 0x521   :  { %v688_v30 = vpop.permute.xlu0 %687 }
 0x522   :  { %v5467_v35 = vadd.f32 %v688_v30, %v680_v33 }
 0x530   :  { %v712_v31 = vpop.permute.xlu1 %711 }
 0x531   :  { %v5465_v34 = vadd.f32 %v712_v31, %v704_v27 }
 0x533   :  { %4692 = vtanh.f32 %v5465_v34 }
 0x534   :  { %4694 = vtanh.f32 %v5467_v35 }
 0x53d   :  { %v4693_v37 = vpop.eup %4692 }
 0x53e   :  { %717 = vrot.lane.b32.xlu0 %v4693_v37, %s5128_s5  ;;  %v4695_v29 = vpop.eup %4694 }
 0x541   :  { %v5476_v38 = vpop.permute.xlu1 %742 }
 0x542   :  { %693 = vrot.lane.b32.xlu0 %v4695_v29, %s5128_s5  ;;  %vm744_vm10 = vcmp.eq.s32.totalorder %v5476_v38, 1 }
 0x543   :  { %vm5486_vm11 = vmpackc.low %vm744_vm10, %vm744_vm10 }
 0x545   :  { %v5479_v43 = vpop.permute.xlu1 %727 }
 0x546   :  { %vm729_vm12 = vcmp.eq.s32.totalorder %v5479_v43, 1 }
 0x547   :  { %vm5504_vm13 = vmpackc.low %vm729_vm12, %vm729_vm12  ;;  %v5561_v50 = vsel %vm729_vm12, %v5467_v35, %v5462_v28 }
 0x5b0   :  { %v718_v40 = vpop.permute.xlu0 %717 }
 0x5b1   :  { %v720_v42 = vmul.f32 %v4691_v20, %v718_v40 }
 0x5b3   :  { %v5481_v45 = vpack.c.bf16 %v720_v42, %v720_v42 }
 0x5b4   :  { %v694_v49 = vpop.permute.xlu0 %693 }
 0x5b5   :  { %v696_v51 = vmul.f32 %v4689_v13, %v694_v49  ;;  %v5495_v52 = vsel %vm5486_vm11, %v5481_v45, %v5425_v47 }
 0x5b6   :  { %806 = vrot.lane.b32.xlu1 %v5495_v52, %s5119_s22 }
 0x5b7   :  { %v5499_v53 = vpack.c.bf16 %v696_v51, %v696_v51 }
 0x5b9   :  { %v5512_v55 = vsel %vm5504_vm13, %v5499_v53, %v5409_v41 }
 0x5ba   :  { %760 = vrot.lane.b32.xlu0 %v5512_v55, %s5119_s22 }
 0x628   :  { %v807_v63 = vpop.permute.xlu1 %806 }
 0x629   :  { %4333 = vmatmul.mubr.msk.bf16.vlgmr.msra.gmra.mrb[24].mxu1 %vm211_vm0, %v807_v63  ;;  %v5552_v63 = vsel %vm744_vm10, %v5465_v34, %v5456_v26 }
 0x62a   :  { %4345 = vmatpush3.bf16.msra.mxu1 %v5325_v11  ;;  %4348 = vmatprep.mubr.msk.bf16.mxu1 %vm5127_vm1, %v5126_v8 }
 0x62b   :  { %4346 = vmatprep.subr.bf16.mxu1 %v5126_v8 }
 0x62c   :  { %v761_v1 = vpop.permute.xlu0 %760 }
 0x62d   :  { %4325 = vmatmul.mubr.msk.bf16.vlgmr.msra.gmra.mrb[8].mxu0 %vm211_vm0, %v761_v1 }
 0x62e   :  { %4337 = vmatpush3.bf16.msra.mxu0 %v5304_v7  ;;  %4347 = vmatpush3.bf16.msra.mxu1 %v5329_v12 }
 0x62f   :  { %4338 = vmatprep.subr.bf16.mxu0 %v5126_v8  ;;  %4340 = vmatprep.mubr.msk.bf16.mxu0 %vm5127_vm1, %v5126_v8 }
 0x630   :  { %4360 = vmatprep.subr.bf16.mxu1 %v5126_v8 }
 0x632   :  { %4339 = vmatpush3.bf16.msra.mxu0 %v5308_v9 }
 0x633   :  { %4352 = vmatprep.subr.bf16.mxu0 %v5126_v8 }
 0x6fc   :  { %v845_v13 = vpop.f32.mrb[24].mxu1 }
 0x6fd   :  { %v858_v16 = vadd.f32 %v857_v10, %v845_v13  ;;  %v4334_v57 = vpop.f32.mrb[25].mxu1 }
 0x6fe   :  { %v848_v20 = vpop.f32.mrb[26].mxu1 }
 0x6ff   :  { %4696 = vtanh.f32 %v858_v16  ;;  %v4335_v22 = vpop.f32.mrb[27].mxu1  ;;  %v3889_v33 = vmul.f32 -1.442695, %v858_v16 }
 0x700   :  { %v799_v23 = vpop.f32.mrb[8].mxu0 }
 0x701   :  { %v854_v24 = vadd.f32 %v853_v19, %v799_v23  ;;  %v4326_v25 = vpop.f32.mrb[9].mxu0 }
 0x702   :  { %v802_v21 = vpop.f32.mrb[10].mxu0 }
 0x703   :  { %4698 = vtanh.f32 %v854_v24  ;;  %v4327_v27 = vpop.f32.mrb[11].mxu0  ;;  %v3888_v32 = vmul.f32 -1.442695, %v854_v24 }
 0x704   :  { %4700 = vpow2.f32 %v3889_v33 }
 0x705   :  { %4702 = vpow2.f32 %v3888_v32 }
 0x709   :  { %v4697_v30 = vpop.eup %4696 }
 0x70a   :  { %892 = vrot.lane.b32.xlu1 %v4697_v30, %s5128_s5 }
 0x70d   :  { %v4699_v31 = vpop.eup %4698 }
 0x70e   :  { %868 = vrot.lane.b32.xlu0 %v4699_v31, %s5128_s5  ;;  %v4701_v37 = vpop.eup %4700 }
 0x70f   :  { %v886_v29 = vadd.f32 1.0, %v4701_v37  ;;  %v4703_v40 = vpop.eup %4702 }
 0x710   :  { %v862_v42 = vadd.f32 1.0, %v4703_v40  ;;  %v1039_v40 = vunpack.c.h.bf16 %v5536_v6 }
 0x711   :  { %4704 = vrcp.f32 %v886_v29 }
 0x712   :  { %4706 = vrcp.f32 %v862_v42 }
 0x71b   :  { %v4705_v49 = vpop.eup %4704 }
 0x71c   :  { %v4707_v58 = vpop.eup %4706  ;;  %v890_v1 = vmul.f32 %v4705_v49, %v5552_v63 }
 0x71d   :  { %v866_v4 = vmul.f32 %v4707_v58, %v5561_v50 }
 0x77c   :  { %v893_v51 = vpop.permute.xlu1 %892 }
 0x77d   :  { %v895_v56 = vmul.f32 %v4705_v49, %v893_v51 }
 0x77f   :  { %897 = vrot.lane.b32.xlu1 %v895_v56, %s5128_s5 }
 0x780   :  { %v869_v59 = vpop.permute.xlu0 %868 }
 0x781   :  { %v871_v61 = vmul.f32 %v4707_v58, %v869_v59 }
 0x783   :  { %928 = vperm.xlu1 %4613, %v926_v60   ;;  %873 = vrot.lane.b32.xlu0 %v871_v61, %s5128_s5 }
 0x787   :  { %913 = vperm.xlu1 %4613, %v911_v62  }
 0x7f1   :  { %v898_v18 = vpop.permute.xlu1 %897 }
 0x7f2   :  { %v5555_v3 = vadd.f32 %v898_v18, %v890_v1 }
 0x7f4   :  { %4708 = vtanh.f32 %v5555_v3 }
 0x7f5   :  { %v874_v10 = vpop.permute.xlu0 %873 }
 0x7f6   :  { %v5565_v13 = vadd.f32 %v874_v10, %v866_v4 }
 0x7f8   :  { %4710 = vtanh.f32 %v5565_v13 }
 0x7fe   :  { %v4709_v26 = vpop.eup %4708 }
 0x7ff   :  { %903 = vrot.lane.b32.xlu0 %v4709_v26, %s5128_s5 }
 0x802   :  { %v4711_v34 = vpop.eup %4710  ;;  %v5570_v16 = vpop.permute.xlu1 %928 }
 0x803   :  { %879 = vrot.lane.b32.xlu0 %v4711_v34, %s5128_s5  ;;  %vm930_vm2 = vcmp.eq.s32.totalorder %v5570_v16, 1 }
 0x804   :  { %vm5580_vm3 = vmpackc.low %vm930_vm2, %vm930_vm2 }
 0x806   :  { %v5573_v35 = vpop.permute.xlu1 %913 }
 0x807   :  { %vm915_vm8 = vcmp.eq.s32.totalorder %v5573_v35, 1 }
 0x808   :  { %vm5598_vm9 = vmpackc.low %vm915_vm8, %vm915_vm8  ;;  %v5647_v2 = vsel %vm915_vm8, %v5565_v13, %v5561_v50 }
 0x871   :  { %v904_v57 = vpop.permute.xlu0 %903 }
 0x872   :  { %v906_v28 = vmul.f32 %v4705_v49, %v904_v57 }
 0x874   :  { %v5575_v19 = vpack.c.bf16 %v906_v28, %v906_v28  ;;  %v1112_v28 = vsel %vm1094_vm14, 1, %v5125_v0 }
 0x875   :  { %v880_v22 = vpop.permute.xlu0 %879 }
 0x876   :  { %v882_v23 = vmul.f32 %v4707_v58, %v880_v22  ;;  %v5589_v24 = vsel %vm5580_vm3, %v5575_v19, %v5495_v52 }
 0x877   :  { %992 = vrot.lane.b32.xlu1 %v5589_v24, %s5119_s22 }
 0x878   :  { %v5593_v25 = vpack.c.bf16 %v882_v23, %v882_v23  ;;  %v1097_v23 = vsel %vm1093_vm15, 1, %v5125_v0 }
 0x87a   :  { %v5606_v27 = vsel %vm5598_vm9, %v5593_v25, %v5512_v55  ;;  %v1043_v55 = vunpack.c.l.bf16 %v5534_v5 }
 0x87b   :  { %946 = vrot.lane.b32.xlu0 %v5606_v27, %s5119_s22 }
 0x8e9   :  { %v993_v52 = vpop.permute.xlu1 %992 }
 0x8ea   :  { %4349 = vmatmul.mubr.msk.bf16.vlgmr.msra.gmra.mrb[28].mxu1 %vm211_vm0, %v993_v52  ;;  %v5638_v52 = vsel %vm930_vm2, %v5555_v3, %v5552_v63 }
 0x8eb   :  { %4361 = vmatpush3.bf16.msra.mxu1 %v5325_v11  ;;  %4364 = vmatprep.mubr.msk.bf16.mxu1 %vm5127_vm1, %v5126_v8 }
 0x8ec   :  { %4362 = vmatprep.subr.bf16.mxu1 %v5126_v8 }
 0x8ed   :  { %v947_v30 = vpop.permute.xlu0 %946 }
 0x8ee   :  { %4341 = vmatmul.mubr.msk.bf16.vlgmr.msra.gmra.mrb[12].mxu0 %vm211_vm0, %v947_v30 }
 0x8ef   :  { %4353 = vmatpush3.bf16.msra.mxu0 %v5304_v7  ;;  %4363 = vmatpush3.bf16.msra.mxu1 %v5329_v12 }
 0x8f0   :  { %4354 = vmatprep.subr.bf16.mxu0 %v5126_v8  ;;  %4356 = vmatprep.mubr.msk.bf16.mxu0 %vm5127_vm1, %v5126_v8 }
 0x8f1   :  { %4376 = vmatprep.subr.bf16.mxu1 %v5126_v8 }
 0x8f3   :  { %4355 = vmatpush3.bf16.msra.mxu0 %v5308_v9 }
 0x8f4   :  { %4368 = vmatprep.subr.bf16.mxu0 %v5126_v8 }
 0x9bd   :  { %v1031_v31 = vpop.f32.mrb[28].mxu1 }
 0x9be   :  { %v1044_v33 = vadd.f32 %v1043_v55, %v1031_v31  ;;  %v4350_v32 = vpop.f32.mrb[29].mxu1 }
 0x9bf   :  { %v1034_v37 = vpop.f32.mrb[30].mxu1 }
 0x9c0   :  { %4712 = vtanh.f32 %v1044_v33  ;;  %v4351_v29 = vpop.f32.mrb[31].mxu1  ;;  %v3895_v5 = vmul.f32 -1.442695, %v1044_v33 }
 0x9c1   :  { %v985_v42 = vpop.f32.mrb[12].mxu0 }
 0x9c2   :  { %v1040_v49 = vadd.f32 %v1039_v40, %v985_v42  ;;  %v4342_v51 = vpop.f32.mrb[13].mxu0 }
 0x9c3   :  { %v988_v56 = vpop.f32.mrb[14].mxu0 }
 0x9c4   :  { %4714 = vtanh.f32 %v1040_v49  ;;  %v4343_v58 = vpop.f32.mrb[15].mxu0  ;;  %v3894_v61 = vmul.f32 -1.442695, %v1040_v49 }
 0x9c5   :  { %4716 = vpow2.f32 %v3895_v5 }
 0x9c6   :  { %4718 = vpow2.f32 %v3894_v61 }
 0x9ca   :  { %v4713_v59 = vpop.eup %4712 }
 0x9cb   :  { %1078 = vrot.lane.b32.xlu1 %v4713_v59, %s5128_s5 }
 0x9ce   :  { %v4715_v60 = vpop.eup %4714 }
 0x9cf   :  { %1054 = vrot.lane.b32.xlu0 %v4715_v60, %s5128_s5  ;;  %v4717_v62 = vpop.eup %4716 }
 0x9d0   :  { %v1072_v1 = vadd.f32 1.0, %v4717_v62  ;;  %v4719_v18 = vpop.eup %4718 }
 0x9d1   :  { %v1048_v6 = vadd.f32 1.0, %v4719_v18  ;;  %v5713_v18 = vld [vmem:[#allocation2 + $0x10] sm:$0xff]  }
 0x9d2   :  { %4720 = vrcp.f32 %v1072_v1 }
 0x9d3   :  { %4722 = vrcp.f32 %v1048_v6 }
 0x9dc   :  { %v4721_v4 = vpop.eup %4720 }
 0x9dd   :  { %v4723_v34 = vpop.eup %4722  ;;  %v1076_v30 = vmul.f32 %v4721_v4, %v5638_v52 }
 0x9de   :  { %v1052_v33 = vmul.f32 %v4723_v34, %v5647_v2 }
 0xa3d   :  { %v1079_v10 = vpop.permute.xlu1 %1078 }
 0xa3e   :  { %v1081_v26 = vmul.f32 %v4721_v4, %v1079_v10 }
 0xa40   :  { %1083 = vrot.lane.b32.xlu1 %v1081_v26, %s5128_s5  ;;  %v1225_v26 = vunpack.c.l.bf16 %v5713_v18 }
 0xa41   :  { %v1055_v57 = vpop.permute.xlu0 %1054 }
 0xa42   :  { %v1057_v22 = vmul.f32 %v4723_v34, %v1055_v57 }
 0xa44   :  { %1114 = vperm.xlu1 %4613, %v1112_v28   ;;  %1059 = vrot.lane.b32.xlu0 %v1057_v22, %s5128_s5 }
 0xa48   :  { %1099 = vperm.xlu1 %4613, %v1097_v23  }
 0xab2   :  { %v1084_v55 = vpop.permute.xlu1 %1083 }
 0xab3   :  { %v5641_v31 = vadd.f32 %v1084_v55, %v1076_v30 }
 0xab5   :  { %4724 = vtanh.f32 %v5641_v31 }
 0xab6   :  { %v1060_v32 = vpop.permute.xlu0 %1059 }
 0xab7   :  { %v5651_v37 = vadd.f32 %v1060_v32, %v1052_v33 }
 0xab9   :  { %4726 = vtanh.f32 %v5651_v37 }
 0xabf   :  { %v4725_v63 = vpop.eup %4724 }
 0xac0   :  { %1089 = vrot.lane.b32.xlu0 %v4725_v63, %s5128_s5 }
 0xac3   :  { %v4727_v3 = vpop.eup %4726  ;;  %v5656_v29 = vpop.permute.xlu1 %1114 }
 0xac4   :  { %1065 = vrot.lane.b32.xlu0 %v4727_v3, %s5128_s5  ;;  %vm6581_vm14 = vcmp.eq.s32.totalorder %v5656_v29, 1 }
 0xac5   :  { %vm5666_vm15 = vmpackc.low %vm6581_vm14, %vm6581_vm14 }
 0xac7   :  { %v5659_v13 = vpop.permute.xlu1 %1099 }
 0xac8   :  { %vm6583_vm6 = vcmp.eq.s32.totalorder %v5659_v13, 1 }
 0xac9   :  { %vm5684_vm4 = vmpackc.low %vm6583_vm6, %vm6583_vm6 }
 0xb32   :  { %v1090_v40 = vpop.permute.xlu0 %1089 }
 0xb33   :  { %v1092_v50 = vmul.f32 %v4721_v4, %v1090_v40 }
 0xb35   :  { %v5661_v42 = vpack.c.bf16 %v1092_v50, %v1092_v50 }
 0xb36   :  { %v1066_v51 = vpop.permute.xlu0 %1065 }
 0xb37   :  { %v1068_v56 = vmul.f32 %v4723_v34, %v1066_v51  ;;  %v5675_v58 = vsel %vm5666_vm15, %v5661_v42, %v5589_v24 }
 0xb38   :  { %1178 = vrot.lane.b32.xlu1 %v5675_v58, %s5119_s22 }
 0xb39   :  { %v5679_v59 = vpack.c.bf16 %v1068_v56, %v1068_v56 }
 0xb3b   :  { %v5692_v5 = vsel %vm5684_vm4, %v5679_v59, %v5606_v27  ;;  %v5710_v27 = vld [vmem:[#allocation3 + $0x8] sm:$0xff]  }
 0xb3c   :  { %1132 = vrot.lane.b32.xlu0 %v5692_v5, %s5119_s22  ;;  %v1229_v62 = vunpack.c.h.bf16 %v5710_v27 }
 0xbaa   :  { %v1179_v24 = vpop.permute.xlu1 %1178 }
 0xbab   :  { %4365 = vmatmul.mubr.msk.bf16.vlgmr.msra.gmra.mrb[32].mxu1 %vm211_vm0, %v1179_v24 }
 0xbac   :  { %4377 = vmatpush3.bf16.msra.mxu1 %v5325_v11  ;;  %4380 = vmatprep.mubr.msk.bf16.mxu1 %vm5127_vm1, %v5126_v8 }
 0xbad   :  { %4378 = vmatprep.subr.bf16.mxu1 %v5126_v8 }
 0xbae   :  { %v1133_v61 = vpop.permute.xlu0 %1132 }
 0xbaf   :  { %4357 = vmatmul.mubr.msk.bf16.vlgmr.msra.gmra.mrb[16].mxu0 %vm211_vm0, %v1133_v61 }
 0xbb0   :  { %4369 = vmatpush3.bf16.msra.mxu0 %v5304_v7  ;;  %4379 = vmatpush3.bf16.msra.mxu1 %v5329_v12 }
 0xbb1   :  { %4370 = vmatprep.subr.bf16.mxu0 %v5126_v8  ;;  %4372 = vmatprep.mubr.msk.bf16.mxu0 %vm5127_vm1, %v5126_v8 }
 0xbb2   :  { %4392 = vmatprep.subr.bf16.mxu1 %v5126_v8 }
 0xbb4   :  { %4371 = vmatpush3.bf16.msra.mxu0 %v5308_v9 }
 0xbb5   :  { %4384 = vmatprep.subr.bf16.mxu0 %v5126_v8 }
 0xc7e   :  { %v1217_v1 = vpop.f32.mrb[32].mxu1 }
 0xc7f   :  { %v1230_v7 = vadd.f32 %v1229_v62, %v1217_v1  ;;  %v4366_v6 = vpop.f32.mrb[33].mxu1  ;;  %v5724_v1 = vsel %vm6581_vm14, %v5641_v31, %v5638_v52 }
 0xc80   :  { %v1220_v4 = vpop.f32.mrb[34].mxu1 }
 0xc81   :  { %4728 = vtanh.f32 %v1230_v7  ;;  %v4367_v10 = vpop.f32.mrb[35].mxu1  ;;  %v3901_v55 = vmul.f32 -1.442695, %v1230_v7 }
 0xc82   :  { %v1171_v34 = vpop.f32.mrb[16].mxu0  ;;  %v5733_v10 = vsel %vm6583_vm6, %v5651_v37, %v5647_v2 }
 0xc83   :  { %v1226_v57 = vadd.f32 %v1225_v26, %v1171_v34  ;;  %v4358_v28 = vpop.f32.mrb[17].mxu0 }
 0xc84   :  { %v1174_v9 = vpop.f32.mrb[18].mxu0 }
 0xc85   :  { %4730 = vtanh.f32 %v1226_v57  ;;  %v4359_v22 = vpop.f32.mrb[19].mxu0  ;;  %v3900_v33 = vmul.f32 -1.442695, %v1226_v57 }
 0xc86   :  { %4732 = vpow2.f32 %v3901_v55 }
 0xc87   :  { %4734 = vpow2.f32 %v3900_v33 }
 0xc8b   :  { %v4729_v23 = vpop.eup %4728 }
 0xc8c   :  { %1264 = vrot.lane.b32.xlu1 %v4729_v23, %s5128_s5 }
 0xc8f   :  { %v4731_v30 = vpop.eup %4730 }
 0xc90   :  { %1240 = vrot.lane.b32.xlu0 %v4731_v30, %s5128_s5  ;;  %v4733_v32 = vpop.eup %4732 }
 0xc91   :  { %v1258_v63 = vadd.f32 1.0, %v4733_v32  ;;  %v4735_v3 = vpop.eup %4734  ;;  %v5768_v32 = vld [vmem:[#allocation11] sm:$0xff]  }
 0xc92   :  { %v1234_v40 = vadd.f32 1.0, %v4735_v3 }
 0xc93   :  { %4736 = vrcp.f32 %v1258_v63 }
 0xc94   :  { %4738 = vrcp.f32 %v1234_v40 }
 0xc9d   :  { %v4737_v50 = vpop.eup %4736 }
 0xc9e   :  { %v4739_v24 = vpop.eup %4738  ;;  %v1262_v7 = vmul.f32 %v4737_v50, %v5724_v1 }
 0xc9f   :  { %v1238_v26 = vmul.f32 %v4739_v24, %v5733_v10 }
 0xcfe   :  { %v1265_v51 = vpop.permute.xlu1 %1264 }
 0xcff   :  { %v1267_v56 = vmul.f32 %v4737_v50, %v1265_v51  ;;  %v1397_v51 = vunpack.c.h.bf16 %v5713_v18 }
 0xd01   :  { %1269 = vrot.lane.b32.xlu1 %v1267_v56, %s5128_s5 }
 0xd02   :  { %v1241_v61 = vpop.permute.xlu0 %1240 }
 0xd03   :  { %v1243_v62 = vmul.f32 %v4739_v24, %v1241_v61 }
 0xd05   :  { %1245 = vrot.lane.b32.xlu0 %v1243_v62, %s5128_s5 }
 0xd73   :  { %v1270_v6 = vpop.permute.xlu1 %1269 }
 0xd74   :  { %v5727_v4 = vadd.f32 %v1270_v6, %v1262_v7 }
 0xd76   :  { %4740 = vtanh.f32 %v5727_v4 }
 0xd77   :  { %v1246_v34 = vpop.permute.xlu0 %1245 }
 0xd78   :  { %v5737_v57 = vadd.f32 %v1246_v34, %v1238_v26 }
 0xd7a   :  { %4742 = vtanh.f32 %v5737_v57 }
 0xd80   :  { %v4741_v52 = vpop.eup %4740 }
 0xd81   :  { %1275 = vrot.lane.b32.xlu1 %v4741_v52, %s5128_s5 }
 0xd84   :  { %v4743_v31 = vpop.eup %4742 }
 0xd85   :  { %1251 = vrot.lane.b32.xlu0 %v4743_v31, %s5128_s5 }
 0xdf3   :  { %v1276_v28 = vpop.permute.xlu1 %1275 }
 0xdf4   :  { %v1278_v9 = vmul.f32 %v4737_v50, %v1276_v28 }
 0xdf6   :  { %v5742_v22 = vpack.c.bf16 %v1278_v9, %v1278_v9 }
 0xdf7   :  { %v1252_v2 = vpop.permute.xlu0 %1251 }
 0xdf8   :  { %v1254_v37 = vmul.f32 %v4739_v24, %v1252_v2  ;;  %v5748_v23 = vsel %vm5684_vm4, %v5742_v22, %v5675_v58 }
 0xdf9   :  { %1350 = vrot.lane.b32.xlu1 %v5748_v23, %s5119_s22 }
 0xdfa   :  { %v5752_v30 = vpack.c.bf16 %v1254_v37, %v1254_v37 }
 0xdfc   :  { %v5758_v55 = vsel %vm5666_vm15, %v5752_v30, %v5692_v5  ;;  %v1401_v5 = vunpack.c.l.bf16 %v5710_v27 }
 0xdfd   :  { %1304 = vrot.lane.b32.xlu0 %v5758_v55, %s5119_s22 }
 0xe6b   :  { %v1351_v33 = vpop.permute.xlu1 %1350 }
 0xe6c   :  { %4381 = vmatmul.mubr.msk.bf16.vlgmr.msra.gmra.mrb[36].mxu1 %vm211_vm0, %v1351_v33 }
 0xe6d   :  { %4393 = vmatpush3.bf16.msra.mxu1 %v5325_v11  ;;  %4396 = vmatprep.mubr.msk.bf16.mxu1 %vm5127_vm1, %v5126_v8  ;;  %v5776_v11 = vld [vmem:[#allocation11 + $0x8] sm:$0xff]  }
 0xe6e   :  { %4394 = vmatprep.subr.bf16.mxu1 %v5126_v8 }
 0xe6f   :  { %v1305_v58 = vpop.permute.xlu0 %1304 }
 0xe70   :  { %4373 = vmatmul.mubr.msk.bf16.vlgmr.msra.gmra.mrb[20].mxu0 %vm211_vm0, %v1305_v58 }
 0xe71   :  { %4385 = vmatpush3.bf16.msra.mxu0 %v5768_v32  ;;  %4395 = vmatpush3.bf16.msra.mxu1 %v5329_v12 }
 0xe72   :  { %4386 = vmatprep.subr.bf16.mxu0 %v5126_v8  ;;  %4388 = vmatprep.mubr.msk.bf16.mxu0 %vm5127_vm1, %v5126_v8 }
 0xe73   :  { %4408 = vmatprep.subr.bf16.mxu1 %v5126_v8 }
 0xe75   :  { %4387 = vmatpush3.bf16.msra.mxu0 %v5776_v11 }
 0xe76   :  { %4400 = vmatprep.subr.bf16.mxu0 %v5126_v8 }
 0xf3f   :  { %v1389_v63 = vpop.f32.mrb[36].mxu1 }
 0xf40   :  { %v1402_v3 = vadd.f32 %v1401_v5, %v1389_v63  ;;  %v4382_v40 = vpop.f32.mrb[37].mxu1  ;;  %v5790_v63 = vsel %vm6583_vm6, %v5727_v4, %v5724_v1  ;;  %vm6601_vm6 = vcmp.eq.s32.totalorder %v5413_v44, 1 }
 0xf41   :  { %v1392_v50 = vpop.f32.mrb[38].mxu1 }
 0xf42   :  { %4744 = vtanh.f32 %v1402_v3  ;;  %v4383_v12 = vpop.f32.mrb[39].mxu1  ;;  %v3907_v27 = vmul.f32 -1.442695, %v1402_v3 }
 0xf43   :  { %v1343_v56 = vpop.f32.mrb[20].mxu0  ;;  %v5799_v12 = vsel %vm6581_vm14, %v5737_v57, %v5733_v10  ;;  %vm6582_vm14 = vcmask 257024  }
 0xf44   :  { %v1398_v24 = vadd.f32 %v1397_v51, %v1343_v56  ;;  %v4374_v61 = vpop.f32.mrb[21].mxu0 }
 0xf45   :  { %v1346_v62 = vpop.f32.mrb[22].mxu0 }
 0xf46   :  { %4746 = vtanh.f32 %v1398_v24  ;;  %v4375_v7 = vpop.f32.mrb[23].mxu0  ;;  %v3906_v34 = vmul.f32 -1.442695, %v1398_v24 }
 0xf47   :  { %4748 = vpow2.f32 %v3907_v27 }
 0xf48   :  { %4750 = vpow2.f32 %v3906_v34 }
 0xf4c   :  { %v4745_v6 = vpop.eup %4744 }
 0xf4d   :  { %1436 = vrot.lane.b32.xlu1 %v4745_v6, %s5128_s5 }
 0xf50   :  { %v4747_v26 = vpop.eup %4746 }
 0xf51   :  { %1412 = vrot.lane.b32.xlu0 %v4747_v26, %s5128_s5  ;;  %v4749_v52 = vpop.eup %4748 }
 0xf52   :  { %v1430_v31 = vadd.f32 1.0, %v4749_v52  ;;  %v4751_v28 = vpop.eup %4750  ;;  %v4922_v52 = vld [vmem:[#allocation12] sm:$0xff]  }
 0xf53   :  { %v1406_v18 = vadd.f32 1.0, %v4751_v28 }
 0xf54   :  { %4752 = vrcp.f32 %v1430_v31  ;;  %v5839_v31 = vld [vmem:[#allocation3] sm:$0xff]  }
 0xf55   :  { %4754 = vrcp.f32 %v1406_v18  ;;  %v1573_v28 = vunpack.c.h.bf16 %v5839_v31 }
 0xf5e   :  { %v4753_v9 = vpop.eup %4752 }
 0xf5f   :  { %v4755_v33 = vpop.eup %4754  ;;  %v1434_v3 = vmul.f32 %v4753_v9, %v5790_v63 }
 0xf60   :  { %v1410_v51 = vmul.f32 %v4755_v33, %v5799_v12 }
 0xfbf   :  { %v1437_v2 = vpop.permute.xlu1 %1436 }
 0xfc0   :  { %v1439_v37 = vmul.f32 %v4753_v9, %v1437_v2 }
 0xfc2   :  { %1441 = vrot.lane.b32.xlu1 %v1439_v37, %s5128_s5 }
 0xfc3   :  { %v1413_v58 = vpop.permute.xlu0 %1412 }
 0xfc4   :  { %v1415_v5 = vmul.f32 %v4755_v33, %v1413_v58 }
 0xfc6   :  { %1417 = vrot.lane.b32.xlu0 %v1415_v5, %s5128_s5 }
0x1034   :  { %v1442_v40 = vpop.permute.xlu1 %1441 }
0x1035   :  { %v5793_v50 = vadd.f32 %v1442_v40, %v1434_v3 }
0x1037   :  { %4756 = vtanh.f32 %v5793_v50 }
0x1038   :  { %v1418_v56 = vpop.permute.xlu0 %1417 }
0x1039   :  { %v5803_v24 = vadd.f32 %v1418_v56, %v1410_v51 }
0x103b   :  { %4758 = vtanh.f32 %v5803_v24 }
0x1041   :  { %v4757_v1 = vpop.eup %4756 }
0x1042   :  { %1447 = vrot.lane.b32.xlu1 %v4757_v1, %s5128_s5 }
0x1045   :  { %v4759_v4 = vpop.eup %4758 }
0x1046   :  { %1423 = vrot.lane.b32.xlu0 %v4759_v4, %s5128_s5 }
0x10b4   :  { %v1448_v61 = vpop.permute.xlu1 %1447 }
0x10b5   :  { %v1450_v62 = vmul.f32 %v4753_v9, %v1448_v61  ;;  %v5842_v9 = vld [vmem:[#allocation2 + $0x18] sm:$0xff]  }
0x10b6   :  { %v1569_v58 = vunpack.c.l.bf16 %v5842_v9 }
0x10b7   :  { %v5808_v7 = vpack.c.bf16 %v1450_v62, %v1450_v62 }
0x10b8   :  { %v1424_v10 = vpop.permute.xlu0 %1423 }
0x10b9   :  { %v1426_v57 = vmul.f32 %v4755_v33, %v1424_v10  ;;  %v5814_v6 = vsel %vm5598_vm9, %v5808_v7, %v5748_v23 }
0x10ba   :  { %1522 = vrot.lane.b32.xlu1 %v5814_v6, %s5119_s22 }
0x10bb   :  { %v5818_v26 = vpack.c.bf16 %v1426_v57, %v1426_v57 }
0x10bd   :  { %v5824_v27 = vsel %vm5580_vm3, %v5818_v26, %v5758_v55  ;;  %v4923_v55 = vld [vmem:[#allocation12 + $0x8] sm:$0xff]  }
0x10be   :  { %1476 = vrot.lane.b32.xlu0 %v5824_v27, %s5119_s22 }
0x112c   :  { %v1523_v34 = vpop.permute.xlu1 %1522 }
0x112d   :  { %4397 = vmatmul.mubr.msk.bf16.vlgmr.msra.gmra.mrb[40].mxu1 %vm211_vm0, %v1523_v34 }
0x112e   :  { %4409 = vmatpush3.bf16.msra.mxu1 %v4922_v52  ;;  %4412 = vmatprep.mubr.msk.bf16.mxu1 %vm5127_vm1, %v5126_v8 }
0x112f   :  { %4410 = vmatprep.subr.bf16.mxu1 %v5126_v8 }
0x1130   :  { %v1477_v23 = vpop.permute.xlu0 %1476 }
0x1131   :  { %4389 = vmatmul.mubr.msk.bf16.vlgmr.msra.gmra.mrb[24].mxu0 %vm211_vm0, %v1477_v23 }
0x1132   :  { %4401 = vmatpush3.bf16.msra.mxu0 %v5768_v32  ;;  %4411 = vmatpush3.bf16.msra.mxu1 %v4923_v55 }
0x1133   :  { %4402 = vmatprep.subr.bf16.mxu0 %v5126_v8  ;;  %4404 = vmatprep.mubr.msk.bf16.mxu0 %vm5127_vm1, %v5126_v8 }
0x1134   :  { %4416 = vmatprep.subr.bf16.mxu1 %v5126_v8 }
0x1136   :  { %4403 = vmatpush3.bf16.msra.mxu0 %v5776_v11 }
0x1200   :  { %v1561_v18 = vpop.f32.mrb[40].mxu1 }
0x1201   :  { %v1574_v2 = vadd.f32 %v1573_v28, %v1561_v18  ;;  %v4398_v32 = vpop.f32.mrb[41].mxu1 }
0x1202   :  { %v1564_v37 = vpop.f32.mrb[42].mxu1 }
0x1203   :  { %4760 = vtanh.f32 %v1574_v2  ;;  %v4399_v33 = vpop.f32.mrb[43].mxu1  ;;  %v3913_v4 = vmul.f32 -1.442695, %v1574_v2  ;;  %v5853_v2 = vsel %vm915_vm8, %v5793_v50, %v5790_v63 }
0x1204   :  { %v1515_v5 = vpop.f32.mrb[24].mxu0 }
0x1205   :  { %v1570_v3 = vadd.f32 %v1569_v58, %v1515_v5  ;;  %v4390_v40 = vpop.f32.mrb[25].mxu0  ;;  %v5862_v5 = vsel %vm930_vm2, %v5803_v24, %v5799_v12 }
0x1206   :  { %v1518_v51 = vpop.f32.mrb[26].mxu0 }
0x1207   :  { %4762 = vtanh.f32 %v1570_v3  ;;  %v4391_v11 = vpop.f32.mrb[27].mxu0  ;;  %v3912_v61 = vmul.f32 -1.442695, %v1570_v3 }
0x1208   :  { %4764 = vpow2.f32 %v3913_v4 }
0x1209   :  { %4766 = vpow2.f32 %v3912_v61 }
0x120d   :  { %v4761_v56 = vpop.eup %4760 }
0x120e   :  { %1608 = vrot.lane.b32.xlu1 %v4761_v56, %s5128_s5 }
0x1211   :  { %v4763_v1 = vpop.eup %4762 }
0x1212   :  { %1584 = vrot.lane.b32.xlu0 %v4763_v1, %s5128_s5  ;;  %v4765_v62 = vpop.eup %4764 }
0x1213   :  { %v1602_v10 = vadd.f32 1.0, %v4765_v62  ;;  %v4767_v57 = vpop.eup %4766 }
0x1214   :  { %v1578_v34 = vadd.f32 1.0, %v4767_v57 }
0x1215   :  { %4768 = vrcp.f32 %v1602_v10 }
0x1216   :  { %4770 = vrcp.f32 %v1578_v34 }
0x121f   :  { %v4769_v52 = vpop.eup %4768 }
0x1220   :  { %v4771_v28 = vpop.eup %4770  ;;  %v1606_v37 = vmul.f32 %v4769_v52, %v5853_v2 }
0x1221   :  { %v1582_v3 = vmul.f32 %v4771_v28, %v5862_v5 }
0x1280   :  { %v1609_v23 = vpop.permute.xlu1 %1608 }
0x1281   :  { %v1611_v55 = vmul.f32 %v4769_v52, %v1609_v23 }
0x1283   :  { %1613 = vrot.lane.b32.xlu1 %v1611_v55, %s5128_s5 }
0x1284   :  { %v1585_v18 = vpop.permute.xlu0 %1584 }
0x1285   :  { %v1587_v32 = vmul.f32 %v4771_v28, %v1585_v18 }
0x1287   :  { %1589 = vrot.lane.b32.xlu0 %v1587_v32, %s5128_s5 }
0x12f5   :  { %v1614_v33 = vpop.permute.xlu1 %1613 }
0x12f6   :  { %v5856_v58 = vadd.f32 %v1614_v33, %v1606_v37 }
0x12f8   :  { %4772 = vtanh.f32 %v5856_v58 }
0x12f9   :  { %v1590_v40 = vpop.permute.xlu0 %1589 }
0x12fa   :  { %v5866_v51 = vadd.f32 %v1590_v40, %v1582_v3 }
0x12fc   :  { %4774 = vtanh.f32 %v5866_v51 }
0x1302   :  { %v4773_v63 = vpop.eup %4772 }
0x1303   :  { %1619 = vrot.lane.b32.xlu1 %v4773_v63, %s5128_s5 }
0x1306   :  { %v4775_v50 = vpop.eup %4774 }
0x1307   :  { %1595 = vrot.lane.b32.xlu0 %v4775_v50, %s5128_s5 }
0x1375   :  { %v1620_v11 = vpop.permute.xlu1 %1619 }
0x1376   :  { %v1622_v56 = vmul.f32 %v4769_v52, %v1620_v11 }
0x1378   :  { %v1624_v1 = vpack.c.bf16 %v1622_v56, %v1622_v56 }
0x1379   :  { %v1596_v12 = vpop.permute.xlu0 %1595 }
0x137a   :  { %v1598_v24 = vmul.f32 %v4771_v28, %v1596_v12  ;;  %v1645_v4 = vsel %vm5504_vm13, %v1624_v1, %v5814_v6  ;;  %v1744_v6 = vunpack.c.l.bf16 %v5839_v31  ;;  %v1741_v28 = vunpack.c.h.bf16 %v5842_v9 }
0x137b   :  { %1694 = vrot.lane.b32.xlu1 %v1645_v4, %s5119_s22 }
0x137c   :  { %v5875_v61 = vpack.c.bf16 %v1598_v24, %v1598_v24 }
0x137e   :  { %v1643_v62 = vsel %vm5486_vm11, %v5875_v61, %v5824_v27 }
0x137f   :  { %1648 = vrot.lane.b32.xlu0 %v1643_v62, %s5119_s22 }
0x13ed   :  { %v1695_v10 = vpop.permute.xlu1 %1694 }
0x13ee   :  { %4413 = vmatmul.mubr.msk.bf16.vlgmr.msra.gmra.mrb[44].mxu1 %vm211_vm0, %v1695_v10 }
0x13ef   :  { %4420 = vmatprep.mubr.msk.bf16.mxu1 %vm5127_vm1, %v5126_v8 }
0x13f1   :  { %v1649_v57 = vpop.permute.xlu0 %1648 }
0x13f2   :  { %4405 = vmatmul.mubr.msk.bf16.vlgmr.msra.gmra.mrb[28].mxu0 %vm211_vm0, %v1649_v57 }
0x13f3   :  { %1930 = vmatprep.mubr.bf16.mxu0 %v5125_v0 }
0x14c1   :  { %v1733_v34 = vpop.f32.mrb[44].mxu1 }
0x14c2   :  { %v1745_v52 = vadd.f32 %v1744_v6, %v1733_v34  ;;  %v4414_v23 = vpop.f32.mrb[45].mxu1  ;;  %v1646_v34 = vsel %vm729_vm12, %v5856_v58, %v5853_v2 }
0x14c3   :  { %v1736_v55 = vpop.f32.mrb[46].mxu1 }
0x14c4   :  { %4776 = vtanh.f32 %v1745_v52  ;;  %v4415_v27 = vpop.f32.mrb[47].mxu1  ;;  %v3919_v31 = vmul.f32 -1.442695, %v1745_v52 }
0x14c5   :  { %v1687_v18 = vpop.f32.mrb[28].mxu0  ;;  %v1644_v27 = vsel %vm744_vm10, %v5866_v51, %v5862_v5  ;;  %v932_v51 = vsel %vm5580_vm3, %v5575_v19, 0 }
0x14c6   :  { %v1742_v32 = vadd.f32 %v1741_v28, %v1687_v18  ;;  %v4406_v37 = vpop.f32.mrb[29].mxu0 }
0x14c7   :  { %v1690_v33 = vpop.f32.mrb[30].mxu0 }
0x14c8   :  { %4778 = vtanh.f32 %v1742_v32  ;;  %v4407_v3 = vpop.f32.mrb[31].mxu0  ;;  %v3918_v50 = vmul.f32 -1.442695, %v1742_v32  ;;  %v1634_v33 = vsel %vm5504_vm13, %v1624_v1, 0  ;;  %v3891_v1 = vcombine.low %v932_v51, %v932_v51 }
0x14c9   :  { %4780 = vpow2.f32 %v3919_v31  ;;  %v3915_v2 = vcombine.low %v1634_v33, %v1634_v33  ;;  %v1290_v3 = vsel %vm5684_vm4, %v5742_v22, 0  ;;  %v3878_v22 = vcombine.low %v5409_v41, %v5409_v41 }
0x14ca   :  { %4782 = vpow2.f32 %v3918_v50  ;;  %v3903_v5 = vcombine.low %v1290_v3, %v1290_v3  ;;  %v1281_v31 = vsel %vm5666_vm15, %v5752_v30, 0 }
0x14cb   :  { %v3902_v50 = vcombine.low %v1281_v31, %v1281_v31 }
0x14ce   :  { %v4777_v40 = vpop.eup %4776 }
0x14cf   :  { %1779 = vrot.lane.b32.xlu1 %v4777_v40, %s5128_s5  ;;  %v3879_v40 = vcombine.low %v5425_v47, %v5425_v47  ;;  %v1625_v47 = vsel %vm5486_vm11, %v5875_v61, 0 }
0x14d0   :  { %v3914_v41 = vcombine.low %v1625_v47, %v1625_v47  ;;  %v4635_v47 = vld [vmem:[#allocation14] ss:$8 sps:$4 sm:$0xff]  }
0x14d2   :  { %v4779_v63 = vpop.eup %4778 }
0x14d3   :  { %1755 = vrot.lane.b32.xlu0 %v4779_v63, %s5128_s5  ;;  %v4781_v11 = vpop.eup %4780  ;;  %v917_v63 = vsel %vm5598_vm9, %v5593_v25, 0  ;;  %v4630_v25 = vld [vmem:[#allocation14 + $0x24] ss:$8 sps:$4 sm:$0xff]  }
0x14d4   :  { %v1773_v56 = vadd.f32 1.0, %v4781_v11  ;;  %v4783_v12 = vpop.eup %4782  ;;  %v3890_v19 = vcombine.low %v917_v63, %v917_v63  ;;  %v4628_v11 = vld [vmem:[#allocation14 + $0x20] ss:$8 sps:$4 sm:$0xff]   ;;  %1898 = vmatprep.subr.bf16.mxu0 %v4630_v25  ;;  %v5986_v63 = vld [vmem:[#allocation17] sm:$0xff]  }
0x14d5   :  { %v1749_v9 = vadd.f32 1.0, %v4783_v12  ;;  %1899 = vmatpush1.bf16.msra.mxu0 %v4628_v11  ;;  %v4631_v12 = vld [vmem:[#allocation14 + $0x30] ss:$8 sps:$4 sm:$0xff]   ;;  %v4642_v11 = vld [vmem:[#allocation14 + $0x14] ss:$8 sps:$4 sm:$0xff]  }
0x14d6   :  { %4784 = vrcp.f32 %v1773_v56  ;;  %v4633_v56 = vld [vmem:[#allocation14 + $0x34] ss:$8 sps:$4 sm:$0xff]  }
0x14d7   :  { %4786 = vrcp.f32 %v1749_v9  ;;  %1900 = vmatprep.subr.bf16.mxu0 %v4633_v56  ;;  %v4640_v56 = vld [vmem:[#allocation14 + $0x10] ss:$8 sps:$4 sm:$0xff]  }
0x14d9   :  { %1901 = vmatpush1.bf16.msra.mxu0 %v4631_v12 }
0x14e0   :  { %v4785_v24 = vpop.eup %4784 }
0x14e1   :  { %v5892_v10 = vpop.eup %4786  ;;  %v1777_v52 = vmul.f32 %v4785_v24, %v1646_v34  ;;  %v1462_v34 = vsel %vm5598_vm9, %v5808_v7, 0  ;;  %v746_v7 = vsel %vm5486_vm11, %v5481_v45, 0  ;;  %v1103_v45 = vsel %vm5684_vm4, %v5679_v59, 0 }
0x14e2   :  { %v1753_v28 = vmul.f32 %v5892_v10, %v1644_v27  ;;  %v3896_v3 = vcombine.low %v1103_v45, %v1103_v45 }
0x1541   :  { %v1780_v4 = vpop.permute.xlu1 %1779 }
0x1542   :  { %v1782_v62 = vmul.f32 %v4785_v24, %v1780_v4 }
0x1544   :  { %1784 = vrot.lane.b32.xlu1 %v1782_v62, %s5128_s5 }
0x1545   :  { %v1756_v57 = vpop.permute.xlu0 %1755 }
0x1546   :  { %v1758_v6 = vmul.f32 %v5892_v10, %v1756_v57  ;;  %v4637_v57 = vld [vmem:[#allocation14 + $0x4] ss:$8 sps:$4 sm:$0xff]  }
0x1547   :  { %2023 = vmatprep.subr.bf16.mxu0 %v4637_v57 }
0x1548   :  { %1760 = vrot.lane.b32.xlu0 %v1758_v6, %s5128_s5 }
0x15b6   :  { %v1785_v23 = vpop.permute.xlu1 %1784 }
0x15b7   :  { %v1787_v55 = vadd.f32 %v1785_v23, %v1777_v52  ;;  %v1118_v23 = vsel %vm5666_vm15, %v5661_v42, 0  ;;  %v731_v42 = vsel %vm5504_vm13, %v5499_v53, 0 }
0x15b8   :  { %v3897_v27 = vcombine.low %v1118_v23, %v1118_v23  ;;  %v3884_v33 = vcombine.low %v731_v42, %v731_v42 }
0x15b9   :  { %4788 = vtanh.f32 %v1787_v55 }
0x15ba   :  { %v1761_v18 = vpop.permute.xlu0 %1760 }
0x15bb   :  { %v1763_v32 = vadd.f32 %v1761_v18, %v1753_v28  ;;  %v3885_v18 = vcombine.low %v746_v7, %v746_v7 }
0x15bd   :  { %4790 = vtanh.f32 %v1763_v32 }
0x15c3   :  { %v4789_v37 = vpop.eup %4788 }
0x15c4   :  { %1790 = vrot.lane.b32.xlu1 %v4789_v37, %s5128_s5 }
0x15c7   :  { %v4791_v58 = vpop.eup %4790 }
0x15c8   :  { %1638 = vrot.lane.b32.xlu1 %v3915_v2, %s5119_s22  ;;  %1766 = vrot.lane.b32.xlu0 %v4791_v58, %s5128_s5 }
0x15cc   :  { %1294 = vrot.lane.b32.xlu1 %v3903_v5, %s5119_s22  ;;  %v1453_v5 = vsel %vm5580_vm3, %v5818_v26, 0  ;;  %v5978_v26 = vld [vmem:[#allocation15 + $0x8] sm:$0xff]  }
0x15d0   :  { %936 = vrot.lane.b32.xlu1 %v3891_v1, %s5119_s22 }
0x15d4   :  { %568 = vrot.lane.b32.xlu1 %v3879_v40, %s5119_s22 }
0x15d8   :  { %553 = vrot.lane.b32.xlu1 %v3878_v22, %s5119_s22  ;;  %v5975_v22 = vld [vmem:[#allocation15] sm:$0xff]  }
0x15d9   :  { %4417 = vmatpush3.bf16.msra.mxu1 %v5975_v22 }
0x15da   :  { %4418 = vmatprep.subr.bf16.mxu1 %v5126_v8 }
0x15dc   :  { %921 = vrot.lane.b32.xlu1 %v3890_v19, %s5119_s22  ;;  %v5989_v19 = vld [vmem:[#allocation17 + $0x8] sm:$0xff]  }
0x15dd   :  { %4419 = vmatpush3.bf16.msra.mxu1 %v5978_v26 }
0x15de   :  { %4424 = vmatprep.subr.bf16.mxu1 %v5126_v8 }
0x15e0   :  { %1285 = vrot.lane.b32.xlu1 %v3902_v50, %s5119_s22  ;;  %4421 = vmatmul.mubr.bf16.vlgmr.msra.gmra.mrb[48].mxu1 %v5125_v0 }
0x15e1   :  { %4428 = vmatprep.mubr.msk.bf16.mxu1 %vm5127_vm1, %v5126_v8  ;;  %4425 = vmatpush3.bf16.msra.mxu1 %v5986_v63 }
0x15e2   :  { %4426 = vmatprep.subr.bf16.mxu1 %v5126_v8 }
0x15e4   :  { %1629 = vrot.lane.b32.xlu1 %v3914_v41, %s5119_s22 }
0x15e5   :  { %4427 = vmatpush3.bf16.msra.mxu1 %v5989_v19 }
0x15e6   :  { %4432 = vmatprep.subr.bf16.mxu1 %v5126_v8 }
0x15e8   :  { %4429 = vmatmul.mubr.bf16.vlgmr.msra.gmra.mrb[52].mxu1 %v5125_v0 }
0x15e9   :  { %4433 = vmatpush3.bf16.msra.mxu1 %v5975_v22  ;;  %4436 = vmatprep.mubr.msk.bf16.mxu1 %vm5127_vm1, %v5126_v8 }
0x15ea   :  { %4434 = vmatprep.subr.bf16.mxu1 %v5126_v8 }
0x15ed   :  { %4435 = vmatpush3.bf16.msra.mxu1 %v5978_v26 }
0x15ee   :  { %4440 = vmatprep.subr.bf16.mxu1 %v5126_v8 }
0x1636   :  { %v1791_v9 = vpop.permute.xlu1 %1790 }
0x1637   :  { %v1793_v30 = vmul.f32 %v4785_v24, %v1791_v9  ;;  %v3909_v24 = vcombine.low %v1462_v34, %v1462_v34 }
0x1639   :  { %v1795_v4 = vpack.c.bf16 %v1793_v30, %v1793_v30 }
0x163a   :  { %v1639_v62 = vpop.permute.xlu1 %1638  ;;  %v1767_v32 = vpop.permute.xlu0 %1766 }
0x163b   :  { %1642 = vst.msk [vmem:[#allocation5 + $0x4] sm:$0xf] %vm6582_vm14, %v1639_v62  ;;  %v1805_v61 = vsel %vm5403_vm5, %v1795_v4, 0  ;;  %v1769_v2 = vmul.f32 %v5892_v10, %v1767_v32  ;;  %v3908_v10 = vcombine.low %v1453_v5, %v1453_v5 }
0x163c   :  { %v3921_v6 = vcombine.low %v1805_v61, %v1805_v61 }
0x163d   :  { %v1794_v53 = vpack.c.bf16 %v1769_v2, %v1769_v2 }
0x163e   :  { %v1295_v52 = vpop.permute.xlu1 %1294  ;;  %1809 = vrot.lane.b32.xlu0 %v3921_v6, %s5119_s22 }
0x163f   :  { %1298 = vst.msk [vmem:[#allocation5 + $0xc] sm:$0xf] %vm6582_vm14, %v1295_v52  ;;  %v1796_v59 = vsel %vm5419_vm7, %v1794_v53, 0 }
0x1640   :  { %v3920_v40 = vcombine.low %v1796_v59, %v1796_v59 }
0x1642   :  { %v937_v55 = vpop.permute.xlu1 %936  ;;  %1466 = vrot.lane.b32.xlu0 %v3909_v24, %s5119_s22 }
0x1643   :  { %940 = vst.msk [vmem:[#allocation5 + $0x14] sm:$0xf] %vm6582_vm14, %v937_v55 }
0x1646   :  { %1122 = vrot.lane.b32.xlu0 %v3897_v27, %s5119_s22  ;;  %v569_v28 = vpop.permute.xlu1 %568 }
0x1647   :  { %572 = vst.msk [vmem:[#allocation5 + $0x1c] sm:$0xf] %vm6582_vm14, %v569_v28 }
0x164a   :  { %750 = vrot.lane.b32.xlu0 %v3885_v18, %s5119_s22  ;;  %v554_v37 = vpop.permute.xlu1 %553 }
0x164b   :  { %557 = vst.msk [vmem:[#allocation4] sm:$0xf] %vm6582_vm14, %v554_v37 }
0x164e   :  { %735 = vrot.lane.b32.xlu0 %v3884_v33, %s5119_s22  ;;  %v922_v58 = vpop.permute.xlu1 %921  ;;  %v1829_v33 = vld [vmem:[%s6575_s9] sm:$0x3] }
0x164f   :  { %925 = vst.msk [vmem:[#allocation4 + $0x8] sm:$0xf] %vm6582_vm14, %v922_v58  ;;  %v2104_v45 = vrot.slane %v1829_v33, %v167_v17 }
0x1652   :  { %1107 = vrot.lane.b32.xlu0 %v3896_v3, %s5119_s22  ;;  %v1286_v51 = vpop.permute.xlu1 %1285 }
0x1653   :  { %1289 = vst.msk [vmem:[#allocation4 + $0x10] sm:$0xf] %vm6582_vm14, %v1286_v51 }
0x1656   :  { %1457 = vrot.lane.b32.xlu0 %v3908_v10, %s5119_s22  ;;  %v1630_v1 = vpop.permute.xlu1 %1629 }
0x1657   :  { %1633 = vst.msk [vmem:[#allocation4 + $0x18] sm:$0xf] %vm6582_vm14, %v1630_v1 }
0x165a   :  { %1800 = vrot.lane.b32.xlu0 %v3920_v40, %s5119_s22 }
0x16b0   :  { %v1810_v31 = vpop.permute.xlu0 %1809 }
0x16b1   :  { %1812 = vst.msk [vmem:[#allocation5] sm:$0xf] %vm6582_vm14, %v1810_v31 }
0x16b3   :  { %v2249_v55 = vpop.f32.mrb[48].mxu1 }
0x16b4   :  { %v1467_v50 = vpop.permute.xlu0 %1466  ;;  %v4422_v27 = vpop.f32.mrb[49].mxu1 }
0x16b5   :  { %1470 = vst.msk [vmem:[#allocation5 + $0x8] sm:$0xf] %vm6582_vm14, %v1467_v50  ;;  %v2252_v7 = vpop.f32.mrb[50].mxu1 }
0x16b6   :  { %v4423_v28 = vpop.f32.mrb[51].mxu1 }
0x16b8   :  { %v1123_v41 = vpop.permute.xlu0 %1122  ;;  %v4634_v25 = vld [vmem:[#allocation5] sm:$0xff]  }
0x16b9   :  { %1126 = vst.msk [vmem:[#allocation5 + $0x10] sm:$0xf] %vm6582_vm14, %v1123_v41  ;;  %3930 = vmatmul.mubr.msk.bf16.vlgmr.msra.gmra.mrb[32].mxu0 %vm211_vm0, %v4634_v25 }
0x16ba   :  { %2024 = vmatpush1.bf16.msra.mxu0 %v4635_v47  ;;  %1940 = vmatprep.mubr.bf16.mxu0 %v5125_v0 }
0x16bb   :  { %2025 = vmatprep.subr.bf16.mxu0 %v4642_v11  ;;  %v6031_v18 = vpop.f32.mrb[52].mxu1 }
0x16bc   :  { %v751_v12 = vpop.permute.xlu0 %750  ;;  %v4638_v30 = vld [vmem:[#allocation5 + $0x8] sm:$0xff]   ;;  %v4430_v42 = vpop.f32.mrb[53].mxu1 }
0x16bd   :  { %754 = vst.msk [vmem:[#allocation5 + $0x18] sm:$0xf] %vm6582_vm14, %v751_v12  ;;  %v2304_v32 = vpop.f32.mrb[54].mxu1 }
0x16be   :  { %2026 = vmatpush1.bf16.msra.mxu0 %v4640_v56  ;;  %v4431_v37 = vpop.f32.mrb[55].mxu1 }
0x16bf   :  { %4480 = vmatprep.subr.bf16.mxu0 %v5126_v8 }
0x16c0   :  { %v736_v9 = vpop.permute.xlu0 %735  ;;  %v4639_v57 = vld [vmem:[#allocation5 + $0x10] sm:$0xff]  }
0x16c1   :  { %739 = vst.msk [vmem:[#allocation4 + $0x4] sm:$0xf] %vm6582_vm14, %v736_v9  ;;  %3931 = vmatmul.mubr.msk.bf16.gmra.mrb[36].mxu0 %vm211_vm0, %v4638_v30 }
0x16c2   :  { %1950 = vmatprep.mubr.bf16.mxu0 %v5125_v0 }
0x16c4   :  { %v1108_v4 = vpop.permute.xlu0 %1107  ;;  %v4643_v6 = vld [vmem:[#allocation5 + $0x18] sm:$0xff]  }
0x16c5   :  { %1111 = vst.msk [vmem:[#allocation4 + $0xc] sm:$0xf] %vm6582_vm14, %v1108_v4 }
0x16c8   :  { %v1458_v62 = vpop.permute.xlu0 %1457  ;;  %v4644_v34 = vld [vmem:[#allocation4] sm:$0xff]  }
0x16c9   :  { %1461 = vst.msk [vmem:[#allocation4 + $0x14] sm:$0xf] %vm6582_vm14, %v1458_v62  ;;  %3932 = vmatmul.mubr.msk.bf16.gmra.mrb[40].mxu0 %vm211_vm0, %v4639_v57 }
0x16ca   :  { %1960 = vmatprep.mubr.bf16.mxu0 %v5125_v0 }
0x16cc   :  { %v1801_v61 = vpop.permute.xlu0 %1800  ;;  %v4645_v52 = vld [vmem:[#allocation4 + $0x8] sm:$0xff]  }
0x16cd   :  { %1804 = vst.msk [vmem:[#allocation4 + $0x1c] sm:$0xf] %vm6582_vm14, %v1801_v61  ;;  %vm6600_vm14 = vcmp.eq.s32.totalorder %v5397_v36, 1 }
0x16d0   :  { %v4648_v24 = vld [vmem:[#allocation4 + $0x10] sm:$0xff]  }
0x16d1   :  { %3933 = vmatmul.mubr.msk.bf16.gmra.mrb[44].mxu0 %vm211_vm0, %v4643_v6 }
0x16d2   :  { %2055 = vmatprep.mubr.bf16.mxu0 %v5125_v0 }
0x16d4   :  { %v4649_v23 = vld [vmem:[#allocation4 + $0x18] sm:$0xff]  }
0x16d9   :  { %3942 = vmatmul.mubr.msk.bf16.vlgmr.msra.gmra.mrb[32].mxu0 %vm211_vm0, %v4644_v34 }
0x16da   :  { %2065 = vmatprep.mubr.bf16.mxu0 %v5125_v0  ;;  %4481 = vmatpush3.bf16.msra.mxu0 %v5975_v22 }
0x16db   :  { %4482 = vmatprep.subr.bf16.mxu0 %v5126_v8 }
0x16de   :  { %4483 = vmatpush3.bf16.msra.mxu0 %v5978_v26 }
0x16df   :  { %4496 = vmatprep.subr.bf16.mxu0 %v5126_v8 }
0x16e1   :  { %3943 = vmatmul.mubr.msk.bf16.gmra.mrb[36].mxu0 %vm211_vm0, %v4645_v52 }
0x16e2   :  { %2075 = vmatprep.mubr.bf16.mxu0 %v5125_v0 }
0x16e9   :  { %3944 = vmatmul.mubr.msk.bf16.gmra.mrb[40].mxu0 %vm211_vm0, %v4648_v24 }
0x16ea   :  { %2085 = vmatprep.mubr.bf16.mxu0 %v5125_v0  ;;  %v2100_v0 = vrot.slane %v1829_v33, %v163_v15 }
0x16f1   :  { %3945 = vmatmul.mubr.msk.bf16.gmra.mrb[44].mxu0 %vm211_vm0, %v4649_v23 }
0x16f2   :  { %4484 = vmatprep.mubr.msk.bf16.mxu0 %vm5127_vm1, %v5126_v8 }
0x17ac   :  { %v2057_v2 = vpop.f32.mrb[32].mxu0 }
0x17ad   :  { %v2059_v58 = vpop.f32.mrb[33].mxu0  ;;  %v2107_v53 = vadd.f32 %v2100_v0, %v2057_v2 }
0x17ae   :  { %v2061_v3 = vpop.f32.mrb[34].mxu0  ;;  %v2108_v10 = vadd.f32 %v2104_v45, %v2059_v58 }
0x17af   :  { %v2109_v5 = vadd.f32 %v2100_v0, %v2061_v3  ;;  %v2063_v51 = vpop.f32.mrb[35].mxu0 }
0x17b0   :  { %v2110_v59 = vadd.f32 %v2104_v45, %v2063_v51 }
0x17b1   :  { %v4108_v1 = vpack.c.bf16 %v2109_v5, %v2107_v53 }
0x17b2   :  { %v4128_v40 = vpack.c.bf16 %v2110_v59, %v2108_v10 }
0x17b3   :  { %4109 = vst [vmem:[#allocation2] sm:$0xff] %v4108_v1  }
0x17b4   :  { %4129 = vst [vmem:[#allocation3] sm:$0xff] %v4128_v40   ;;  %v2067_v31 = vpop.f32.mrb[36].mxu0 }
0x17b5   :  { %v2069_v50 = vpop.f32.mrb[37].mxu0  ;;  %v2111_v41 = vadd.f32 %v2100_v0, %v2067_v31 }
0x17b6   :  { %v2071_v47 = vpop.f32.mrb[38].mxu0  ;;  %v2112_v11 = vadd.f32 %v2104_v45, %v2069_v50 }
0x17b7   :  { %v2113_v15 = vadd.f32 %v2100_v0, %v2071_v47  ;;  %v2073_v25 = vpop.f32.mrb[39].mxu0 }
0x17b8   :  { %v2114_v14 = vadd.f32 %v2104_v45, %v2073_v25 }
0x17b9   :  { %v4113_v17 = vpack.c.bf16 %v2113_v15, %v2111_v41 }
0x17ba   :  { %v4133_v56 = vpack.c.bf16 %v2114_v14, %v2112_v11  ;;  %v6040_v12 = vld [vmem:[#allocation2] sm:$0xff]  }
0x17bb   :  { %4171 = vst [vmem:[#allocation2 + $0x8] sm:$0xff] %v4113_v17   ;;  %v2308_v9 = vunpack.c.l.bf16 %v6040_v12 }
0x17bc   :  { %4174 = vst [vmem:[#allocation3 + $0x8] sm:$0xff] %v4133_v56   ;;  %v2077_v30 = vpop.f32.mrb[40].mxu0 }
0x17bd   :  { %v2309_v4 = vadd.f32 %v2308_v9, %v2249_v55  ;;  %v2079_v62 = vpop.f32.mrb[41].mxu0  ;;  %v2115_v61 = vadd.f32 %v2100_v0, %v2077_v30 }
0x17be   :  { %v2081_v57 = vpop.f32.mrb[42].mxu0  ;;  %v2116_v52 = vadd.f32 %v2104_v45, %v2079_v62 }
0x17bf   :  { %4792 = vtanh.f32 %v2309_v4  ;;  %v2117_v6 = vadd.f32 %v2100_v0, %v2081_v57  ;;  %v2083_v34 = vpop.f32.mrb[43].mxu0 }
0x17c0   :  { %v2118_v24 = vadd.f32 %v2104_v45, %v2083_v34 }
0x17c1   :  { %v4118_v23 = vpack.c.bf16 %v2117_v6, %v2115_v61 }
0x17c2   :  { %v4138_v27 = vpack.c.bf16 %v2118_v24, %v2116_v52 }
0x17c3   :  { %4172 = vst [vmem:[#allocation2 + $0x10] sm:$0xff] %v4118_v23  }
0x17c4   :  { %4175 = vst [vmem:[#allocation3 + $0x10] sm:$0xff] %v4138_v27   ;;  %v2087_v7 = vpop.f32.mrb[44].mxu0 }
0x17c5   :  { %v2089_v28 = vpop.f32.mrb[45].mxu0  ;;  %v2119_v32 = vadd.f32 %v2100_v0, %v2087_v7 }
0x17c6   :  { %v2091_v42 = vpop.f32.mrb[46].mxu0  ;;  %v2120_v2 = vadd.f32 %v2104_v45, %v2089_v28 }
0x17c7   :  { %v2121_v37 = vadd.f32 %v2100_v0, %v2091_v42  ;;  %v2093_v33 = vpop.f32.mrb[47].mxu0  ;;  %v3966_v0 = vmul.f32 -1.442695, %v2309_v4 }
0x17c8   :  { %v2122_v55 = vadd.f32 %v2104_v45, %v2093_v33 }
0x17c9   :  { %v4793_v58 = vpop.eup %4792  ;;  %v4123_v3 = vpack.c.bf16 %v2121_v37, %v2119_v32  ;;  %v2472_v32 = vunpack.c.h.bf16 %v6040_v12 }
0x17ca   :  { %v4143_v53 = vpack.c.bf16 %v2122_v55, %v2120_v2  ;;  %2322 = vrot.lane.b32.xlu1 %v4793_v58, %s5128_s5 }
0x17cb   :  { %4173 = vst [vmem:[#allocation2 + $0x18] sm:$0xff] %v4123_v3  }
0x17cc   :  { %4176 = vst [vmem:[#allocation3 + $0x18] sm:$0xff] %v4143_v53  }
0x17d3   :  { %v6044_v5 = vld [vmem:[#allocation3 + $0x18] sm:$0xff]  }
0x17d4   :  { %v2311_v51 = vunpack.c.h.bf16 %v6044_v5  ;;  %v2475_v53 = vunpack.c.l.bf16 %v6044_v5 }
0x17d6   :  { %v2312_v10 = vadd.f32 %v2311_v51, %v6031_v18 }
0x17d8   :  { %4794 = vtanh.f32 %v2312_v10  ;;  %v3967_v40 = vmul.f32 -1.442695, %v2312_v10 }
0x17d9   :  { %4796 = vpow2.f32 %v3966_v0 }
0x17e2   :  { %v4795_v59 = vpop.eup %4794 }
0x17e3   :  { %2346 = vrot.lane.b32.xlu0 %v4795_v59, %s5128_s5  ;;  %v4797_v45 = vpop.eup %4796 }
0x17e4   :  { %v2316_v1 = vadd.f32 1.0, %v4797_v45 }
0x17e6   :  { %4798 = vrcp.f32 %v2316_v1 }
0x17e7   :  { %4800 = vpow2.f32 %v3967_v40 }
0x17f0   :  { %v4799_v31 = vpop.eup %4798 }
0x17f1   :  { %v4801_v41 = vpop.eup %4800  ;;  %v2320_v14 = vmul.f32 0.0, %v4799_v31 }
0x17f2   :  { %v2340_v15 = vadd.f32 1.0, %v4801_v41 }
0x17f4   :  { %4802 = vrcp.f32 %v2340_v15 }
0x17fe   :  { %v4803_v18 = vpop.eup %4802 }
0x17ff   :  { %v2344_v30 = vmul.f32 0.0, %v4803_v18 }
0x183c   :  { %v2323_v50 = vpop.permute.xlu1 %2322 }
0x183d   :  { %v2325_v47 = vmul.f32 %v4799_v31, %v2323_v50 }
0x183f   :  { %2327 = vrot.lane.b32.xlu1 %v2325_v47, %s5128_s5 }
0x1855   :  { %v2347_v25 = vpop.permute.xlu0 %2346 }
0x1856   :  { %v2349_v11 = vmul.f32 %v4803_v18, %v2347_v25 }
0x1858   :  { %2351 = vrot.lane.b32.xlu0 %v2349_v11, %s5128_s5 }
0x18b1   :  { %v2328_v17 = vpop.permute.xlu1 %2327 }
0x18b2   :  { %v6051_v56 = vadd.f32 %v2328_v17, %v2320_v14 }
0x18b4   :  { %4804 = vtanh.f32 %v6051_v56  ;;  %v6094_v17 = vsel %vm6600_vm14, %v6051_v56, 0.0  ;;  %vm6603_vm14 = vcmp.eq.s32.totalorder %v5656_v29, 1 }
0x18be   :  { %v4805_v9 = vpop.eup %4804 }
0x18bf   :  { %2333 = vrot.lane.b32.xlu1 %v4805_v9, %s5128_s5 }
0x18ca   :  { %v2352_v4 = vpop.permute.xlu0 %2351 }
0x18cb   :  { %v6055_v62 = vadd.f32 %v2352_v4, %v2344_v30 }
0x18cd   :  { %4806 = vtanh.f32 %v6055_v62 }
0x18d7   :  { %v4807_v57 = vpop.eup %4806 }
0x18d8   :  { %2357 = vrot.lane.b32.xlu0 %v4807_v57, %s5128_s5 }
0x1931   :  { %v2334_v61 = vpop.permute.xlu1 %2333 }
0x1932   :  { %v2336_v6 = vmul.f32 %v4799_v31, %v2334_v61  ;;  %v6104_v61 = vsel %vm6601_vm6, %v6055_v62, 0.0  ;;  %vm6602_vm6 = vcmp.eq.s32.totalorder %v5659_v13, 1 }
0x1934   :  { %v2361_v34 = vpack.c.bf16 %v2336_v6, %v2336_v6 }
0x1936   :  { %v6061_v52 = vsel %vm5403_vm5, %v2361_v34, 0 }
0x1937   :  { %2381 = vrot.lane.b32.xlu1 %v6061_v52, %s5119_s22 }
0x194a   :  { %v2358_v24 = vpop.permute.xlu0 %2357 }
0x194b   :  { %v2360_v23 = vmul.f32 %v4803_v18, %v2358_v24 }
0x194d   :  { %v2362_v27 = vpack.c.bf16 %v2360_v23, %v2360_v23 }
0x194f   :  { %v6067_v7 = vsel %vm5419_vm7, %v2362_v27, 0 }
0x1950   :  { %2426 = vrot.lane.b32.xlu0 %v6067_v7, %s5119_s22 }
0x19a9   :  { %v2382_v28 = vpop.permute.xlu1 %2381 }
0x19aa   :  { %4437 = vmatmul.mubr.msk.bf16.vlgmr.msra.gmra.mrb[56].mxu1 %vm211_vm0, %v2382_v28 }
0x19ab   :  { %4441 = vmatpush3.bf16.msra.mxu1 %v5986_v63  ;;  %4444 = vmatprep.mubr.msk.bf16.mxu1 %vm5127_vm1, %v5126_v8 }
0x19ac   :  { %4442 = vmatprep.subr.bf16.mxu1 %v5126_v8 }
0x19af   :  { %4443 = vmatpush3.bf16.msra.mxu1 %v5989_v19 }
0x19b0   :  { %4448 = vmatprep.subr.bf16.mxu1 %v5126_v8 }
0x19c2   :  { %v2427_v42 = vpop.permute.xlu0 %2426 }
0x19c3   :  { %4445 = vmatmul.mubr.msk.bf16.vlgmr.msra.gmra.mrb[60].mxu1 %vm211_vm0, %v2427_v42 }
0x19c4   :  { %4449 = vmatpush3.bf16.msra.mxu1 %v5975_v22  ;;  %4452 = vmatprep.mubr.msk.bf16.mxu1 %vm5127_vm1, %v5126_v8 }
0x19c5   :  { %4450 = vmatprep.subr.bf16.mxu1 %v5126_v8 }
0x19c8   :  { %4451 = vmatpush3.bf16.msra.mxu1 %v5978_v26 }
0x19c9   :  { %4456 = vmatprep.subr.bf16.mxu1 %v5126_v8 }
0x1a7d   :  { %v2420_v37 = vpop.f32.mrb[56].mxu1 }
0x1a7e   :  { %v2473_v33 = vadd.f32 %v2472_v32, %v2420_v37  ;;  %v4438_v2 = vpop.f32.mrb[57].mxu1 }
0x1a7f   :  { %v2423_v55 = vpop.f32.mrb[58].mxu1  ;;  %v6145_v2 = vld [vmem:[#allocation2 + $0x8] sm:$0xff]  }
0x1a80   :  { %4808 = vtanh.f32 %v2473_v33  ;;  %v4439_v58 = vpop.f32.mrb[59].mxu1  ;;  %v3972_v12 = vmul.f32 -1.442695, %v2473_v33  ;;  %v2640_v55 = vunpack.c.l.bf16 %v6145_v2 }
0x1a8a   :  { %v4809_v3 = vpop.eup %4808 }
0x1a8b   :  { %2486 = vrot.lane.b32.xlu1 %v4809_v3, %s5128_s5 }
0x1a96   :  { %v2465_v51 = vpop.f32.mrb[60].mxu1 }
0x1a97   :  { %v2476_v10 = vadd.f32 %v2475_v53, %v2465_v51  ;;  %v4446_v59 = vpop.f32.mrb[61].mxu1 }
0x1a98   :  { %v2468_v0 = vpop.f32.mrb[62].mxu1 }
0x1a99   :  { %4810 = vtanh.f32 %v2476_v10  ;;  %v4447_v45 = vpop.f32.mrb[63].mxu1  ;;  %v3973_v50 = vmul.f32 -1.442695, %v2476_v10  ;;  %v6149_v0 = vld [vmem:[#allocation3 + $0x10] sm:$0xff]  }
0x1a9a   :  { %4812 = vpow2.f32 %v3972_v12  ;;  %v2643_v45 = vunpack.c.h.bf16 %v6149_v0 }
0x1aa3   :  { %v4811_v1 = vpop.eup %4810 }
0x1aa4   :  { %2510 = vrot.lane.b32.xlu0 %v4811_v1, %s5128_s5  ;;  %v4813_v40 = vpop.eup %4812 }
0x1aa5   :  { %v2480_v31 = vadd.f32 1.0, %v4813_v40 }
0x1aa7   :  { %4814 = vrcp.f32 %v2480_v31 }
0x1aa8   :  { %4816 = vpow2.f32 %v3973_v50 }
0x1ab1   :  { %v4815_v47 = vpop.eup %4814 }
0x1ab2   :  { %v4817_v5 = vpop.eup %4816  ;;  %v2484_v9 = vmul.f32 %v4815_v47, %v6094_v17 }
0x1ab3   :  { %v2504_v18 = vadd.f32 1.0, %v4817_v5 }
0x1ab5   :  { %4818 = vrcp.f32 %v2504_v18 }
0x1abf   :  { %v4819_v25 = vpop.eup %4818 }
0x1ac0   :  { %v2508_v6 = vmul.f32 %v4819_v25, %v6104_v61 }
0x1afd   :  { %v2487_v41 = vpop.permute.xlu1 %2486 }
0x1afe   :  { %v2489_v15 = vmul.f32 %v4815_v47, %v2487_v41 }
0x1b00   :  { %2491 = vrot.lane.b32.xlu1 %v2489_v15, %s5128_s5 }
0x1b16   :  { %v2511_v11 = vpop.permute.xlu0 %2510 }
0x1b17   :  { %v2513_v14 = vmul.f32 %v4819_v25, %v2511_v11 }
0x1b19   :  { %2515 = vrot.lane.b32.xlu0 %v2513_v14, %s5128_s5 }
0x1b72   :  { %v2492_v30 = vpop.permute.xlu1 %2491 }
0x1b73   :  { %v6097_v4 = vadd.f32 %v2492_v30, %v2484_v9 }
0x1b75   :  { %4820 = vtanh.f32 %v6097_v4 }
0x1b7f   :  { %v4821_v57 = vpop.eup %4820 }
0x1b80   :  { %2497 = vrot.lane.b32.xlu1 %v4821_v57, %s5128_s5 }
0x1b8b   :  { %v2516_v36 = vpop.permute.xlu0 %2515 }
0x1b8c   :  { %v6107_v56 = vadd.f32 %v2516_v36, %v2508_v6 }
0x1b8e   :  { %4822 = vtanh.f32 %v6107_v56 }
0x1b98   :  { %v4823_v34 = vpop.eup %4822 }
0x1b99   :  { %2521 = vrot.lane.b32.xlu0 %v4823_v34, %s5128_s5  ;;  %v6159_v34 = vsel %vm729_vm12, %v6097_v4, %v6094_v17 }
0x1bf2   :  { %v2498_v24 = vpop.permute.xlu1 %2497 }
0x1bf3   :  { %v2500_v23 = vmul.f32 %v4815_v47, %v2498_v24 }
0x1bf5   :  { %v6111_v27 = vpack.c.bf16 %v2500_v23, %v2500_v23 }
0x1bf7   :  { %v6117_v44 = vsel %vm5504_vm13, %v6111_v27, %v6061_v52  ;;  %v2527_v49 = vsel %vm5504_vm13, %v6111_v27, 0 }
0x1bf8   :  { %2548 = vrot.lane.b32.xlu1 %v6117_v44, %s5119_s22 }
0x1c0b   :  { %v2522_v62 = vpop.permute.xlu0 %2521 }
0x1c0c   :  { %v2524_v28 = vmul.f32 %v4819_v25, %v2522_v62 }
0x1c0e   :  { %v6121_v42 = vpack.c.bf16 %v2524_v28, %v2524_v28 }
0x1c10   :  { %v6127_v32 = vsel %vm5486_vm11, %v6121_v42, %v6067_v7 }
0x1c11   :  { %2594 = vrot.lane.b32.xlu0 %v6127_v32, %s5119_s22 }
0x1c6a   :  { %v2549_v37 = vpop.permute.xlu1 %2548 }
0x1c6b   :  { %4453 = vmatmul.mubr.msk.bf16.vlgmr.msra.gmra.mrb[64].mxu1 %vm211_vm0, %v2549_v37  ;;  %v6170_v37 = vsel %vm744_vm10, %v6107_v56, %v6104_v61 }
0x1c6c   :  { %4457 = vmatpush3.bf16.msra.mxu1 %v5986_v63  ;;  %4460 = vmatprep.mubr.msk.bf16.mxu1 %vm5127_vm1, %v5126_v8 }
0x1c6d   :  { %4458 = vmatprep.subr.bf16.mxu1 %v5126_v8 }
0x1c70   :  { %4459 = vmatpush3.bf16.msra.mxu1 %v5989_v19 }
0x1c71   :  { %4464 = vmatprep.subr.bf16.mxu1 %v5126_v8 }
0x1c83   :  { %v2595_v33 = vpop.permute.xlu0 %2594 }
0x1c84   :  { %4461 = vmatmul.mubr.msk.bf16.vlgmr.msra.gmra.mrb[68].mxu1 %vm211_vm0, %v2595_v33 }
0x1c85   :  { %4465 = vmatpush3.bf16.msra.mxu1 %v5975_v22  ;;  %4468 = vmatprep.mubr.msk.bf16.mxu1 %vm5127_vm1, %v5126_v8 }
0x1c86   :  { %4466 = vmatprep.subr.bf16.mxu1 %v5126_v8 }
0x1c89   :  { %4467 = vmatpush3.bf16.msra.mxu1 %v5978_v26 }
0x1c8a   :  { %4472 = vmatprep.subr.bf16.mxu1 %v5126_v8 }
0x1d3e   :  { %v2587_v58 = vpop.f32.mrb[64].mxu1 }
0x1d3f   :  { %v2641_v3 = vadd.f32 %v2640_v55, %v2587_v58  ;;  %v4454_v53 = vpop.f32.mrb[65].mxu1 }
0x1d40   :  { %v2590_v51 = vpop.f32.mrb[66].mxu1 }
0x1d41   :  { %4824 = vtanh.f32 %v2641_v3  ;;  %v4455_v10 = vpop.f32.mrb[67].mxu1  ;;  %v3978_v41 = vmul.f32 -1.442695, %v2641_v3 }
0x1d4b   :  { %v4825_v59 = vpop.eup %4824 }
0x1d4c   :  { %2654 = vrot.lane.b32.xlu1 %v4825_v59, %s5128_s5 }
0x1d57   :  { %v2633_v1 = vpop.f32.mrb[68].mxu1 }
0x1d58   :  { %v2644_v12 = vadd.f32 %v2643_v45, %v2633_v1  ;;  %v4462_v40 = vpop.f32.mrb[69].mxu1 }
0x1d59   :  { %v2636_v31 = vpop.f32.mrb[70].mxu1 }
0x1d5a   :  { %4826 = vtanh.f32 %v2644_v12  ;;  %v4463_v50 = vpop.f32.mrb[71].mxu1  ;;  %v3979_v18 = vmul.f32 -1.442695, %v2644_v12 }
0x1d5b   :  { %4828 = vpow2.f32 %v3978_v41  ;;  %v2811_v41 = vunpack.c.l.bf16 %v6149_v0 }
0x1d64   :  { %v4827_v47 = vpop.eup %4826 }
0x1d65   :  { %2678 = vrot.lane.b32.xlu0 %v4827_v47, %s5128_s5  ;;  %v4829_v15 = vpop.eup %4828 }
0x1d66   :  { %v2648_v5 = vadd.f32 1.0, %v4829_v15 }
0x1d68   :  { %4830 = vrcp.f32 %v2648_v5 }
0x1d69   :  { %4832 = vpow2.f32 %v3979_v18 }
0x1d72   :  { %v4831_v25 = vpop.eup %4830 }
0x1d73   :  { %v4833_v9 = vpop.eup %4832  ;;  %v2652_v24 = vmul.f32 %v4831_v25, %v6159_v34 }
0x1d74   :  { %v2672_v30 = vadd.f32 1.0, %v4833_v9 }
0x1d76   :  { %4834 = vrcp.f32 %v2672_v30 }
0x1d80   :  { %v4835_v57 = vpop.eup %4834 }
0x1d81   :  { %v2676_v33 = vmul.f32 %v4835_v57, %v6170_v37 }
0x1dbe   :  { %v2655_v11 = vpop.permute.xlu1 %2654 }
0x1dbf   :  { %v2657_v14 = vmul.f32 %v4831_v25, %v2655_v11 }
0x1dc1   :  { %2659 = vrot.lane.b32.xlu1 %v2657_v14, %s5128_s5 }
0x1dd7   :  { %v2679_v6 = vpop.permute.xlu0 %2678 }
0x1dd8   :  { %v2681_v36 = vmul.f32 %v4835_v57, %v2679_v6 }
0x1dda   :  { %2683 = vrot.lane.b32.xlu0 %v2681_v36, %s5128_s5 }
0x1e33   :  { %v2660_v23 = vpop.permute.xlu1 %2659 }
0x1e34   :  { %v6162_v62 = vadd.f32 %v2660_v23, %v2652_v24 }
0x1e36   :  { %4836 = vtanh.f32 %v6162_v62 }
0x1e40   :  { %v4837_v28 = vpop.eup %4836 }
0x1e41   :  { %2665 = vrot.lane.b32.xlu1 %v4837_v28, %s5128_s5 }
0x1e4c   :  { %v2684_v17 = vpop.permute.xlu0 %2683 }
0x1e4d   :  { %v6173_v4 = vadd.f32 %v2684_v17, %v2676_v33 }
0x1e4f   :  { %4838 = vtanh.f32 %v6173_v4 }
0x1e59   :  { %v4839_v55 = vpop.eup %4838 }
0x1e5a   :  { %2689 = vrot.lane.b32.xlu0 %v4839_v55, %s5128_s5  ;;  %v6221_v55 = vsel %vm915_vm8, %v6162_v62, %v6159_v34 }
0x1eb3   :  { %v2666_v58 = vpop.permute.xlu1 %2665 }
0x1eb4   :  { %v2668_v3 = vmul.f32 %v4831_v25, %v2666_v58 }
0x1eb6   :  { %v6177_v53 = vpack.c.bf16 %v2668_v3, %v2668_v3 }
0x1eb8   :  { %v6183_v61 = vsel %vm5598_vm9, %v6177_v53, %v6117_v44 }
0x1eb9   :  { %2716 = vrot.lane.b32.xlu1 %v6183_v61, %s5119_s22 }
0x1ecc   :  { %v2690_v56 = vpop.permute.xlu0 %2689 }
0x1ecd   :  { %v2692_v51 = vmul.f32 %v4835_v57, %v2690_v56 }
0x1ecf   :  { %v6187_v10 = vpack.c.bf16 %v2692_v51, %v2692_v51 }
0x1ed1   :  { %v6193_v59 = vsel %vm5580_vm3, %v6187_v10, %v6127_v32  ;;  %v2808_v32 = vunpack.c.h.bf16 %v6145_v2  ;;  %v2703_v43 = vsel %vm5580_vm3, %v6187_v10, 0 }
0x1ed2   :  { %2762 = vrot.lane.b32.xlu0 %v6193_v59, %s5119_s22 }
0x1f2b   :  { %v2717_v45 = vpop.permute.xlu1 %2716 }
0x1f2c   :  { %4469 = vmatmul.mubr.msk.bf16.vlgmr.msra.gmra.mrb[72].mxu1 %vm211_vm0, %v2717_v45  ;;  %v6232_v45 = vsel %vm930_vm2, %v6173_v4, %v6170_v37 }
0x1f2d   :  { %4473 = vmatpush3.bf16.msra.mxu1 %v5986_v63  ;;  %4476 = vmatprep.mubr.msk.bf16.mxu1 %vm5127_vm1, %v5126_v8 }
0x1f2e   :  { %4474 = vmatprep.subr.bf16.mxu1 %v5126_v8 }
0x1f31   :  { %4475 = vmatpush3.bf16.msra.mxu1 %v5989_v19 }
0x1f32   :  { %4488 = vmatprep.subr.bf16.mxu1 %v5126_v8 }
0x1f44   :  { %v2763_v44 = vpop.permute.xlu0 %2762 }
0x1f45   :  { %4477 = vmatmul.mubr.msk.bf16.vlgmr.msra.gmra.mrb[76].mxu1 %vm211_vm0, %v2763_v44 }
0x1f46   :  { %4489 = vmatpush3.bf16.msra.mxu1 %v5986_v63  ;;  %4492 = vmatprep.mubr.msk.bf16.mxu1 %vm5127_vm1, %v5126_v8 }
0x1f47   :  { %4490 = vmatprep.subr.bf16.mxu1 %v5126_v8 }
0x1f4a   :  { %4491 = vmatpush3.bf16.msra.mxu1 %v5989_v19 }
0x1f4b   :  { %4504 = vmatprep.subr.bf16.mxu1 %v5126_v8 }
0x1fff   :  { %v2755_v1 = vpop.f32.mrb[72].mxu1 }
0x2000   :  { %v2809_v12 = vadd.f32 %v2808_v32, %v2755_v1  ;;  %v4470_v40 = vpop.f32.mrb[73].mxu1 }
0x2001   :  { %v2758_v31 = vpop.f32.mrb[74].mxu1 }
0x2002   :  { %4840 = vtanh.f32 %v2809_v12  ;;  %v4471_v50 = vpop.f32.mrb[75].mxu1  ;;  %v3984_v2 = vmul.f32 -1.442695, %v2809_v12 }
0x200c   :  { %v4841_v47 = vpop.eup %4840 }
0x200d   :  { %2822 = vrot.lane.b32.xlu0 %v4841_v47, %s5128_s5 }
0x2018   :  { %v2801_v15 = vpop.f32.mrb[76].mxu1 }
0x2019   :  { %v2812_v5 = vadd.f32 %v2811_v41, %v2801_v15  ;;  %v4478_v18 = vpop.f32.mrb[77].mxu1 }
0x201a   :  { %v2804_v25 = vpop.f32.mrb[78].mxu1 }
0x201b   :  { %4842 = vtanh.f32 %v2812_v5  ;;  %v4479_v11 = vpop.f32.mrb[79].mxu1  ;;  %v3985_v57 = vmul.f32 -1.442695, %v2812_v5 }
0x201c   :  { %4844 = vpow2.f32 %v3984_v2 }
0x2025   :  { %v4843_v14 = vpop.eup %4842 }
0x2026   :  { %2846 = vrot.lane.b32.xlu1 %v4843_v14, %s5128_s5  ;;  %v4845_v9 = vpop.eup %4844 }
0x2027   :  { %v2816_v30 = vadd.f32 1.0, %v4845_v9  ;;  %v6277_v9 = vld [vmem:[#allocation3 + $0x8] sm:$0xff]  }
0x2029   :  { %4846 = vrcp.f32 %v2816_v30  ;;  %v2979_v30 = vunpack.c.h.bf16 %v6277_v9 }
0x202a   :  { %4848 = vpow2.f32 %v3985_v57 }
0x2033   :  { %v4847_v6 = vpop.eup %4846 }
0x2034   :  { %v4849_v0 = vpop.eup %4848  ;;  %v2820_v58 = vmul.f32 %v4847_v6, %v6221_v55 }
0x2035   :  { %v2840_v23 = vadd.f32 1.0, %v4849_v0 }
0x2037   :  { %4850 = vrcp.f32 %v2840_v23 }
0x2041   :  { %v4851_v28 = vpop.eup %4850 }
0x2042   :  { %v2844_v44 = vmul.f32 %v4851_v28, %v6232_v45 }
0x207f   :  { %v2823_v36 = vpop.permute.xlu0 %2822 }
0x2080   :  { %v2825_v24 = vmul.f32 %v4847_v6, %v2823_v36 }
0x2082   :  { %2827 = vrot.lane.b32.xlu0 %v2825_v24, %s5128_s5 }
0x2098   :  { %v2847_v33 = vpop.permute.xlu1 %2846 }
0x2099   :  { %v2849_v17 = vmul.f32 %v4851_v28, %v2847_v33 }
0x209b   :  { %2851 = vrot.lane.b32.xlu1 %v2849_v17, %s5128_s5 }
0x20f4   :  { %v2828_v3 = vpop.permute.xlu0 %2827 }
0x20f5   :  { %v6224_v56 = vadd.f32 %v2828_v3, %v2820_v58 }
0x20f7   :  { %4852 = vtanh.f32 %v6224_v56 }
0x2101   :  { %v4853_v51 = vpop.eup %4852 }
0x2102   :  { %2833 = vrot.lane.b32.xlu0 %v4853_v51, %s5128_s5 }
0x210d   :  { %v2852_v34 = vpop.permute.xlu1 %2851 }
0x210e   :  { %v6235_v62 = vadd.f32 %v2852_v34, %v2844_v44 }
0x2110   :  { %4854 = vtanh.f32 %v6235_v62 }
0x211a   :  { %v4855_v32 = vpop.eup %4854 }
0x211b   :  { %2857 = vrot.lane.b32.xlu1 %v4855_v32, %s5128_s5 }
0x2174   :  { %v2834_v1 = vpop.permute.xlu0 %2833 }
0x2175   :  { %v2836_v12 = vmul.f32 %v4847_v6, %v2834_v1 }
0x2177   :  { %v6239_v40 = vpack.c.bf16 %v2836_v12, %v2836_v12 }
0x2179   :  { %v6245_v37 = vsel %vm5684_vm4, %v6239_v40, %v6183_v61  ;;  %v2863_v48 = vsel %vm5684_vm4, %v6239_v40, 0 }
0x217a   :  { %2884 = vrot.lane.b32.xlu0 %v6245_v37, %s5119_s22  ;;  %v3986_v54 = vcombine.low %v2863_v48, %v2863_v48 }
0x218d   :  { %v2858_v4 = vpop.permute.xlu1 %2857 }
0x218e   :  { %v2860_v31 = vmul.f32 %v4851_v28, %v2858_v4 }
0x2190   :  { %v6249_v50 = vpack.c.bf16 %v2860_v31, %v2860_v31  ;;  %v6287_v31 = vsel %vm6602_vm6, %v6224_v56, %v6221_v55  ;;  %vm6604_vm6 = vmmov %vm6603_vm14 }
0x2192   :  { %v6255_v47 = vsel %vm5666_vm15, %v6249_v50, %v6193_v59  ;;  %v6273_v59 = vld [vmem:[#allocation2 + $0x10] sm:$0xff]   ;;  %v2871_v39 = vsel %vm5666_vm15, %v6249_v50, 0 }
0x2193   :  { %2930 = vrot.lane.b32.xlu1 %v6255_v47, %s5119_s22  ;;  %v2976_v15 = vunpack.c.l.bf16 %v6273_v59  ;;  %v3987_v21 = vcombine.low %v2871_v39, %v2871_v39 }
0x21ec   :  { %v2885_v41 = vpop.permute.xlu0 %2884 }
0x21ed   :  { %4485 = vmatmul.mubr.msk.bf16.vlgmr.msra.gmra.mrb[48].mxu0 %vm211_vm0, %v2885_v41 }
0x21ee   :  { %4497 = vmatpush3.bf16.msra.mxu0 %v5975_v22  ;;  %4500 = vmatprep.mubr.msk.bf16.mxu0 %vm5127_vm1, %v5126_v8 }
0x21ef   :  { %4498 = vmatprep.subr.bf16.mxu0 %v5126_v8 }
0x21f2   :  { %4499 = vmatpush3.bf16.msra.mxu0 %v5978_v26 }
0x21f3   :  { %4512 = vmatprep.subr.bf16.mxu0 %v5126_v8 }
0x2205   :  { %v2931_v61 = vpop.permute.xlu1 %2930 }
0x2206   :  { %4493 = vmatmul.mubr.msk.bf16.vlgmr.msra.gmra.mrb[80].mxu1 %vm211_vm0, %v2931_v61 }
0x2207   :  { %4505 = vmatpush3.bf16.msra.mxu1 %v5986_v63  ;;  %4508 = vmatprep.mubr.msk.bf16.mxu1 %vm5127_vm1, %v5126_v8 }
0x2208   :  { %4506 = vmatprep.subr.bf16.mxu1 %v5126_v8 }
0x220b   :  { %4507 = vmatpush3.bf16.msra.mxu1 %v5989_v19 }
0x220c   :  { %4520 = vmatprep.subr.bf16.mxu1 %v5126_v8 }
0x22c0   :  { %v2923_v5 = vpop.f32.mrb[48].mxu0 }
0x22c1   :  { %v2977_v18 = vadd.f32 %v2976_v15, %v2923_v5  ;;  %v4486_v25 = vpop.f32.mrb[49].mxu0 }
0x22c2   :  { %v2926_v11 = vpop.f32.mrb[50].mxu0 }
0x22c3   :  { %4856 = vtanh.f32 %v2977_v18  ;;  %v4487_v14 = vpop.f32.mrb[51].mxu0  ;;  %v3990_v28 = vmul.f32 -1.442695, %v2977_v18  ;;  %v6298_v18 = vsel %vm6603_vm14, %v6235_v62, %v6232_v45  ;;  %vm6605_vm14 = vcmp.eq.s32.totalorder %v5659_v13, 1 }
0x22cd   :  { %v4857_v2 = vpop.eup %4856 }
0x22ce   :  { %2990 = vrot.lane.b32.xlu0 %v4857_v2, %s5128_s5 }
0x22d9   :  { %v2969_v57 = vpop.f32.mrb[80].mxu1 }
0x22da   :  { %v2980_v6 = vadd.f32 %v2979_v30, %v2969_v57  ;;  %v4494_v36 = vpop.f32.mrb[81].mxu1 }
0x22db   :  { %v2972_v24 = vpop.f32.mrb[82].mxu1 }
0x22dc   :  { %4858 = vtanh.f32 %v2980_v6  ;;  %v4495_v0 = vpop.f32.mrb[83].mxu1  ;;  %v3991_v58 = vmul.f32 -1.442695, %v2980_v6 }
0x22dd   :  { %4860 = vpow2.f32 %v3990_v28 }
0x22e6   :  { %v4859_v23 = vpop.eup %4858 }
0x22e7   :  { %3014 = vrot.lane.b32.xlu1 %v4859_v23, %s5128_s5  ;;  %v4861_v33 = vpop.eup %4860 }
0x22e8   :  { %v2984_v17 = vadd.f32 1.0, %v4861_v33 }
0x22ea   :  { %4862 = vrcp.f32 %v2984_v17 }
0x22eb   :  { %4864 = vpow2.f32 %v3991_v58 }
0x22f4   :  { %v4863_v3 = vpop.eup %4862 }
0x22f5   :  { %v4865_v34 = vpop.eup %4864  ;;  %v2988_v41 = vmul.f32 %v4863_v3, %v6287_v31 }
0x22f6   :  { %v3008_v32 = vadd.f32 1.0, %v4865_v34 }
0x22f8   :  { %4866 = vrcp.f32 %v3008_v32 }
0x2302   :  { %v4867_v1 = vpop.eup %4866 }
0x2303   :  { %v3012_v25 = vmul.f32 %v4867_v1, %v6298_v18 }
0x2340   :  { %v2991_v51 = vpop.permute.xlu0 %2990 }
0x2341   :  { %v2993_v44 = vmul.f32 %v4863_v3, %v2991_v51 }
0x2343   :  { %2995 = vrot.lane.b32.xlu0 %v2993_v44, %s5128_s5 }
0x2359   :  { %v3015_v12 = vpop.permute.xlu1 %3014 }
0x235a   :  { %v3017_v4 = vmul.f32 %v4867_v1, %v3015_v12 }
0x235c   :  { %3019 = vrot.lane.b32.xlu1 %v3017_v4, %s5128_s5 }
0x23b5   :  { %v2996_v61 = vpop.permute.xlu0 %2995 }
0x23b6   :  { %v6290_v15 = vadd.f32 %v2996_v61, %v2988_v41 }
0x23b8   :  { %4868 = vtanh.f32 %v6290_v15 }
0x23c2   :  { %v4869_v5 = vpop.eup %4868 }
0x23c3   :  { %3001 = vrot.lane.b32.xlu0 %v4869_v5, %s5128_s5 }
0x23ce   :  { %v3020_v55 = vpop.permute.xlu1 %3019 }
0x23cf   :  { %v6301_v56 = vadd.f32 %v3020_v55, %v3012_v25 }
0x23d1   :  { %4870 = vtanh.f32 %v6301_v56 }
0x23db   :  { %v4871_v11 = vpop.eup %4870 }
0x23dc   :  { %3025 = vrot.lane.b32.xlu1 %v4871_v11, %s5128_s5  ;;  %v6349_v11 = vsel %vm6604_vm6, %v6290_v15, %v6287_v31 }
0x2435   :  { %v3002_v14 = vpop.permute.xlu0 %3001 }
0x2436   :  { %v3004_v2 = vmul.f32 %v4863_v3, %v3002_v14 }
0x2438   :  { %v6305_v30 = vpack.c.bf16 %v3004_v2, %v3004_v2 }
0x243a   :  { %v6311_v45 = vsel %vm5666_vm15, %v6305_v30, %v6245_v37 }
0x243b   :  { %3052 = vrot.lane.b32.xlu0 %v6311_v45, %s5119_s22 }
0x244e   :  { %v3026_v62 = vpop.permute.xlu1 %3025 }
0x244f   :  { %v3028_v57 = vmul.f32 %v4867_v1, %v3026_v62 }
0x2451   :  { %v6315_v6 = vpack.c.bf16 %v3028_v57, %v3028_v57 }
0x2453   :  { %v6321_v36 = vsel %vm5684_vm4, %v6315_v6, %v6255_v47 }
0x2454   :  { %3098 = vrot.lane.b32.xlu1 %v6321_v36, %s5119_s22 }
0x24ad   :  { %v3053_v24 = vpop.permute.xlu0 %3052 }
0x24ae   :  { %4501 = vmatmul.mubr.msk.bf16.vlgmr.msra.gmra.mrb[52].mxu0 %vm211_vm0, %v3053_v24  ;;  %v6360_v24 = vsel %vm6605_vm14, %v6301_v56, %v6298_v18 }
0x24af   :  { %4513 = vmatpush3.bf16.msra.mxu0 %v5975_v22  ;;  %4516 = vmatprep.mubr.msk.bf16.mxu0 %vm5127_vm1, %v5126_v8  ;;  %v3144_v22 = vunpack.c.h.bf16 %v6273_v59 }
0x24b0   :  { %4514 = vmatprep.subr.bf16.mxu0 %v5126_v8 }
0x24b3   :  { %4515 = vmatpush3.bf16.msra.mxu0 %v5978_v26 }
0x24b4   :  { %4528 = vmatprep.subr.bf16.mxu0 %v5126_v8 }
0x24c6   :  { %v3099_v37 = vpop.permute.xlu1 %3098 }
0x24c7   :  { %4509 = vmatmul.mubr.msk.bf16.vlgmr.msra.gmra.mrb[84].mxu1 %vm211_vm0, %v3099_v37 }
0x24c8   :  { %4521 = vmatpush3.bf16.msra.mxu1 %v5986_v63  ;;  %4524 = vmatprep.mubr.msk.bf16.mxu1 %vm5127_vm1, %v5126_v8  ;;  %v3147_v63 = vunpack.c.l.bf16 %v6277_v9 }
0x24c9   :  { %4522 = vmatprep.subr.bf16.mxu1 %v5126_v8 }
0x24cc   :  { %4523 = vmatpush3.bf16.msra.mxu1 %v5989_v19 }
0x24cd   :  { %4536 = vmatprep.subr.bf16.mxu1 %v5126_v8 }
0x2581   :  { %v3091_v47 = vpop.f32.mrb[52].mxu0 }
0x2582   :  { %v3145_v26 = vadd.f32 %v3144_v22, %v3091_v47  ;;  %v4502_v0 = vpop.f32.mrb[53].mxu0 }
0x2583   :  { %v3094_v23 = vpop.f32.mrb[54].mxu0 }
0x2584   :  { %4872 = vtanh.f32 %v3145_v26  ;;  %v4503_v28 = vpop.f32.mrb[55].mxu0  ;;  %v3996_v59 = vmul.f32 -1.442695, %v3145_v26 }
0x258e   :  { %v4873_v33 = vpop.eup %4872 }
0x258f   :  { %3158 = vrot.lane.b32.xlu0 %v4873_v33, %s5128_s5  ;;  %v4925_v33 = vld [vmem:[#allocation15 + $0x8] sm:$0xff]  }
0x259a   :  { %v3137_v17 = vpop.f32.mrb[84].mxu1 }
0x259b   :  { %v3148_v58 = vadd.f32 %v3147_v63, %v3137_v17  ;;  %v4510_v3 = vpop.f32.mrb[85].mxu1  ;;  %v4927_v17 = vld [vmem:[#allocation17 + $0x8] sm:$0xff]  }
0x259c   :  { %v3140_v51 = vpop.f32.mrb[86].mxu1 }
0x259d   :  { %4874 = vtanh.f32 %v3148_v58  ;;  %v4511_v19 = vpop.f32.mrb[87].mxu1  ;;  %v3997_v1 = vmul.f32 -1.442695, %v3148_v58  ;;  %v6395_v58 = vld [vmem:[#allocation2 + $0x18] sm:$0xff]  }
0x259e   :  { %4876 = vpow2.f32 %v3996_v59  ;;  %v3312_v3 = vunpack.c.l.bf16 %v6395_v58 }
0x25a7   :  { %v4875_v44 = vpop.eup %4874 }
0x25a8   :  { %3182 = vrot.lane.b32.xlu1 %v4875_v44, %s5128_s5  ;;  %v4877_v34 = vpop.eup %4876 }
0x25a9   :  { %v3152_v32 = vadd.f32 1.0, %v4877_v34 }
0x25ab   :  { %4878 = vrcp.f32 %v3152_v32 }
0x25ac   :  { %4880 = vpow2.f32 %v3997_v1  ;;  %v6399_v1 = vld [vmem:[#allocation3] sm:$0xff]  }
0x25b5   :  { %v4879_v12 = vpop.eup %4878 }
0x25b6   :  { %v4881_v9 = vpop.eup %4880  ;;  %v3156_v14 = vmul.f32 %v4879_v12, %v6349_v11 }
0x25b7   :  { %v3176_v61 = vadd.f32 1.0, %v4881_v9 }
0x25b9   :  { %4882 = vrcp.f32 %v3176_v61 }
0x25c3   :  { %v4883_v5 = vpop.eup %4882 }
0x25c4   :  { %v3180_v29 = vmul.f32 %v4883_v5, %v6360_v24 }
0x2601   :  { %v3159_v4 = vpop.permute.xlu0 %3158 }
0x2602   :  { %v3161_v41 = vmul.f32 %v4879_v12, %v3159_v4 }
0x2604   :  { %3163 = vrot.lane.b32.xlu0 %v3161_v41, %s5128_s5 }
0x261a   :  { %v3183_v25 = vpop.permute.xlu1 %3182 }
0x261b   :  { %v3185_v55 = vmul.f32 %v4883_v5, %v3183_v25 }
0x261d   :  { %3187 = vrot.lane.b32.xlu1 %v3185_v55, %s5128_s5 }
0x2676   :  { %v3164_v2 = vpop.permute.xlu0 %3163 }
0x2677   :  { %v6352_v62 = vadd.f32 %v3164_v2, %v3156_v14 }
0x2679   :  { %4884 = vtanh.f32 %v6352_v62 }
0x2683   :  { %v4885_v57 = vpop.eup %4884 }
0x2684   :  { %3169 = vrot.lane.b32.xlu0 %v4885_v57, %s5128_s5 }
0x268f   :  { %v3188_v31 = vpop.permute.xlu1 %3187 }
0x2690   :  { %v6363_v15 = vadd.f32 %v3188_v31, %v3180_v29 }
0x2692   :  { %4886 = vtanh.f32 %v6363_v15 }
0x269c   :  { %v4887_v37 = vpop.eup %4886 }
0x269d   :  { %3193 = vrot.lane.b32.xlu1 %v4887_v37, %s5128_s5 }
0x26f6   :  { %v3170_v22 = vpop.permute.xlu0 %3169 }
0x26f7   :  { %v3172_v47 = vmul.f32 %v4879_v12, %v3170_v22  ;;  %v3315_v12 = vunpack.c.h.bf16 %v6399_v1 }
0x26f9   :  { %v6367_v26 = vpack.c.bf16 %v3172_v47, %v3172_v47 }
0x26fb   :  { %v6373_v13 = vsel %vm5580_vm3, %v6367_v26, %v6311_v45  ;;  %v4924_v45 = vld [vmem:[#allocation15] sm:$0xff]   ;;  %v3199_v27 = vsel %vm5580_vm3, %v6367_v26, 0 }
0x26fc   :  { %3220 = vrot.lane.b32.xlu0 %v6373_v13, %s5119_s22  ;;  %v3998_v60 = vcombine.low %v3199_v27, %v3199_v27 }
0x270f   :  { %v3194_v18 = vpop.permute.xlu1 %3193 }
0x2710   :  { %v3196_v56 = vmul.f32 %v4883_v5, %v3194_v18 }
0x2712   :  { %v6377_v0 = vpack.c.bf16 %v3196_v56, %v3196_v56 }
0x2714   :  { %v6383_v23 = vsel %vm5598_vm9, %v6377_v0, %v6321_v36  ;;  %v4926_v36 = vld [vmem:[#allocation17] sm:$0xff]  }
0x2715   :  { %3266 = vrot.lane.b32.xlu1 %v6383_v23, %s5119_s22 }
0x276e   :  { %v3221_v28 = vpop.permute.xlu0 %3220 }
0x276f   :  { %4517 = vmatmul.mubr.msk.bf16.vlgmr.msra.gmra.mrb[56].mxu0 %vm211_vm0, %v3221_v28  ;;  %v6409_v28 = vsel %vm930_vm2, %v6352_v62, %v6349_v11 }
0x2770   :  { %4529 = vmatpush3.bf16.msra.mxu0 %v4924_v45  ;;  %4532 = vmatprep.mubr.msk.bf16.mxu0 %vm5127_vm1, %v5126_v8 }
0x2771   :  { %4530 = vmatprep.subr.bf16.mxu0 %v5126_v8 }
0x2774   :  { %4531 = vmatpush3.bf16.msra.mxu0 %v4925_v33 }
0x2787   :  { %v3267_v63 = vpop.permute.xlu1 %3266 }
0x2788   :  { %4525 = vmatmul.mubr.msk.bf16.vlgmr.msra.gmra.mrb[88].mxu1 %vm211_vm0, %v3267_v63 }
0x2789   :  { %4537 = vmatpush3.bf16.msra.mxu1 %v4926_v36  ;;  %4540 = vmatprep.mubr.msk.bf16.mxu1 %vm5127_vm1, %v5126_v8  ;;  %vm6606_vm1 = vcmask 257024  }
0x278a   :  { %4538 = vmatprep.subr.bf16.mxu1 %v5126_v8  ;;  %vm6610_vm2 = vmmov %vm6606_vm1 }
0x278b   :  { %vm6614_vm3 = vmmov %vm6606_vm1 }
0x278c   :  { %vm6619_vm6 = vmmov %vm6606_vm1 }
0x278d   :  { %4539 = vmatpush3.bf16.msra.mxu1 %v4927_v17  ;;  %v6417_v17 = vsel %vm915_vm8, %v6363_v15, %v6360_v24  ;;  %vm6615_vm8 = vmmov %vm6606_vm1 }
0x278e   :  { %vm6620_vm14 = vmmov %vm6606_vm1 }
0x2842   :  { %v3259_v51 = vpop.f32.mrb[56].mxu0 }
0x2843   :  { %v3313_v19 = vadd.f32 %v3312_v3, %v3259_v51  ;;  %v4518_v44 = vpop.f32.mrb[57].mxu0 }
0x2844   :  { %v3262_v59 = vpop.f32.mrb[58].mxu0 }
0x2845   :  { %4888 = vtanh.f32 %v3313_v19  ;;  %v4519_v34 = vpop.f32.mrb[59].mxu0  ;;  %v4002_v25 = vmul.f32 -1.442695, %v3313_v19 }
0x284f   :  { %v4889_v32 = vpop.eup %4888 }
0x2850   :  { %3326 = vrot.lane.b32.xlu0 %v4889_v32, %s5128_s5 }
0x285b   :  { %v3305_v8 = vpop.f32.mrb[88].mxu1 }
0x285c   :  { %v3316_v4 = vadd.f32 %v3315_v12, %v3305_v8  ;;  %v4526_v41 = vpop.f32.mrb[89].mxu1  ;;  %v3480_v8 = vunpack.c.h.bf16 %v6395_v58 }
0x285d   :  { %v3308_v9 = vpop.f32.mrb[90].mxu1 }
0x285e   :  { %4890 = vtanh.f32 %v3316_v4  ;;  %v4527_v61 = vpop.f32.mrb[91].mxu1  ;;  %v4003_v2 = vmul.f32 -1.442695, %v3316_v4 }
0x285f   :  { %4892 = vpow2.f32 %v4002_v25 }
0x2868   :  { %v4891_v5 = vpop.eup %4890 }
0x2869   :  { %3350 = vrot.lane.b32.xlu1 %v4891_v5, %s5128_s5  ;;  %v4893_v55 = vpop.eup %4892 }
0x286a   :  { %v3320_v14 = vadd.f32 1.0, %v4893_v55 }
0x286c   :  { %4894 = vrcp.f32 %v3320_v14 }
0x286d   :  { %4896 = vpow2.f32 %v4003_v2 }
0x2876   :  { %v4895_v57 = vpop.eup %4894 }
0x2877   :  { %v4897_v37 = vpop.eup %4896  ;;  %v3324_v45 = vmul.f32 %v4895_v57, %v6409_v28 }
0x2878   :  { %v3344_v22 = vadd.f32 1.0, %v4897_v37 }
0x287a   :  { %4898 = vrcp.f32 %v3344_v22 }
0x2884   :  { %v4899_v47 = vpop.eup %4898 }
0x2885   :  { %v3348_v3 = vmul.f32 %v4899_v47, %v6417_v17 }
0x28c2   :  { %v3327_v29 = vpop.permute.xlu0 %3326 }
0x28c3   :  { %v3329_v31 = vmul.f32 %v4895_v57, %v3327_v29 }
0x28c5   :  { %3331 = vrot.lane.b32.xlu0 %v3329_v31, %s5128_s5 }
0x28db   :  { %v3351_v18 = vpop.permute.xlu1 %3350 }
0x28dc   :  { %v3353_v56 = vmul.f32 %v4899_v47, %v3351_v18 }
0x28de   :  { %3355 = vrot.lane.b32.xlu1 %v3353_v56, %s5128_s5 }
0x2937   :  { %v3332_v33 = vpop.permute.xlu0 %3331 }
0x2938   :  { %v3334_v63 = vadd.f32 %v3332_v33, %v3324_v45 }
0x293a   :  { %4900 = vtanh.f32 %v3334_v63 }
0x2944   :  { %v4901_v36 = vpop.eup %4900 }
0x2945   :  { %3337 = vrot.lane.b32.xlu0 %v4901_v36, %s5128_s5 }
0x2950   :  { %v3356_v51 = vpop.permute.xlu1 %3355 }
0x2951   :  { %v3358_v16 = vadd.f32 %v3356_v51, %v3348_v3  ;;  %v3384_v51 = vsel %vm744_vm10, %v3334_v63, %v6409_v28  ;;  %v3039_v63 = vsel %vm5684_vm4, %v6315_v6, 0  ;;  %v3968_v6 = vcombine.low %v6061_v52, %v6061_v52  ;;  %vm6607_vm10 = vmmov %vm6606_vm1 }
0x2952   :  { %vm6613_vm4 = vmmov %vm6606_vm1 }
0x2953   :  { %4902 = vtanh.f32 %v3358_v16 }
0x295d   :  { %v4903_v11 = vpop.eup %4902 }
0x295e   :  { %3361 = vrot.lane.b32.xlu1 %v4903_v11, %s5128_s5 }
0x29b7   :  { %v3338_v62 = vpop.permute.xlu0 %3337 }
0x29b8   :  { %v3340_v19 = vmul.f32 %v4895_v57, %v3338_v62 }
0x29ba   :  { %v6421_v44 = vpack.c.bf16 %v3340_v19, %v3340_v19 }
0x29bc   :  { %v3383_v59 = vsel %vm5486_vm11, %v6421_v44, %v6373_v13 }
0x29bd   :  { %3388 = vrot.lane.b32.xlu0 %v3383_v59, %s5119_s22 }
0x29d0   :  { %v3362_v35 = vpop.permute.xlu1 %3361 }
0x29d1   :  { %v3364_v24 = vmul.f32 %v4899_v47, %v3362_v35  ;;  %v3386_v35 = vsel %vm729_vm12, %v3358_v16, %v6417_v17  ;;  %v3981_v17 = vcombine.low %v2703_v43, %v2703_v43  ;;  %v3969_v16 = vcombine.low %v6067_v7, %v6067_v7  ;;  %vm6609_vm12 = vmmov %vm6606_vm1 }
0x29d2   :  { %v3367_v7 = vsel %vm5486_vm11, %v6421_v44, 0 }
0x29d3   :  { %v3366_v15 = vpack.c.bf16 %v3364_v24, %v3364_v24  ;;  %v4004_v52 = vcombine.low %v3367_v7, %v3367_v7 }
0x29d5   :  { %v3385_v34 = vsel %vm5504_vm13, %v3366_v15, %v6383_v23  ;;  %v3483_v23 = vunpack.c.l.bf16 %v6399_v1  ;;  %v3375_v38 = vsel %vm5504_vm13, %v3366_v15, 0  ;;  %v2695_v15 = vsel %vm5598_vm9, %v6177_v53, 0  ;;  %v4652_v53 = vld [vmem:[%s6576_s10 + $0x10] sm:$0xff]   ;;  %vm6612_vm13 = vmmov %vm6606_vm1 }
0x29d6   :  { %3434 = vrot.lane.b32.xlu1 %v3385_v34, %s5119_s22  ;;  %v4005_v28 = vcombine.low %v3375_v38, %v3375_v38  ;;  %v3980_v10 = vcombine.low %v2695_v15, %v2695_v15  ;;  %4544 = vmatprep.subr.bf16.mxu0 %v4652_v53 }
0x2a2f   :  { %v3389_v32 = vpop.permute.xlu0 %3388 }
0x2a30   :  { %4533 = vmatmul.mubr.msk.bf16.vlgmr.msra.gmra.mrb[60].mxu0 %vm211_vm0, %v3389_v32 }
0x2a31   :  { %4545 = vmatpush3.bf16.msra.mxu0 %v4652_v53 }
0x2a48   :  { %v3435_v12 = vpop.permute.xlu1 %3434 }
0x2a49   :  { %4541 = vmatmul.mubr.msk.bf16.vlgmr.msra.gmra.mrb[92].mxu1 %vm211_vm0, %v3435_v12 }
0x2b03   :  { %v3427_v13 = vpop.f32.mrb[60].mxu0 }
0x2b04   :  { %v3481_v4 = vadd.f32 %v3480_v8, %v3427_v13  ;;  %v4534_v41 = vpop.f32.mrb[61].mxu0  ;;  %v3993_v8 = vcombine.low %v3039_v63, %v3039_v63  ;;  %v3031_v13 = vsel %vm5666_vm15, %v6305_v30, 0  ;;  %v4653_v30 = vld [vmem:[%s6576_s10 + $0x18] sm:$0xff]   ;;  %vm6618_vm15 = vmmov %vm6606_vm1 }
0x2b05   :  { %v3430_v9 = vpop.f32.mrb[62].mxu0  ;;  %4546 = vmatprep.subr.bf16.mxu0 %v4653_v30 }
0x2b06   :  { %4904 = vtanh.f32 %v3481_v4  ;;  %v4535_v61 = vpop.f32.mrb[63].mxu0  ;;  %v4008_v58 = vmul.f32 -1.442695, %v3481_v4  ;;  %v3992_v4 = vcombine.low %v3031_v13, %v3031_v13  ;;  %4547 = vmatpush3.bf16.msra.mxu0 %v4653_v30 }
0x2b10   :  { %v4905_v5 = vpop.eup %4904 }
0x2b11   :  { %3494 = vrot.lane.b32.xlu0 %v4905_v5, %s5128_s5 }
0x2b1c   :  { %v3473_v25 = vpop.f32.mrb[92].mxu1 }
0x2b1d   :  { %v3484_v55 = vadd.f32 %v3483_v23, %v3473_v25  ;;  %v4542_v14 = vpop.f32.mrb[93].mxu1  ;;  %v3207_v25 = vsel %vm5598_vm9, %v6377_v0, 0  ;;  %v2535_v0 = vsel %vm5486_vm11, %v6121_v42, 0  ;;  %vm6611_vm11 = vmmov %vm6606_vm1 }
0x2b1e   :  { %v3476_v2 = vpop.f32.mrb[94].mxu1  ;;  %v4656_v14 = vld [vmem:[%s6576_s10] sm:$0xff]   ;;  %vm6616_vm9 = vmmov %vm6606_vm1 }
0x2b1f   :  { %4906 = vtanh.f32 %v3484_v55  ;;  %v4543_v57 = vpop.f32.mrb[95].mxu1  ;;  %v4009_v22 = vmul.f32 -1.442695, %v3484_v55  ;;  %v3999_v2 = vcombine.low %v3207_v25, %v3207_v25  ;;  %4556 = vmatprep.subr.bf16.mxu0 %v4656_v14 }
0x2b20   :  { %4908 = vpow2.f32 %v4008_v58  ;;  %v3975_v58 = vcombine.low %v2535_v0, %v2535_v0 }
0x2b29   :  { %v4907_v29 = vpop.eup %4906 }
0x2b2a   :  { %3518 = vrot.lane.b32.xlu1 %v4907_v29, %s5128_s5  ;;  %v4909_v31 = vpop.eup %4908 }
0x2b2b   :  { %v3488_v37 = vadd.f32 1.0, %v4909_v31 }
0x2b2d   :  { %4910 = vrcp.f32 %v3488_v37  ;;  %v3974_v37 = vcombine.low %v2527_v49, %v2527_v49 }
0x2b2e   :  { %4912 = vpow2.f32 %v4009_v22 }
0x2b37   :  { %v6438_v47 = vpop.eup %4910 }
0x2b38   :  { %v4913_v56 = vpop.eup %4912  ;;  %v3492_v11 = vmul.f32 %v6438_v47, %v3384_v51 }
0x2b39   :  { %v3512_v45 = vadd.f32 1.0, %v4913_v56 }
0x2b3b   :  { %4914 = vrcp.f32 %v3512_v45 }
0x2b45   :  { %v4915_v33 = vpop.eup %4914 }
0x2b46   :  { %v3516_v24 = vmul.f32 %v4915_v33, %v3386_v35 }
0x2b83   :  { %v3495_v18 = vpop.permute.xlu0 %3494 }
0x2b84   :  { %v3497_v1 = vmul.f32 %v6438_v47, %v3495_v18 }
0x2b86   :  { %3499 = vrot.lane.b32.xlu0 %v3497_v1, %s5128_s5 }
0x2b9c   :  { %v3519_v36 = vpop.permute.xlu1 %3518 }
0x2b9d   :  { %v3521_v3 = vmul.f32 %v4915_v33, %v3519_v36 }
0x2b9f   :  { %3523 = vrot.lane.b32.xlu1 %v3521_v3, %s5128_s5  ;;  %v4659_v3 = vld [vmem:[%s6576_s10 + $0x8] sm:$0xff]  }
0x2bf8   :  { %v3500_v62 = vpop.permute.xlu0 %3499 }
0x2bf9   :  { %v3502_v19 = vadd.f32 %v3500_v62, %v3492_v11 }
0x2bfb   :  { %4916 = vtanh.f32 %v3502_v19 }
0x2c05   :  { %v4917_v59 = vpop.eup %4916 }
0x2c06   :  { %3505 = vrot.lane.b32.xlu0 %v4917_v59, %s5128_s5 }
0x2c11   :  { %v3524_v34 = vpop.permute.xlu1 %3523 }
0x2c12   :  { %v3526_v32 = vadd.f32 %v3524_v34, %v3516_v24 }
0x2c14   :  { %4918 = vtanh.f32 %v3526_v32 }
0x2c1e   :  { %v4919_v12 = vpop.eup %4918 }
0x2c1f   :  { %3529 = vrot.lane.b32.xlu1 %v4919_v12, %s5128_s5 }
0x2c23   :  { %3379 = vrot.lane.b32.xlu1 %v4005_v28, %s5119_s22  ;;  %v4032_v28 = vld [vmem:[%s6577_s11] ss:$0 sm:$0xff]  ;;  %s5082_s11 = scalar_lea.vmem %s3830_s16, 512 }
0x2c24   :  { %p5083_p0 = scmp.ne.s32.totalorder %s3830_s16, %s5082_s11  ;;  %p5088_p2 = scmp.lt.s32.totalorder %s5082_s11, %s5082_s11 }
0x2c26   :  { %p5089_p3 = por %p5088_p2, %p5087_p1 }
0x2c27   :  { %3043 = vrot.lane.b32.xlu1 %v3993_v8, %s5119_s22 }
0x2c28   :  { %p5090_p4 = pnand %p5089_p3, %p5083_p0 }
0x2c2b   :  { %2707 = vrot.lane.b32.xlu1 %v3981_v17, %s5119_s22 }
0x2c2f   :  { %2375 = vrot.lane.b32.xlu1 %v3969_v16, %s5119_s22 }
0x2c33   :  { %2367 = vrot.lane.b32.xlu1 %v3968_v6, %s5119_s22 }
0x2c37   :  { %2699 = vrot.lane.b32.xlu1 %v3980_v10, %s5119_s22 }
0x2c3b   :  { %3035 = vrot.lane.b32.xlu1 %v3992_v4, %s5119_s22 }
0x2c3f   :  { %3371 = vrot.lane.b32.xlu1 %v4004_v52, %s5119_s22 }
0x2c78   :  { %v3506_v50 = vpop.permute.xlu0 %3505 }
0x2c79   :  { %v3508_v42 = vmul.f32 %v6438_v47, %v3506_v50 }
0x2c7b   :  { %v3533_v18 = vpack.c.bf16 %v3508_v42, %v3508_v42 }
0x2c7d   :  { %v3535_v40 = vsel %vm5419_vm7, %v3533_v18, 0  ;;  %vm6617_vm7 = vmmov %vm6606_vm1 }
0x2c7e   :  { %v4010_v56 = vcombine.low %v3535_v40, %v3535_v40 }
0x2c91   :  { %v3530_v41 = vpop.permute.xlu1 %3529 }
0x2c92   :  { %v3532_v9 = vmul.f32 %v4915_v33, %v3530_v41 }
0x2c94   :  { %v3534_v61 = vpack.c.bf16 %v3532_v9, %v3532_v9 }
0x2c95   :  { %v3380_v5 = vpop.permute.xlu1 %3379 }
0x2c96   :  { %v3543_v44 = vsel %vm5403_vm5, %v3534_v61, 0  ;;  %3382 = vst.msk [vmem:[#allocation5 + $0x4] sm:$0xf] %vm6606_vm1, %v3380_v5  ;;  %vm6608_vm5 = vmmov %vm6606_vm1 }
0x2c97   :  { %v4011_v23 = vcombine.low %v3543_v44, %v3543_v44 }
0x2c99   :  { %3547 = vrot.lane.b32.xlu0 %v4011_v23, %s5119_s22  ;;  %v3044_v55 = vpop.permute.xlu1 %3043 }
0x2c9a   :  { %3046 = vst.msk [vmem:[#allocation5 + $0xc] sm:$0xf] %vm6607_vm10, %v3044_v55 }
0x2c9d   :  { %3211 = vrot.lane.b32.xlu0 %v3999_v2, %s5119_s22  ;;  %v2708_v57 = vpop.permute.xlu1 %2707 }
0x2c9e   :  { %2710 = vst.msk [vmem:[#allocation5 + $0x14] sm:$0xf] %vm6608_vm5, %v2708_v57 }
0x2ca1   :  { %2875 = vrot.lane.b32.xlu0 %v3987_v21, %s5119_s22  ;;  %v2376_v29 = vpop.permute.xlu1 %2375 }
0x2ca2   :  { %2378 = vst.msk [vmem:[#allocation5 + $0x1c] sm:$0xf] %vm6609_vm12, %v2376_v29 }
0x2ca5   :  { %2539 = vrot.lane.b32.xlu0 %v3975_v58, %s5119_s22  ;;  %v2368_v31 = vpop.permute.xlu1 %2367 }
0x2ca6   :  { %2370 = vst.msk [vmem:[#allocation4] sm:$0xf] %vm6610_vm2, %v2368_v31 }
0x2ca9   :  { %2531 = vrot.lane.b32.xlu0 %v3974_v37, %s5119_s22  ;;  %v2700_v22 = vpop.permute.xlu1 %2699 }
0x2caa   :  { %2702 = vst.msk [vmem:[#allocation4 + $0x8] sm:$0xf] %vm6611_vm11, %v2700_v22 }
0x2cad   :  { %2867 = vrot.lane.b32.xlu0 %v3986_v54, %s5119_s22  ;;  %v3036_v1 = vpop.permute.xlu1 %3035 }
0x2cae   :  { %3038 = vst.msk [vmem:[#allocation4 + $0x10] sm:$0xf] %vm6612_vm13, %v3036_v1 }
0x2cb1   :  { %3203 = vrot.lane.b32.xlu0 %v3998_v60, %s5119_s22  ;;  %v3372_v47 = vpop.permute.xlu1 %3371 }
0x2cb2   :  { %3374 = vst.msk [vmem:[#allocation4 + $0x18] sm:$0xf] %vm6613_vm4, %v3372_v47 }
0x2cb5   :  { %3539 = vrot.lane.b32.xlu0 %v4010_v56, %s5119_s22 }
0x2d0b   :  { %v3548_v20 = vpop.permute.xlu0 %3547 }
0x2d0c   :  { %3550 = vst.msk [vmem:[#allocation5] sm:$0xf] %vm6614_vm3, %v3548_v20 }
0x2d0f   :  { %v3212_v26 = vpop.permute.xlu0 %3211 }
0x2d10   :  { %3214 = vst.msk [vmem:[#allocation5 + $0x8] sm:$0xf] %vm6615_vm8, %v3212_v26 }
0x2d13   :  { %v2876_v45 = vpop.permute.xlu0 %2875  ;;  %v4654_v33 = vld [vmem:[#allocation5] sm:$0xff]  }
0x2d14   :  { %2878 = vst.msk [vmem:[#allocation5 + $0x10] sm:$0xf] %vm6616_vm9, %v2876_v45  ;;  %4548 = vmatprep.mubr.msk.bf16.mxu0 %vm211_vm0, %v4654_v33 }
0x2d17   :  { %v2540_v46 = vpop.permute.xlu0 %2539  ;;  %v4655_v36 = vld [vmem:[#allocation5 + $0x8] sm:$0xff]  }
0x2d18   :  { %2542 = vst.msk [vmem:[#allocation5 + $0x18] sm:$0xf] %vm6617_vm7, %v2540_v46  ;;  %4549 = vmatmul.mubr.msk.bf16.vlgmr.msra.gmra.mrb[64].mxu0 %vm211_vm0, %v4655_v36 }
0x2d19   :  { %4557 = vmatpush3.bf16.msra.mxu0 %v4656_v14 }
0x2d1a   :  { %4558 = vmatprep.subr.bf16.mxu0 %v4659_v3 }
0x2d1b   :  { %v2532_v51 = vpop.permute.xlu0 %2531  ;;  %v4657_v11 = vld [vmem:[#allocation5 + $0x10] sm:$0xff]  }
0x2d1c   :  { %2534 = vst.msk [vmem:[#allocation4 + $0x4] sm:$0xf] %vm6618_vm15, %v2532_v51  ;;  %4552 = vmatprep.mubr.msk.bf16.mxu0 %vm211_vm0, %v4657_v11 }
0x2d1d   :  { %4559 = vmatpush3.bf16.msra.mxu0 %v4659_v3 }
0x2d1f   :  { %v2868_v62 = vpop.permute.xlu0 %2867  ;;  %v4658_v19 = vld [vmem:[#allocation5 + $0x18] sm:$0xff]  }
0x2d20   :  { %2870 = vst.msk [vmem:[#allocation4 + $0xc] sm:$0xf] %vm6619_vm6, %v2868_v62  ;;  %4553 = vmatmul.mubr.msk.bf16.gmra.mrb[68].mxu0 %vm211_vm0, %v4658_v19 }
0x2d23   :  { %v3204_v59 = vpop.permute.xlu0 %3203  ;;  %v4660_v35 = vld [vmem:[#allocation4] sm:$0xff]  }
0x2d24   :  { %3206 = vst.msk [vmem:[#allocation4 + $0x14] sm:$0xf] %vm6620_vm14, %v3204_v59  ;;  %4560 = vmatprep.mubr.msk.bf16.mxu0 %vm211_vm0, %v4660_v35 }
0x2d27   :  { %v3540_v24 = vpop.permute.xlu0 %3539  ;;  %v4661_v34 = vld [vmem:[#allocation4 + $0x8] sm:$0xff]  }
0x2d28   :  { %3542 = vst.msk [vmem:[#allocation4 + $0x1c] sm:$0xf] %vm6606_vm1, %v3540_v24  ;;  %4561 = vmatmul.mubr.msk.bf16.vlgmr.msra.gmra.mrb[64].mxu0 %vm211_vm0, %v4661_v34 }
0x2d2b   :  { %v4662_v32 = vld [vmem:[#allocation4 + $0x10] sm:$0xff]  }
0x2d2c   :  { %4564 = vmatprep.mubr.msk.bf16.mxu0 %vm211_vm0, %v4662_v32 }
0x2d2f   :  { %v4663_v12 = vld [vmem:[#allocation4 + $0x18] sm:$0xff]  }
0x2d30   :  { %4565 = vmatmul.mubr.msk.bf16.gmra.mrb[68].mxu0 %vm211_vm0, %v4663_v12 }
0x2dfb   :  { %v4562_v38 = vpop.f32.mrb[64].mxu0 }
0x2dfc   :  { %v3762_v63 = vpop.f32.mrb[65].mxu0  ;;  %v3802_v43 = vadd.f32 %v4562_v38, %v4032_v28 }
0x2dfd   :  { %v4563_v8 = vpop.f32.mrb[66].mxu0  ;;  %v3800_v6 = vadd.f32 %v4032_v28, %v3762_v63 }
0x2dfe   :  { %v3803_v17 = vadd.f32 %v4563_v8, %v4032_v28  ;;  %v3765_v16 = vpop.f32.mrb[67].mxu0 }
0x2dff   :  { %v3801_v15 = vadd.f32 %v4032_v28, %v3765_v16 }
0x2e00   :  { %v4153_v10 = vpack.c.bf16 %v3803_v17, %v3802_v43 }
0x2e01   :  { %v4148_v13 = vpack.c.bf16 %v3801_v15, %v3800_v6 }
0x2e02   :  { %4177 = vst [vmem:[#allocation18 + $0x8] sm:$0xff] %v4153_v10  }
0x2e03   :  { %4149 = vst [vmem:[#allocation18] sm:$0xff] %v4148_v13   ;;  %v4566_v4 = vpop.f32.mrb[68].mxu0 }
0x2e04   :  { %v3778_v7 = vpop.f32.mrb[69].mxu0  ;;  %v3806_v53 = vadd.f32 %v4566_v4, %v4032_v28 }
0x2e05   :  { %v4567_v52 = vpop.f32.mrb[70].mxu0  ;;  %v3804_v30 = vadd.f32 %v4032_v28, %v3778_v7 }
0x2e06   :  { %v3807_v41 = vadd.f32 %v4567_v52, %v4032_v28  ;;  %v3781_v9 = vpop.f32.mrb[71].mxu0 }
0x2e07   :  { %v3805_v61 = vadd.f32 %v4032_v28, %v3781_v9 }
0x2e08   :  { %v4163_v5 = vpack.c.bf16 %v3807_v41, %v3806_v53 }
0x2e09   :  { %v4158_v44 = vpack.c.bf16 %v3805_v61, %v3804_v30 }
0x2e0a   :  { %4179 = vst [vmem:[#allocation18 + $0x18] sm:$0xff] %v4163_v5  }
0x2e0b   :  { %4178 = vst [vmem:[#allocation18 + $0x10] sm:$0xff] %v4158_v44  }
0x2e0c   :  { %5093 = shalt.err (!%p5090_p4)
}
0x2e0d   :  { %s5094_s28 = scalar_lea.hbm %s6578_s12, 512 }
0x2e0e   :  { %p5095_p5 = scmp.ne.s32.totalorder %s6578_s12, %s5094_s28  ;;  %p5098_p6 = scmp.lt.u32.totalorder %s5094_s28, %s6578_s12 }
0x2e10   :  { %p5100_p7 = pnand %p5098_p6, %p5095_p5 }
0x2e12   :  { %5103 = shalt.err (!%p5100_p7)
}
0x2e13   :  { %3835 = dma.vmem_to_hbm [thread:$0]  %s3830_s16, 512, %s6578_s12, [#allocation8], %s5119_s22, %s5119_s22, %s5120_s29  }
0x2e14   :  { %5112 = dma.done.wait [#allocation8], 512  }
0x2e15   :  { %5113 = vsyncadd [#allocation8], 4294966784 }
0x2e16   :  { %3839 = vsyncpa [#allocation7], 1 }
0x2e17   :  { %3840 = vsyncpa [#allocation10], 1 }
0x2e18   :  { %3841 = vsyncpa [#allocation13], 1 }
0x2e19   :  { %3842 = vsyncpa [#allocation16], 1 }
0x2e1a   :  { %3843 = vsyncpa [#allocation8], 1 }

</bundles_post_ra>
